<compile_context>
chip_gen: v6e
topology: v6e:2x2x1
jax: 0.10.0
libtpu: 0.0.40
codegen_flags: <defaults>
</compile_context>

<pallas_src>
import functools

import jax
import jax.numpy as jnp
from jax import lax
from jax.experimental import pallas as pl
from jax.experimental.pallas import tpu as pltpu

_CP = 128  # padded channel / lane width


# -----------------------------------------------------------------------------
# Kernel 1 & 2: fused conv3x3 (pad=1) + bias + ReLU + 2x2 maxpool, one image/step
# -----------------------------------------------------------------------------
def _conv_relu_pool_kernel(x_ref, w_ref, b_ref, o_ref, row_ref, *, H, W, Cout):
    # x_ref : (1, H+2, W+2, Cin)  bf16  -- spatially zero-padded input image
    # w_ref : (9, Cin, Cout)      bf16  -- tap t = kh*3 + kw, (Cin, Cout) matrix
    # b_ref : (1, Cout)           f32
    # o_ref : (1, H//2, W//2, Cout) bf16 -- pooled output, (h, w, c) order
    # row_ref: VMEM scratch (W, Cout) f32 -- max over the two conv rows of a pair
    Ho, Wo = H // 2, W // 2
    bias = b_ref[...]  # (1, Cout) f32

    def conv_row(r):
        # conv + bias + ReLU for one output row r (in-kernel "im2col"):
        # 9 shifted (W, Cin) x (Cin, Cout) matmuls accumulated in f32.
        acc = jnp.zeros((W, Cout), jnp.float32)
        for kh in range(3):
            for kw in range(3):
                a = x_ref[0, r + kh, pl.ds(kw, W), :]          # (W, Cin) bf16
                acc = acc + jnp.dot(a, w_ref[3 * kh + kw],
                                    preferred_element_type=jnp.float32)
        return jnp.maximum(acc + bias, 0.0)                    # f32 epilogue

    def body(i, carry):
        # rows 2i and 2i+1 -> vertical max (kept in VMEM scratch)
        row_ref[...] = jnp.maximum(conv_row(2 * i), conv_row(2 * i + 1))
        # horizontal 2x2 max via strided sublane reads of the scratch
        pooled = jnp.maximum(row_ref[pl.ds(0, Wo, 2), :],
                             row_ref[pl.ds(1, Wo, 2), :])      # (Wo, Cout)
        o_ref[0, i] = pooled.astype(o_ref.dtype)
        return carry

    lax.fori_loop(0, Ho, body, 0)


def conv_relu_pool(xp, w, b, *, H, W):
    # xp: (B, H+2, W+2, Cin) bf16, w: (9, Cin, Cout) bf16, b: (1, Cout) f32
    B = xp.shape[0]
    Cin, Cout = w.shape[1], w.shape[2]
    Ho, Wo = H // 2, W // 2
    kernel = functools.partial(_conv_relu_pool_kernel, H=H, W=W, Cout=Cout)
    return pl.pallas_call(
        kernel,
        out_shape=jax.ShapeDtypeStruct((B, Ho, Wo, Cout), jnp.bfloat16),
        grid=(B,),
        in_specs=[
            pl.BlockSpec((1, H + 2, W + 2, Cin), lambda bi: (bi, 0, 0, 0)),
            pl.BlockSpec((9, Cin, Cout), lambda bi: (0, 0, 0)),
            pl.BlockSpec((1, Cout), lambda bi: (0, 0)),
        ],
        out_specs=pl.BlockSpec((1, Ho, Wo, Cout), lambda bi: (bi, 0, 0, 0)),
        scratch_shapes=[pltpu.VMEM((W, Cout), jnp.float32)],
        compiler_params=pltpu.CompilerParams(dimension_semantics=("parallel",)),
    )(xp, w, b)


# -----------------------------------------------------------------------------
# Kernel 3: fused fc1 (+ReLU) + fc2 (fc1 split into image / text matmuls so no
# concat is needed; all operands bf16, f32 accumulate & epilogue)
# -----------------------------------------------------------------------------
def _fc_fused_kernel(img_ref, txt_ref, w1i_ref, w1t_ref, b1_ref, w2_ref, b2_ref,
                     o_ref):
    h = jnp.dot(img_ref[...], w1i_ref[...], preferred_element_type=jnp.float32)
    h = h + jnp.dot(txt_ref[...], w1t_ref[...], preferred_element_type=jnp.float32)
    h = jnp.maximum(h + b1_ref[...], 0.0)                       # fc1 + ReLU
    o = jnp.dot(h.astype(jnp.bfloat16), w2_ref[...],
                preferred_element_type=jnp.float32)
    o_ref[...] = (o + b2_ref[...]).astype(o_ref.dtype)          # fc2


_VMEM_SPEC = pl.BlockSpec(memory_space=pltpu.MemorySpace.VMEM)


def fc_fused(img, txt, w1i, w1t, b1, w2, b2):
    B = img.shape[0]
    N = w2.shape[1]
    return pl.pallas_call(
        _fc_fused_kernel,
        out_shape=jax.ShapeDtypeStruct((B, N), jnp.float32),
        in_specs=[_VMEM_SPEC] * 7,
        out_specs=_VMEM_SPEC,
    )(img, txt, w1i, w1t, b1, w2, b2)


# -----------------------------------------------------------------------------
# Parameter init (PyTorch layout) and one-time kernel-layout preparation
# -----------------------------------------------------------------------------
def init_params(key, vocab_size, embedding_dim, num_classes):
    keys = jax.random.split(key, 10)
    p = {}
    p["emb"] = jax.random.normal(keys[0], (vocab_size, embedding_dim), jnp.float32) * 0.1
    p["conv1_w"] = jax.random.normal(keys[1], (32, 3, 3, 3), jnp.float32) * 0.1
    p["conv1_b"] = jax.random.normal(keys[2], (32,), jnp.float32) * 0.01
    p["conv2_w"] = jax.random.normal(keys[3], (64, 32, 3, 3), jnp.float32) * 0.05
    p["conv2_b"] = jax.random.normal(keys[4], (64,), jnp.float32) * 0.01
    fin = 64 * 7 * 7 + embedding_dim
    p["fc1_w"] = jax.random.normal(keys[5], (fin, 128), jnp.float32) * 0.02
    p["fc1_b"] = jax.random.normal(keys[6], (128,), jnp.float32) * 0.01
    p["fc2_w"] = jax.random.normal(keys[7], (128, num_classes), jnp.float32) * 0.05
    p["fc2_b"] = jax.random.normal(keys[8], (num_classes,), jnp.float32) * 0.01
    return p


def _prep_conv_w(w_oihw, cin_pad, cout_pad):
    # PyTorch (Cout, Cin, 3, 3) -> (9, cin_pad, cout_pad) bf16, tap t = kh*3+kw
    Cout, Cin, _, _ = w_oihw.shape
    w = jnp.transpose(w_oihw, (2, 3, 1, 0)).reshape(9, Cin, Cout)
    w = jnp.pad(w, ((0, 0), (0, cin_pad - Cin), (0, cout_pad - Cout)))
    return w.astype(jnp.bfloat16)


def _prep_bias(b, cpad):
    return jnp.pad(b, (0, cpad - b.shape[0])).reshape(1, cpad).astype(jnp.float32)


def prepare_params(p, num_classes):
    kp = {}
    kp["emb"] = p["emb"]                                          # f32, XLA gather
    kp["conv1_w"] = _prep_conv_w(p["conv1_w"], cin_pad=3, cout_pad=_CP)
    kp["conv1_b"] = _prep_bias(p["conv1_b"], _CP)
    kp["conv2_w"] = _prep_conv_w(p["conv2_w"], cin_pad=_CP, cout_pad=_CP)
    kp["conv2_b"] = _prep_bias(p["conv2_b"], _CP)
    # fc1: permute image rows NCHW(c,h,w) -> NHWC(h,w,c) + zero rows for padded
    # channels, so the kernel can consume the natural (h,w,c_pad) flatten.
    n_img = 64 * 7 * 7
    w_img = p["fc1_w"][:n_img].reshape(64, 7, 7, 128)             # (c,h,w,n)
    w_img = jnp.transpose(w_img, (1, 2, 0, 3))                    # (h,w,c,n)
    w_img = jnp.pad(w_img, ((0, 0), (0, 0), (0, _CP - 64), (0, 0)))
    kp["fc1_w_img"] = w_img.reshape(7 * 7 * _CP, 128).astype(jnp.bfloat16)
    kp["fc1_w_txt"] = p["fc1_w"][n_img:].astype(jnp.bfloat16)     # (E,128)
    kp["fc1_b"] = p["fc1_b"].reshape(1, 128).astype(jnp.float32)
    kp["fc2_w"] = jnp.pad(p["fc2_w"],
                          ((0, 0), (0, _CP - p["fc2_w"].shape[1]))).astype(jnp.bfloat16)
    kp["fc2_b"] = _prep_bias(p["fc2_b"], _CP)
    return kp


# -----------------------------------------------------------------------------
# Forward pass (3 fused Pallas kernels + thin XLA glue)
# -----------------------------------------------------------------------------
@functools.partial(jax.jit, static_argnames=("num_classes",))
def forward(kp, image_nchw, text, num_classes):
    B = image_nchw.shape[0]
    # NCHW -> NHWC, zero-pad spatially (conv padding=1), bf16 MXU operands
    x = jnp.transpose(image_nchw, (0, 2, 3, 1)).astype(jnp.bfloat16)   # (B,28,28,3)
    xp = jnp.pad(x, ((0, 0), (1, 1), (1, 1), (0, 0)))
    h = conv_relu_pool(xp, kp["conv1_w"], kp["conv1_b"], H=28, W=28)   # (B,14,14,128)
    hp = jnp.pad(h, ((0, 0), (1, 1), (1, 1), (0, 0)))
    h = conv_relu_pool(hp, kp["conv2_w"], kp["conv2_b"], H=14, W=14)   # (B,7,7,128)
    img_feat = h.reshape(B, 7 * 7 * _CP)                               # lane-dense flatten

    # embedding(text).mean(dim=1): gather + mean in XLA, O(B*L*E)
    # TODO(synk): for very large vocab/seq this could become a scalar-prefetch
    #             DMA-gather Pallas kernel; at these sizes XLA glue is optimal.
    txt_feat = kp["emb"][text].mean(axis=1).astype(jnp.bfloat16)       # (B,E)

    out_pad = fc_fused(img_feat, txt_feat, kp["fc1_w_img"], kp["fc1_w_txt"],
                       kp["fc1_b"], kp["fc2_w"], kp["fc2_b"])          # (B,128) f32
    return out_pad[:, :num_classes]


# -----------------------------------------------------------------------------
# Pure-JAX reference (PyTorch-faithful, f32) for verification only
# -----------------------------------------------------------------------------
def reference_forward(params, image_nchw, text):
    x = image_nchw.astype(jnp.float32)

    def conv(x_nchw, w, b):
        y = lax.conv_general_dilated(
            x_nchw, w, window_strides=(1, 1), padding=((1, 1), (1, 1)),
            dimension_numbers=("NCHW", "OIHW", "NCHW"))
        return y + b[None, :, None, None]

    def pool(x_nchw):
        return lax.reduce_window(
            x_nchw, -jnp.inf, lax.max,
            window_dimensions=(1, 1, 2, 2), window_strides=(1, 1, 2, 2),
            padding="VALID")

    h = pool(jax.nn.relu(conv(x, params["conv1_w"], params["conv1_b"])))
    h = pool(jax.nn.relu(conv(h, params["conv2_w"], params["conv2_b"])))
    img_feat = h.reshape(h.shape[0], 64 * 7 * 7)
    txt_feat = params["emb"][text].mean(axis=1)
    comb = jnp.concatenate([img_feat, txt_feat], axis=1)
    h = jax.nn.relu(comb @ params["fc1_w"] + params["fc1_b"])
    return h @ params["fc2_w"] + params["fc2_b"]


if __name__ == "__main__":
    B, L = 2, 8
    H = W = 28                 # 28 -> pool -> 14 -> pool -> 7, matches fc1 = 64*7*7
    vocab_size = 50
    embedding_dim = 32
    num_classes = 10

    key = jax.random.PRNGKey(0)
    k_img, k_txt, k_par = jax.random.split(key, 3)

    image = jax.random.normal(k_img, (B, 3, H, W), jnp.float32)        # NCHW like PyTorch
    text = jax.random.randint(k_txt, (B, L), 0, vocab_size, jnp.int32)
    params = init_params(k_par, vocab_size, embedding_dim, num_classes)
    kparams = prepare_params(params, num_classes)                      # one-time prep

    out = forward(kparams, image, text, num_classes=num_classes)
    out = jax.block_until_ready(out)

    ref = jax.block_until_ready(reference_forward(params, image, text))

    assert out.shape == (B, num_classes), out.shape
    # bf16 MXU operands -> slightly looser tolerance than a pure-f32 pipeline.
    assert jnp.allclose(out, ref, rtol=3e-2, atol=3e-2), (
        f"max abs diff {jnp.max(jnp.abs(out - ref))}")

    print("KERNEL_OK")
</pallas_src>

<mosaic_0001>
module attributes {stable_mosaic.version = 11 : i64} {
  func.func @_conv_relu_pool_kernel(%arg0: i32, %arg1: memref<1x30x30x3xbf16, #tpu.memory_space<vmem>>, %arg2: memref<9x3x128xbf16, #tpu.memory_space<vmem>>, %arg3: memref<1x128xf32, #tpu.memory_space<vmem>>, %arg4: memref<1x14x14x128xbf16, #tpu.memory_space<vmem>>, %arg5: memref<28x128xf32, #tpu.memory_space<vmem>>) attributes {dimension_semantics = [#tpu.dimension_semantics<parallel>], iteration_bounds = array<i64: 2>, scalar_prefetch = 0 : i64, scratch_operands = 1 : i64, tpu.core_type = #tpu.core_type<tc>, window_params = [{transform_indices = @transform_0, window_bounds = array<i64: 1, 30, 30, 3>}, {pipeline_mode = #tpu.pipeline_mode<synchronous>, transform_indices = @transform_1, window_bounds = array<i64: 9, 3, 128>}, {pipeline_mode = #tpu.pipeline_mode<synchronous>, transform_indices = @transform_2, window_bounds = array<i64: 1, 128>}, {transform_indices = @transform_3, window_bounds = array<i64: 1, 14, 14, 128>}]} {
    %c0 = arith.constant 0 : index
    %c0_0 = arith.constant 0 : index
    %0 = vector.load %arg3[%c0, %c0_0] : memref<1x128xf32, #tpu.memory_space<vmem>>, vector<1x128xf32>
    %c0_i32 = arith.constant 0 : i32
    %c14_i32 = arith.constant 14 : i32
    %1 = arith.addi %c0_i32, %c14_i32 : i32
    %c1_i32 = arith.constant 1 : i32
    scf.for %arg6 = %c0_i32 to %1 step %c1_i32  : i32 {
      %c2_i32 = arith.constant 2 : i32
      %2 = arith.muli %c2_i32, %arg6 : i32
      %cst = arith.constant 0.000000e+00 : f32
      %3 = vector.broadcast %cst : f32 to vector<28x128xf32>
      %c0_i32_2 = arith.constant 0 : i32
      %4 = arith.addi %2, %c0_i32_2 : i32
      %c0_3 = arith.constant 0 : index
      %5 = arith.index_cast %4 : i32 to index
      %c0_4 = arith.constant 0 : index
      %c0_5 = arith.constant 0 : index
      %6 = vector.load %arg1[%c0_3, %5, %c0_4, %c0_5] : memref<1x30x30x3xbf16, #tpu.memory_space<vmem>>, vector<1x1x28x3xbf16>
      %7 = vector.shape_cast %6 : vector<1x1x28x3xbf16> to vector<28x3xbf16>
      %c0_6 = arith.constant 0 : index
      %c0_7 = arith.constant 0 : index
      %c0_8 = arith.constant 0 : index
      %8 = vector.load %arg2[%c0_6, %c0_7, %c0_8] : memref<9x3x128xbf16, #tpu.memory_space<vmem>>, vector<1x3x128xbf16>
      %9 = vector.shape_cast %8 : vector<1x3x128xbf16> to vector<3x128xbf16>
      %cst_9 = arith.constant dense<0.000000e+00> : vector<28x128xf32>
      %10 = tpu.matmul %7, %9, %cst_9 {dimension_numbers = #tpu.dot_dimension_numbers<[1], [0], [0], [1], [0, 0, 1, 1], [], []>} : vector<28x3xbf16>, vector<3x128xbf16>, vector<28x128xf32> -> vector<28x128xf32>
      %11 = arith.addf %3, %10 : vector<28x128xf32>
      %c0_i32_10 = arith.constant 0 : i32
      %12 = arith.addi %2, %c0_i32_10 : i32
      %c0_11 = arith.constant 0 : index
      %13 = arith.index_cast %12 : i32 to index
      %c1 = arith.constant 1 : index
      %c0_12 = arith.constant 0 : index
      %14 = vector.load %arg1[%c0_11, %13, %c1, %c0_12] : memref<1x30x30x3xbf16, #tpu.memory_space<vmem>>, vector<1x1x28x3xbf16>
      %15 = vector.shape_cast %14 : vector<1x1x28x3xbf16> to vector<28x3xbf16>
      %c1_13 = arith.constant 1 : index
      %c0_14 = arith.constant 0 : index
      %c0_15 = arith.constant 0 : index
      %16 = vector.load %arg2[%c1_13, %c0_14, %c0_15] : memref<9x3x128xbf16, #tpu.memory_space<vmem>>, vector<1x3x128xbf16>
      %17 = vector.shape_cast %16 : vector<1x3x128xbf16> to vector<3x128xbf16>
      %cst_16 = arith.constant dense<0.000000e+00> : vector<28x128xf32>
      %18 = tpu.matmul %15, %17, %cst_16 {dimension_numbers = #tpu.dot_dimension_numbers<[1], [0], [0], [1], [0, 0, 1, 1], [], []>} : vector<28x3xbf16>, vector<3x128xbf16>, vector<28x128xf32> -> vector<28x128xf32>
      %19 = arith.addf %11, %18 : vector<28x128xf32>
      %c0_i32_17 = arith.constant 0 : i32
      %20 = arith.addi %2, %c0_i32_17 : i32
      %c0_18 = arith.constant 0 : index
      %21 = arith.index_cast %20 : i32 to index
      %c2 = arith.constant 2 : index
      %c0_19 = arith.constant 0 : index
      %22 = vector.load %arg1[%c0_18, %21, %c2, %c0_19] : memref<1x30x30x3xbf16, #tpu.memory_space<vmem>>, vector<1x1x28x3xbf16>
      %23 = vector.shape_cast %22 : vector<1x1x28x3xbf16> to vector<28x3xbf16>
      %c2_20 = arith.constant 2 : index
      %c0_21 = arith.constant 0 : index
      %c0_22 = arith.constant 0 : index
      %24 = vector.load %arg2[%c2_20, %c0_21, %c0_22] : memref<9x3x128xbf16, #tpu.memory_space<vmem>>, vector<1x3x128xbf16>
      %25 = vector.shape_cast %24 : vector<1x3x128xbf16> to vector<3x128xbf16>
      %cst_23 = arith.constant dense<0.000000e+00> : vector<28x128xf32>
      %26 = tpu.matmul %23, %25, %cst_23 {dimension_numbers = #tpu.dot_dimension_numbers<[1], [0], [0], [1], [0, 0, 1, 1], [], []>} : vector<28x3xbf16>, vector<3x128xbf16>, vector<28x128xf32> -> vector<28x128xf32>
      %27 = arith.addf %19, %26 : vector<28x128xf32>
      %c1_i32_24 = arith.constant 1 : i32
      %28 = arith.addi %2, %c1_i32_24 : i32
      %c0_25 = arith.constant 0 : index
      %29 = arith.index_cast %28 : i32 to index
      %c0_26 = arith.constant 0 : index
      %c0_27 = arith.constant 0 : index
      %30 = vector.load %arg1[%c0_25, %29, %c0_26, %c0_27] : memref<1x30x30x3xbf16, #tpu.memory_space<vmem>>, vector<1x1x28x3xbf16>
      %31 = vector.shape_cast %30 : vector<1x1x28x3xbf16> to vector<28x3xbf16>
      %c3 = arith.constant 3 : index
      %c0_28 = arith.constant 0 : index
      %c0_29 = arith.constant 0 : index
      %32 = vector.load %arg2[%c3, %c0_28, %c0_29] : memref<9x3x128xbf16, #tpu.memory_space<vmem>>, vector<1x3x128xbf16>
      %33 = vector.shape_cast %32 : vector<1x3x128xbf16> to vector<3x128xbf16>
      %cst_30 = arith.constant dense<0.000000e+00> : vector<28x128xf32>
      %34 = tpu.matmul %31, %33, %cst_30 {dimension_numbers = #tpu.dot_dimension_numbers<[1], [0], [0], [1], [0, 0, 1, 1], [], []>} : vector<28x3xbf16>, vector<3x128xbf16>, vector<28x128xf32> -> vector<28x128xf32>
      %35 = arith.addf %27, %34 : vector<28x128xf32>
      %c1_i32_31 = arith.constant 1 : i32
      %36 = arith.addi %2, %c1_i32_31 : i32
      %c0_32 = arith.constant 0 : index
      %37 = arith.index_cast %36 : i32 to index
      %c1_33 = arith.constant 1 : index
      %c0_34 = arith.constant 0 : index
      %38 = vector.load %arg1[%c0_32, %37, %c1_33, %c0_34] : memref<1x30x30x3xbf16, #tpu.memory_space<vmem>>, vector<1x1x28x3xbf16>
      %39 = vector.shape_cast %38 : vector<1x1x28x3xbf16> to vector<28x3xbf16>
      %c4 = arith.constant 4 : index
      %c0_35 = arith.constant 0 : index
      %c0_36 = arith.constant 0 : index
      %40 = vector.load %arg2[%c4, %c0_35, %c0_36] : memref<9x3x128xbf16, #tpu.memory_space<vmem>>, vector<1x3x128xbf16>
      %41 = vector.shape_cast %40 : vector<1x3x128xbf16> to vector<3x128xbf16>
      %cst_37 = arith.constant dense<0.000000e+00> : vector<28x128xf32>
      %42 = tpu.matmul %39, %41, %cst_37 {dimension_numbers = #tpu.dot_dimension_numbers<[1], [0], [0], [1], [0, 0, 1, 1], [], []>} : vector<28x3xbf16>, vector<3x128xbf16>, vector<28x128xf32> -> vector<28x128xf32>
      %43 = arith.addf %35, %42 : vector<28x128xf32>
      %c1_i32_38 = arith.constant 1 : i32
      %44 = arith.addi %2, %c1_i32_38 : i32
      %c0_39 = arith.constant 0 : index
      %45 = arith.index_cast %44 : i32 to index
      %c2_40 = arith.constant 2 : index
      %c0_41 = arith.constant 0 : index
      %46 = vector.load %arg1[%c0_39, %45, %c2_40, %c0_41] : memref<1x30x30x3xbf16, #tpu.memory_space<vmem>>, vector<1x1x28x3xbf16>
      %47 = vector.shape_cast %46 : vector<1x1x28x3xbf16> to vector<28x3xbf16>
      %c5 = arith.constant 5 : index
      %c0_42 = arith.constant 0 : index
      %c0_43 = arith.constant 0 : index
      %48 = vector.load %arg2[%c5, %c0_42, %c0_43] : memref<9x3x128xbf16, #tpu.memory_space<vmem>>, vector<1x3x128xbf16>
      %49 = vector.shape_cast %48 : vector<1x3x128xbf16> to vector<3x128xbf16>
      %cst_44 = arith.constant dense<0.000000e+00> : vector<28x128xf32>
      %50 = tpu.matmul %47, %49, %cst_44 {dimension_numbers = #tpu.dot_dimension_numbers<[1], [0], [0], [1], [0, 0, 1, 1], [], []>} : vector<28x3xbf16>, vector<3x128xbf16>, vector<28x128xf32> -> vector<28x128xf32>
      %51 = arith.addf %43, %50 : vector<28x128xf32>
      %c2_i32_45 = arith.constant 2 : i32
      %52 = arith.addi %2, %c2_i32_45 : i32
      %c0_46 = arith.constant 0 : index
      %53 = arith.index_cast %52 : i32 to index
      %c0_47 = arith.constant 0 : index
      %c0_48 = arith.constant 0 : index
      %54 = vector.load %arg1[%c0_46, %53, %c0_47, %c0_48] : memref<1x30x30x3xbf16, #tpu.memory_space<vmem>>, vector<1x1x28x3xbf16>
      %55 = vector.shape_cast %54 : vector<1x1x28x3xbf16> to vector<28x3xbf16>
      %c6 = arith.constant 6 : index
      %c0_49 = arith.constant 0 : index
      %c0_50 = arith.constant 0 : index
      %56 = vector.load %arg2[%c6, %c0_49, %c0_50] : memref<9x3x128xbf16, #tpu.memory_space<vmem>>, vector<1x3x128xbf16>
      %57 = vector.shape_cast %56 : vector<1x3x128xbf16> to vector<3x128xbf16>
      %cst_51 = arith.constant dense<0.000000e+00> : vector<28x128xf32>
      %58 = tpu.matmul %55, %57, %cst_51 {dimension_numbers = #tpu.dot_dimension_numbers<[1], [0], [0], [1], [0, 0, 1, 1], [], []>} : vector<28x3xbf16>, vector<3x128xbf16>, vector<28x128xf32> -> vector<28x128xf32>
      %59 = arith.addf %51, %58 : vector<28x128xf32>
      %c2_i32_52 = arith.constant 2 : i32
      %60 = arith.addi %2, %c2_i32_52 : i32
      %c0_53 = arith.constant 0 : index
      %61 = arith.index_cast %60 : i32 to index
      %c1_54 = arith.constant 1 : index
      %c0_55 = arith.constant 0 : index
      %62 = vector.load %arg1[%c0_53, %61, %c1_54, %c0_55] : memref<1x30x30x3xbf16, #tpu.memory_space<vmem>>, vector<1x1x28x3xbf16>
      %63 = vector.shape_cast %62 : vector<1x1x28x3xbf16> to vector<28x3xbf16>
      %c7 = arith.constant 7 : index
      %c0_56 = arith.constant 0 : index
      %c0_57 = arith.constant 0 : index
      %64 = vector.load %arg2[%c7, %c0_56, %c0_57] : memref<9x3x128xbf16, #tpu.memory_space<vmem>>, vector<1x3x128xbf16>
      %65 = vector.shape_cast %64 : vector<1x3x128xbf16> to vector<3x128xbf16>
      %cst_58 = arith.constant dense<0.000000e+00> : vector<28x128xf32>
      %66 = tpu.matmul %63, %65, %cst_58 {dimension_numbers = #tpu.dot_dimension_numbers<[1], [0], [0], [1], [0, 0, 1, 1], [], []>} : vector<28x3xbf16>, vector<3x128xbf16>, vector<28x128xf32> -> vector<28x128xf32>
      %67 = arith.addf %59, %66 : vector<28x128xf32>
      %c2_i32_59 = arith.constant 2 : i32
      %68 = arith.addi %2, %c2_i32_59 : i32
      %c0_60 = arith.constant 0 : index
      %69 = arith.index_cast %68 : i32 to index
      %c2_61 = arith.constant 2 : index
      %c0_62 = arith.constant 0 : index
      %70 = vector.load %arg1[%c0_60, %69, %c2_61, %c0_62] : memref<1x30x30x3xbf16, #tpu.memory_space<vmem>>, vector<1x1x28x3xbf16>
      %71 = vector.shape_cast %70 : vector<1x1x28x3xbf16> to vector<28x3xbf16>
      %c8 = arith.constant 8 : index
      %c0_63 = arith.constant 0 : index
      %c0_64 = arith.constant 0 : index
      %72 = vector.load %arg2[%c8, %c0_63, %c0_64] : memref<9x3x128xbf16, #tpu.memory_space<vmem>>, vector<1x3x128xbf16>
      %73 = vector.shape_cast %72 : vector<1x3x128xbf16> to vector<3x128xbf16>
      %cst_65 = arith.constant dense<0.000000e+00> : vector<28x128xf32>
      %74 = tpu.matmul %71, %73, %cst_65 {dimension_numbers = #tpu.dot_dimension_numbers<[1], [0], [0], [1], [0, 0, 1, 1], [], []>} : vector<28x3xbf16>, vector<3x128xbf16>, vector<28x128xf32> -> vector<28x128xf32>
      %75 = arith.addf %67, %74 : vector<28x128xf32>
      %76 = vector.broadcast %0 : vector<1x128xf32> to vector<28x128xf32>
      %77 = arith.addf %75, %76 : vector<28x128xf32>
      %cst_66 = arith.constant 0.000000e+00 : f32
      %78 = vector.broadcast %cst_66 : f32 to vector<28x128xf32>
      %79 = arith.maximumf %77, %78 : vector<28x128xf32>
      %c2_i32_67 = arith.constant 2 : i32
      %80 = arith.muli %c2_i32_67, %arg6 : i32
      %c1_i32_68 = arith.constant 1 : i32
      %81 = arith.addi %80, %c1_i32_68 : i32
      %cst_69 = arith.constant 0.000000e+00 : f32
      %82 = vector.broadcast %cst_69 : f32 to vector<28x128xf32>
      %c0_i32_70 = arith.constant 0 : i32
      %83 = arith.addi %81, %c0_i32_70 : i32
      %c0_71 = arith.constant 0 : index
      %84 = arith.index_cast %83 : i32 to index
      %c0_72 = arith.constant 0 : index
      %c0_73 = arith.constant 0 : index
      %85 = vector.load %arg1[%c0_71, %84, %c0_72, %c0_73] : memref<1x30x30x3xbf16, #tpu.memory_space<vmem>>, vector<1x1x28x3xbf16>
      %86 = vector.shape_cast %85 : vector<1x1x28x3xbf16> to vector<28x3xbf16>
      %c0_74 = arith.constant 0 : index
      %c0_75 = arith.constant 0 : index
      %c0_76 = arith.constant 0 : index
      %87 = vector.load %arg2[%c0_74, %c0_75, %c0_76] : memref<9x3x128xbf16, #tpu.memory_space<vmem>>, vector<1x3x128xbf16>
      %88 = vector.shape_cast %87 : vector<1x3x128xbf16> to vector<3x128xbf16>
      %cst_77 = arith.constant dense<0.000000e+00> : vector<28x128xf32>
      %89 = tpu.matmul %86, %88, %cst_77 {dimension_numbers = #tpu.dot_dimension_numbers<[1], [0], [0], [1], [0, 0, 1, 1], [], []>} : vector<28x3xbf16>, vector<3x128xbf16>, vector<28x128xf32> -> vector<28x128xf32>
      %90 = arith.addf %82, %89 : vector<28x128xf32>
      %c0_i32_78 = arith.constant 0 : i32
      %91 = arith.addi %81, %c0_i32_78 : i32
      %c0_79 = arith.constant 0 : index
      %92 = arith.index_cast %91 : i32 to index
      %c1_80 = arith.constant 1 : index
      %c0_81 = arith.constant 0 : index
      %93 = vector.load %arg1[%c0_79, %92, %c1_80, %c0_81] : memref<1x30x30x3xbf16, #tpu.memory_space<vmem>>, vector<1x1x28x3xbf16>
      %94 = vector.shape_cast %93 : vector<1x1x28x3xbf16> to vector<28x3xbf16>
      %c1_82 = arith.constant 1 : index
      %c0_83 = arith.constant 0 : index
      %c0_84 = arith.constant 0 : index
      %95 = vector.load %arg2[%c1_82, %c0_83, %c0_84] : memref<9x3x128xbf16, #tpu.memory_space<vmem>>, vector<1x3x128xbf16>
      %96 = vector.shape_cast %95 : vector<1x3x128xbf16> to vector<3x128xbf16>
      %cst_85 = arith.constant dense<0.000000e+00> : vector<28x128xf32>
      %97 = tpu.matmul %94, %96, %cst_85 {dimension_numbers = #tpu.dot_dimension_numbers<[1], [0], [0], [1], [0, 0, 1, 1], [], []>} : vector<28x3xbf16>, vector<3x128xbf16>, vector<28x128xf32> -> vector<28x128xf32>
      %98 = arith.addf %90, %97 : vector<28x128xf32>
      %c0_i32_86 = arith.constant 0 : i32
      %99 = arith.addi %81, %c0_i32_86 : i32
      %c0_87 = arith.constant 0 : index
      %100 = arith.index_cast %99 : i32 to index
      %c2_88 = arith.constant 2 : index
      %c0_89 = arith.constant 0 : index
      %101 = vector.load %arg1[%c0_87, %100, %c2_88, %c0_89] : memref<1x30x30x3xbf16, #tpu.memory_space<vmem>>, vector<1x1x28x3xbf16>
      %102 = vector.shape_cast %101 : vector<1x1x28x3xbf16> to vector<28x3xbf16>
      %c2_90 = arith.constant 2 : index
      %c0_91 = arith.constant 0 : index
      %c0_92 = arith.constant 0 : index
      %103 = vector.load %arg2[%c2_90, %c0_91, %c0_92] : memref<9x3x128xbf16, #tpu.memory_space<vmem>>, vector<1x3x128xbf16>
      %104 = vector.shape_cast %103 : vector<1x3x128xbf16> to vector<3x128xbf16>
      %cst_93 = arith.constant dense<0.000000e+00> : vector<28x128xf32>
      %105 = tpu.matmul %102, %104, %cst_93 {dimension_numbers = #tpu.dot_dimension_numbers<[1], [0], [0], [1], [0, 0, 1, 1], [], []>} : vector<28x3xbf16>, vector<3x128xbf16>, vector<28x128xf32> -> vector<28x128xf32>
      %106 = arith.addf %98, %105 : vector<28x128xf32>
      %c1_i32_94 = arith.constant 1 : i32
      %107 = arith.addi %81, %c1_i32_94 : i32
      %c0_95 = arith.constant 0 : index
      %108 = arith.index_cast %107 : i32 to index
      %c0_96 = arith.constant 0 : index
      %c0_97 = arith.constant 0 : index
      %109 = vector.load %arg1[%c0_95, %108, %c0_96, %c0_97] : memref<1x30x30x3xbf16, #tpu.memory_space<vmem>>, vector<1x1x28x3xbf16>
      %110 = vector.shape_cast %109 : vector<1x1x28x3xbf16> to vector<28x3xbf16>
      %c3_98 = arith.constant 3 : index
      %c0_99 = arith.constant 0 : index
      %c0_100 = arith.constant 0 : index
      %111 = vector.load %arg2[%c3_98, %c0_99, %c0_100] : memref<9x3x128xbf16, #tpu.memory_space<vmem>>, vector<1x3x128xbf16>
      %112 = vector.shape_cast %111 : vector<1x3x128xbf16> to vector<3x128xbf16>
      %cst_101 = arith.constant dense<0.000000e+00> : vector<28x128xf32>
      %113 = tpu.matmul %110, %112, %cst_101 {dimension_numbers = #tpu.dot_dimension_numbers<[1], [0], [0], [1], [0, 0, 1, 1], [], []>} : vector<28x3xbf16>, vector<3x128xbf16>, vector<28x128xf32> -> vector<28x128xf32>
      %114 = arith.addf %106, %113 : vector<28x128xf32>
      %c1_i32_102 = arith.constant 1 : i32
      %115 = arith.addi %81, %c1_i32_102 : i32
      %c0_103 = arith.constant 0 : index
      %116 = arith.index_cast %115 : i32 to index
      %c1_104 = arith.constant 1 : index
      %c0_105 = arith.constant 0 : index
      %117 = vector.load %arg1[%c0_103, %116, %c1_104, %c0_105] : memref<1x30x30x3xbf16, #tpu.memory_space<vmem>>, vector<1x1x28x3xbf16>
      %118 = vector.shape_cast %117 : vector<1x1x28x3xbf16> to vector<28x3xbf16>
      %c4_106 = arith.constant 4 : index
      %c0_107 = arith.constant 0 : index
      %c0_108 = arith.constant 0 : index
      %119 = vector.load %arg2[%c4_106, %c0_107, %c0_108] : memref<9x3x128xbf16, #tpu.memory_space<vmem>>, vector<1x3x128xbf16>
      %120 = vector.shape_cast %119 : vector<1x3x128xbf16> to vector<3x128xbf16>
      %cst_109 = arith.constant dense<0.000000e+00> : vector<28x128xf32>
      %121 = tpu.matmul %118, %120, %cst_109 {dimension_numbers = #tpu.dot_dimension_numbers<[1], [0], [0], [1], [0, 0, 1, 1], [], []>} : vector<28x3xbf16>, vector<3x128xbf16>, vector<28x128xf32> -> vector<28x128xf32>
      %122 = arith.addf %114, %121 : vector<28x128xf32>
      %c1_i32_110 = arith.constant 1 : i32
      %123 = arith.addi %81, %c1_i32_110 : i32
      %c0_111 = arith.constant 0 : index
      %124 = arith.index_cast %123 : i32 to index
      %c2_112 = arith.constant 2 : index
      %c0_113 = arith.constant 0 : index
      %125 = vector.load %arg1[%c0_111, %124, %c2_112, %c0_113] : memref<1x30x30x3xbf16, #tpu.memory_space<vmem>>, vector<1x1x28x3xbf16>
      %126 = vector.shape_cast %125 : vector<1x1x28x3xbf16> to vector<28x3xbf16>
      %c5_114 = arith.constant 5 : index
      %c0_115 = arith.constant 0 : index
      %c0_116 = arith.constant 0 : index
      %127 = vector.load %arg2[%c5_114, %c0_115, %c0_116] : memref<9x3x128xbf16, #tpu.memory_space<vmem>>, vector<1x3x128xbf16>
      %128 = vector.shape_cast %127 : vector<1x3x128xbf16> to vector<3x128xbf16>
      %cst_117 = arith.constant dense<0.000000e+00> : vector<28x128xf32>
      %129 = tpu.matmul %126, %128, %cst_117 {dimension_numbers = #tpu.dot_dimension_numbers<[1], [0], [0], [1], [0, 0, 1, 1], [], []>} : vector<28x3xbf16>, vector<3x128xbf16>, vector<28x128xf32> -> vector<28x128xf32>
      %130 = arith.addf %122, %129 : vector<28x128xf32>
      %c2_i32_118 = arith.constant 2 : i32
      %131 = arith.addi %81, %c2_i32_118 : i32
      %c0_119 = arith.constant 0 : index
      %132 = arith.index_cast %131 : i32 to index
      %c0_120 = arith.constant 0 : index
      %c0_121 = arith.constant 0 : index
      %133 = vector.load %arg1[%c0_119, %132, %c0_120, %c0_121] : memref<1x30x30x3xbf16, #tpu.memory_space<vmem>>, vector<1x1x28x3xbf16>
      %134 = vector.shape_cast %133 : vector<1x1x28x3xbf16> to vector<28x3xbf16>
      %c6_122 = arith.constant 6 : index
      %c0_123 = arith.constant 0 : index
      %c0_124 = arith.constant 0 : index
      %135 = vector.load %arg2[%c6_122, %c0_123, %c0_124] : memref<9x3x128xbf16, #tpu.memory_space<vmem>>, vector<1x3x128xbf16>
      %136 = vector.shape_cast %135 : vector<1x3x128xbf16> to vector<3x128xbf16>
      %cst_125 = arith.constant dense<0.000000e+00> : vector<28x128xf32>
      %137 = tpu.matmul %134, %136, %cst_125 {dimension_numbers = #tpu.dot_dimension_numbers<[1], [0], [0], [1], [0, 0, 1, 1], [], []>} : vector<28x3xbf16>, vector<3x128xbf16>, vector<28x128xf32> -> vector<28x128xf32>
      %138 = arith.addf %130, %137 : vector<28x128xf32>
      %c2_i32_126 = arith.constant 2 : i32
      %139 = arith.addi %81, %c2_i32_126 : i32
      %c0_127 = arith.constant 0 : index
      %140 = arith.index_cast %139 : i32 to index
      %c1_128 = arith.constant 1 : index
      %c0_129 = arith.constant 0 : index
      %141 = vector.load %arg1[%c0_127, %140, %c1_128, %c0_129] : memref<1x30x30x3xbf16, #tpu.memory_space<vmem>>, vector<1x1x28x3xbf16>
      %142 = vector.shape_cast %141 : vector<1x1x28x3xbf16> to vector<28x3xbf16>
      %c7_130 = arith.constant 7 : index
      %c0_131 = arith.constant 0 : index
      %c0_132 = arith.constant 0 : index
      %143 = vector.load %arg2[%c7_130, %c0_131, %c0_132] : memref<9x3x128xbf16, #tpu.memory_space<vmem>>, vector<1x3x128xbf16>
      %144 = vector.shape_cast %143 : vector<1x3x128xbf16> to vector<3x128xbf16>
      %cst_133 = arith.constant dense<0.000000e+00> : vector<28x128xf32>
      %145 = tpu.matmul %142, %144, %cst_133 {dimension_numbers = #tpu.dot_dimension_numbers<[1], [0], [0], [1], [0, 0, 1, 1], [], []>} : vector<28x3xbf16>, vector<3x128xbf16>, vector<28x128xf32> -> vector<28x128xf32>
      %146 = arith.addf %138, %145 : vector<28x128xf32>
      %c2_i32_134 = arith.constant 2 : i32
      %147 = arith.addi %81, %c2_i32_134 : i32
      %c0_135 = arith.constant 0 : index
      %148 = arith.index_cast %147 : i32 to index
      %c2_136 = arith.constant 2 : index
      %c0_137 = arith.constant 0 : index
      %149 = vector.load %arg1[%c0_135, %148, %c2_136, %c0_137] : memref<1x30x30x3xbf16, #tpu.memory_space<vmem>>, vector<1x1x28x3xbf16>
      %150 = vector.shape_cast %149 : vector<1x1x28x3xbf16> to vector<28x3xbf16>
      %c8_138 = arith.constant 8 : index
      %c0_139 = arith.constant 0 : index
      %c0_140 = arith.constant 0 : index
      %151 = vector.load %arg2[%c8_138, %c0_139, %c0_140] : memref<9x3x128xbf16, #tpu.memory_space<vmem>>, vector<1x3x128xbf16>
      %152 = vector.shape_cast %151 : vector<1x3x128xbf16> to vector<3x128xbf16>
      %cst_141 = arith.constant dense<0.000000e+00> : vector<28x128xf32>
      %153 = tpu.matmul %150, %152, %cst_141 {dimension_numbers = #tpu.dot_dimension_numbers<[1], [0], [0], [1], [0, 0, 1, 1], [], []>} : vector<28x3xbf16>, vector<3x128xbf16>, vector<28x128xf32> -> vector<28x128xf32>
      %154 = arith.addf %146, %153 : vector<28x128xf32>
      %155 = vector.broadcast %0 : vector<1x128xf32> to vector<28x128xf32>
      %156 = arith.addf %154, %155 : vector<28x128xf32>
      %cst_142 = arith.constant 0.000000e+00 : f32
      %157 = vector.broadcast %cst_142 : f32 to vector<28x128xf32>
      %158 = arith.maximumf %156, %157 : vector<28x128xf32>
      %159 = arith.maximumf %79, %158 : vector<28x128xf32>
      %c0_143 = arith.constant 0 : index
      %c0_144 = arith.constant 0 : index
      %160 = vector.load %arg5[%c0_143, %c0_144] : memref<28x128xf32, #tpu.memory_space<vmem>>, vector<28x128xf32>
      tpu.vector_store %arg5[%c0_143, %c0_144], %159 {strides = array<i32>} : memref<28x128xf32, #tpu.memory_space<vmem>>, vector<28x128xf32>,
      %c0_145 = arith.constant 0 : index
      %c0_146 = arith.constant 0 : index
      %161 = tpu.strided_load %arg5[%c0_145, %c0_146] {strides = array<i32: 2, 1>} : memref<28x128xf32, #tpu.memory_space<vmem>>, vector<14x128xf32>
      %c1_147 = arith.constant 1 : index
      %c0_148 = arith.constant 0 : index
      %162 = tpu.strided_load %arg5[%c1_147, %c0_148] {strides = array<i32: 2, 1>} : memref<28x128xf32, #tpu.memory_space<vmem>>, vector<14x128xf32>
      %163 = arith.maximumf %161, %162 : vector<14x128xf32>
      %164 = arith.truncf %163 : vector<14x128xf32> to vector<14x128xbf16>
      %c0_149 = arith.constant 0 : index
      %165 = arith.index_cast %arg6 : i32 to index
      %c0_150 = arith.constant 0 : index
      %c0_151 = arith.constant 0 : index
      %166 = vector.load %arg4[%c0_149, %165, %c0_150, %c0_151] : memref<1x14x14x128xbf16, #tpu.memory_space<vmem>>, vector<1x1x14x128xbf16>
      %167 = vector.shape_cast %166 : vector<1x1x14x128xbf16> to vector<14x128xbf16>
      %168 = vector.shape_cast %164 : vector<14x128xbf16> to vector<1x1x14x128xbf16>
      tpu.vector_store %arg4[%c0_149, %165, %c0_150, %c0_151], %168 {strides = array<i32>} : memref<1x14x14x128xbf16, #tpu.memory_space<vmem>>, vector<1x1x14x128xbf16>,
    }
    %c14_i32_1 = arith.constant 14 : i32
    return
  }
  func.func @transform_0(%arg0: i32) -> (i32, i32, i32, i32) {
    %c0_i32 = arith.constant 0 : i32
    %c0_i32_0 = arith.constant 0 : i32
    %c0_i32_1 = arith.constant 0 : i32
    %c0_i32_2 = arith.constant 0 : i32
    return %arg0, %c0_i32, %c0_i32_0, %c0_i32_1 : i32, i32, i32, i32
  }
  func.func @transform_1(%arg0: i32) -> (i32, i32, i32) {
    %c0_i32 = arith.constant 0 : i32
    %c0_i32_0 = arith.constant 0 : i32
    %c0_i32_1 = arith.constant 0 : i32
    %c0_i32_2 = arith.constant 0 : i32
    return %c0_i32, %c0_i32_0, %c0_i32_1 : i32, i32, i32
  }
  func.func @transform_2(%arg0: i32) -> (i32, i32) {
    %c0_i32 = arith.constant 0 : i32
    %c0_i32_0 = arith.constant 0 : i32
    %c0_i32_1 = arith.constant 0 : i32
    return %c0_i32, %c0_i32_0 : i32, i32
  }
  func.func @transform_3(%arg0: i32) -> (i32, i32, i32, i32) {
    %c0_i32 = arith.constant 0 : i32
    %c0_i32_0 = arith.constant 0 : i32
    %c0_i32_1 = arith.constant 0 : i32
    %c0_i32_2 = arith.constant 0 : i32
    return %arg0, %c0_i32, %c0_i32_0, %c0_i32_1 : i32, i32, i32, i32
  }
}

module attributes {stable_mosaic.version = 11 : i64} {
  func.func @_conv_relu_pool_kernel(%arg0: i32, %arg1: memref<1x16x16x128xbf16, #tpu.memory_space<vmem>>, %arg2: memref<9x128x128xbf16, #tpu.memory_space<vmem>>, %arg3: memref<1x128xf32, #tpu.memory_space<vmem>>, %arg4: memref<1x7x7x128xbf16, #tpu.memory_space<vmem>>, %arg5: memref<14x128xf32, #tpu.memory_space<vmem>>) attributes {dimension_semantics = [#tpu.dimension_semantics<parallel>], iteration_bounds = array<i64: 2>, scalar_prefetch = 0 : i64, scratch_operands = 1 : i64, tpu.core_type = #tpu.core_type<tc>, window_params = [{transform_indices = @transform_0, window_bounds = array<i64: 1, 16, 16, 128>}, {pipeline_mode = #tpu.pipeline_mode<synchronous>, transform_indices = @transform_1, window_bounds = array<i64: 9, 128, 128>}, {pipeline_mode = #tpu.pipeline_mode<synchronous>, transform_indices = @transform_2, window_bounds = array<i64: 1, 128>}, {transform_indices = @transform_3, window_bounds = array<i64: 1, 7, 7, 128>}]} {
    %c0 = arith.constant 0 : index
    %c0_0 = arith.constant 0 : index
    %0 = vector.load %arg3[%c0, %c0_0] : memref<1x128xf32, #tpu.memory_space<vmem>>, vector<1x128xf32>
    %c0_i32 = arith.constant 0 : i32
    %c7_i32 = arith.constant 7 : i32
    %1 = arith.addi %c0_i32, %c7_i32 : i32
    %c1_i32 = arith.constant 1 : i32
    scf.for %arg6 = %c0_i32 to %1 step %c1_i32  : i32 {
      %c2_i32 = arith.constant 2 : i32
      %2 = arith.muli %c2_i32, %arg6 : i32
      %cst = arith.constant 0.000000e+00 : f32
      %3 = vector.broadcast %cst : f32 to vector<14x128xf32>
      %c0_i32_2 = arith.constant 0 : i32
      %4 = arith.addi %2, %c0_i32_2 : i32
      %c0_3 = arith.constant 0 : index
      %5 = arith.index_cast %4 : i32 to index
      %c0_4 = arith.constant 0 : index
      %c0_5 = arith.constant 0 : index
      %6 = vector.load %arg1[%c0_3, %5, %c0_4, %c0_5] : memref<1x16x16x128xbf16, #tpu.memory_space<vmem>>, vector<1x1x14x128xbf16>
      %7 = vector.shape_cast %6 : vector<1x1x14x128xbf16> to vector<14x128xbf16>
      %c0_6 = arith.constant 0 : index
      %c0_7 = arith.constant 0 : index
      %c0_8 = arith.constant 0 : index
      %8 = vector.load %arg2[%c0_6, %c0_7, %c0_8] : memref<9x128x128xbf16, #tpu.memory_space<vmem>>, vector<1x128x128xbf16>
      %9 = vector.shape_cast %8 : vector<1x128x128xbf16> to vector<128x128xbf16>
      %cst_9 = arith.constant dense<0.000000e+00> : vector<14x128xf32>
      %10 = tpu.matmul %7, %9, %cst_9 {dimension_numbers = #tpu.dot_dimension_numbers<[1], [0], [0], [1], [0, 0, 1, 1], [], []>} : vector<14x128xbf16>, vector<128x128xbf16>, vector<14x128xf32> -> vector<14x128xf32>
      %11 = arith.addf %3, %10 : vector<14x128xf32>
      %c0_i32_10 = arith.constant 0 : i32
      %12 = arith.addi %2, %c0_i32_10 : i32
      %c0_11 = arith.constant 0 : index
      %13 = arith.index_cast %12 : i32 to index
      %c1 = arith.constant 1 : index
      %c0_12 = arith.constant 0 : index
      %14 = vector.load %arg1[%c0_11, %13, %c1, %c0_12] : memref<1x16x16x128xbf16, #tpu.memory_space<vmem>>, vector<1x1x14x128xbf16>
      %15 = vector.shape_cast %14 : vector<1x1x14x128xbf16> to vector<14x128xbf16>
      %c1_13 = arith.constant 1 : index
      %c0_14 = arith.constant 0 : index
      %c0_15 = arith.constant 0 : index
      %16 = vector.load %arg2[%c1_13, %c0_14, %c0_15] : memref<9x128x128xbf16, #tpu.memory_space<vmem>>, vector<1x128x128xbf16>
      %17 = vector.shape_cast %16 : vector<1x128x128xbf16> to vector<128x128xbf16>
      %cst_16 = arith.constant dense<0.000000e+00> : vector<14x128xf32>
      %18 = tpu.matmul %15, %17, %cst_16 {dimension_numbers = #tpu.dot_dimension_numbers<[1], [0], [0], [1], [0, 0, 1, 1], [], []>} : vector<14x128xbf16>, vector<128x128xbf16>, vector<14x128xf32> -> vector<14x128xf32>
      %19 = arith.addf %11, %18 : vector<14x128xf32>
      %c0_i32_17 = arith.constant 0 : i32
      %20 = arith.addi %2, %c0_i32_17 : i32
      %c0_18 = arith.constant 0 : index
      %21 = arith.index_cast %20 : i32 to index
      %c2 = arith.constant 2 : index
      %c0_19 = arith.constant 0 : index
      %22 = vector.load %arg1[%c0_18, %21, %c2, %c0_19] : memref<1x16x16x128xbf16, #tpu.memory_space<vmem>>, vector<1x1x14x128xbf16>
      %23 = vector.shape_cast %22 : vector<1x1x14x128xbf16> to vector<14x128xbf16>
      %c2_20 = arith.constant 2 : index
      %c0_21 = arith.constant 0 : index
      %c0_22 = arith.constant 0 : index
      %24 = vector.load %arg2[%c2_20, %c0_21, %c0_22] : memref<9x128x128xbf16, #tpu.memory_space<vmem>>, vector<1x128x128xbf16>
      %25 = vector.shape_cast %24 : vector<1x128x128xbf16> to vector<128x128xbf16>
      %cst_23 = arith.constant dense<0.000000e+00> : vector<14x128xf32>
      %26 = tpu.matmul %23, %25, %cst_23 {dimension_numbers = #tpu.dot_dimension_numbers<[1], [0], [0], [1], [0, 0, 1, 1], [], []>} : vector<14x128xbf16>, vector<128x128xbf16>, vector<14x128xf32> -> vector<14x128xf32>
      %27 = arith.addf %19, %26 : vector<14x128xf32>
      %c1_i32_24 = arith.constant 1 : i32
      %28 = arith.addi %2, %c1_i32_24 : i32
      %c0_25 = arith.constant 0 : index
      %29 = arith.index_cast %28 : i32 to index
      %c0_26 = arith.constant 0 : index
      %c0_27 = arith.constant 0 : index
      %30 = vector.load %arg1[%c0_25, %29, %c0_26, %c0_27] : memref<1x16x16x128xbf16, #tpu.memory_space<vmem>>, vector<1x1x14x128xbf16>
      %31 = vector.shape_cast %30 : vector<1x1x14x128xbf16> to vector<14x128xbf16>
      %c3 = arith.constant 3 : index
      %c0_28 = arith.constant 0 : index
      %c0_29 = arith.constant 0 : index
      %32 = vector.load %arg2[%c3, %c0_28, %c0_29] : memref<9x128x128xbf16, #tpu.memory_space<vmem>>, vector<1x128x128xbf16>
      %33 = vector.shape_cast %32 : vector<1x128x128xbf16> to vector<128x128xbf16>
      %cst_30 = arith.constant dense<0.000000e+00> : vector<14x128xf32>
      %34 = tpu.matmul %31, %33, %cst_30 {dimension_numbers = #tpu.dot_dimension_numbers<[1], [0], [0], [1], [0, 0, 1, 1], [], []>} : vector<14x128xbf16>, vector<128x128xbf16>, vector<14x128xf32> -> vector<14x128xf32>
      %35 = arith.addf %27, %34 : vector<14x128xf32>
      %c1_i32_31 = arith.constant 1 : i32
      %36 = arith.addi %2, %c1_i32_31 : i32
      %c0_32 = arith.constant 0 : index
      %37 = arith.index_cast %36 : i32 to index
      %c1_33 = arith.constant 1 : index
      %c0_34 = arith.constant 0 : index
      %38 = vector.load %arg1[%c0_32, %37, %c1_33, %c0_34] : memref<1x16x16x128xbf16, #tpu.memory_space<vmem>>, vector<1x1x14x128xbf16>
      %39 = vector.shape_cast %38 : vector<1x1x14x128xbf16> to vector<14x128xbf16>
      %c4 = arith.constant 4 : index
      %c0_35 = arith.constant 0 : index
      %c0_36 = arith.constant 0 : index
      %40 = vector.load %arg2[%c4, %c0_35, %c0_36] : memref<9x128x128xbf16, #tpu.memory_space<vmem>>, vector<1x128x128xbf16>
      %41 = vector.shape_cast %40 : vector<1x128x128xbf16> to vector<128x128xbf16>
      %cst_37 = arith.constant dense<0.000000e+00> : vector<14x128xf32>
      %42 = tpu.matmul %39, %41, %cst_37 {dimension_numbers = #tpu.dot_dimension_numbers<[1], [0], [0], [1], [0, 0, 1, 1], [], []>} : vector<14x128xbf16>, vector<128x128xbf16>, vector<14x128xf32> -> vector<14x128xf32>
      %43 = arith.addf %35, %42 : vector<14x128xf32>
      %c1_i32_38 = arith.constant 1 : i32
      %44 = arith.addi %2, %c1_i32_38 : i32
      %c0_39 = arith.constant 0 : index
      %45 = arith.index_cast %44 : i32 to index
      %c2_40 = arith.constant 2 : index
      %c0_41 = arith.constant 0 : index
      %46 = vector.load %arg1[%c0_39, %45, %c2_40, %c0_41] : memref<1x16x16x128xbf16, #tpu.memory_space<vmem>>, vector<1x1x14x128xbf16>
      %47 = vector.shape_cast %46 : vector<1x1x14x128xbf16> to vector<14x128xbf16>
      %c5 = arith.constant 5 : index
      %c0_42 = arith.constant 0 : index
      %c0_43 = arith.constant 0 : index
      %48 = vector.load %arg2[%c5, %c0_42, %c0_43] : memref<9x128x128xbf16, #tpu.memory_space<vmem>>, vector<1x128x128xbf16>
      %49 = vector.shape_cast %48 : vector<1x128x128xbf16> to vector<128x128xbf16>
      %cst_44 = arith.constant dense<0.000000e+00> : vector<14x128xf32>
      %50 = tpu.matmul %47, %49, %cst_44 {dimension_numbers = #tpu.dot_dimension_numbers<[1], [0], [0], [1], [0, 0, 1, 1], [], []>} : vector<14x128xbf16>, vector<128x128xbf16>, vector<14x128xf32> -> vector<14x128xf32>
      %51 = arith.addf %43, %50 : vector<14x128xf32>
      %c2_i32_45 = arith.constant 2 : i32
      %52 = arith.addi %2, %c2_i32_45 : i32
      %c0_46 = arith.constant 0 : index
      %53 = arith.index_cast %52 : i32 to index
      %c0_47 = arith.constant 0 : index
      %c0_48 = arith.constant 0 : index
      %54 = vector.load %arg1[%c0_46, %53, %c0_47, %c0_48] : memref<1x16x16x128xbf16, #tpu.memory_space<vmem>>, vector<1x1x14x128xbf16>
      %55 = vector.shape_cast %54 : vector<1x1x14x128xbf16> to vector<14x128xbf16>
      %c6 = arith.constant 6 : index
      %c0_49 = arith.constant 0 : index
      %c0_50 = arith.constant 0 : index
      %56 = vector.load %arg2[%c6, %c0_49, %c0_50] : memref<9x128x128xbf16, #tpu.memory_space<vmem>>, vector<1x128x128xbf16>
      %57 = vector.shape_cast %56 : vector<1x128x128xbf16> to vector<128x128xbf16>
      %cst_51 = arith.constant dense<0.000000e+00> : vector<14x128xf32>
      %58 = tpu.matmul %55, %57, %cst_51 {dimension_numbers = #tpu.dot_dimension_numbers<[1], [0], [0], [1], [0, 0, 1, 1], [], []>} : vector<14x128xbf16>, vector<128x128xbf16>, vector<14x128xf32> -> vector<14x128xf32>
      %59 = arith.addf %51, %58 : vector<14x128xf32>
      %c2_i32_52 = arith.constant 2 : i32
      %60 = arith.addi %2, %c2_i32_52 : i32
      %c0_53 = arith.constant 0 : index
      %61 = arith.index_cast %60 : i32 to index
      %c1_54 = arith.constant 1 : index
      %c0_55 = arith.constant 0 : index
      %62 = vector.load %arg1[%c0_53, %61, %c1_54, %c0_55] : memref<1x16x16x128xbf16, #tpu.memory_space<vmem>>, vector<1x1x14x128xbf16>
      %63 = vector.shape_cast %62 : vector<1x1x14x128xbf16> to vector<14x128xbf16>
      %c7 = arith.constant 7 : index
      %c0_56 = arith.constant 0 : index
      %c0_57 = arith.constant 0 : index
      %64 = vector.load %arg2[%c7, %c0_56, %c0_57] : memref<9x128x128xbf16, #tpu.memory_space<vmem>>, vector<1x128x128xbf16>
      %65 = vector.shape_cast %64 : vector<1x128x128xbf16> to vector<128x128xbf16>
      %cst_58 = arith.constant dense<0.000000e+00> : vector<14x128xf32>
      %66 = tpu.matmul %63, %65, %cst_58 {dimension_numbers = #tpu.dot_dimension_numbers<[1], [0], [0], [1], [0, 0, 1, 1], [], []>} : vector<14x128xbf16>, vector<128x128xbf16>, vector<14x128xf32> -> vector<14x128xf32>
      %67 = arith.addf %59, %66 : vector<14x128xf32>
      %c2_i32_59 = arith.constant 2 : i32
      %68 = arith.addi %2, %c2_i32_59 : i32
      %c0_60 = arith.constant 0 : index
      %69 = arith.index_cast %68 : i32 to index
      %c2_61 = arith.constant 2 : index
      %c0_62 = arith.constant 0 : index
      %70 = vector.load %arg1[%c0_60, %69, %c2_61, %c0_62] : memref<1x16x16x128xbf16, #tpu.memory_space<vmem>>, vector<1x1x14x128xbf16>
      %71 = vector.shape_cast %70 : vector<1x1x14x128xbf16> to vector<14x128xbf16>
      %c8 = arith.constant 8 : index
      %c0_63 = arith.constant 0 : index
      %c0_64 = arith.constant 0 : index
      %72 = vector.load %arg2[%c8, %c0_63, %c0_64] : memref<9x128x128xbf16, #tpu.memory_space<vmem>>, vector<1x128x128xbf16>
      %73 = vector.shape_cast %72 : vector<1x128x128xbf16> to vector<128x128xbf16>
      %cst_65 = arith.constant dense<0.000000e+00> : vector<14x128xf32>
      %74 = tpu.matmul %71, %73, %cst_65 {dimension_numbers = #tpu.dot_dimension_numbers<[1], [0], [0], [1], [0, 0, 1, 1], [], []>} : vector<14x128xbf16>, vector<128x128xbf16>, vector<14x128xf32> -> vector<14x128xf32>
      %75 = arith.addf %67, %74 : vector<14x128xf32>
      %76 = vector.broadcast %0 : vector<1x128xf32> to vector<14x128xf32>
      %77 = arith.addf %75, %76 : vector<14x128xf32>
      %cst_66 = arith.constant 0.000000e+00 : f32
      %78 = vector.broadcast %cst_66 : f32 to vector<14x128xf32>
      %79 = arith.maximumf %77, %78 : vector<14x128xf32>
      %c2_i32_67 = arith.constant 2 : i32
      %80 = arith.muli %c2_i32_67, %arg6 : i32
      %c1_i32_68 = arith.constant 1 : i32
      %81 = arith.addi %80, %c1_i32_68 : i32
      %cst_69 = arith.constant 0.000000e+00 : f32
      %82 = vector.broadcast %cst_69 : f32 to vector<14x128xf32>
      %c0_i32_70 = arith.constant 0 : i32
      %83 = arith.addi %81, %c0_i32_70 : i32
      %c0_71 = arith.constant 0 : index
      %84 = arith.index_cast %83 : i32 to index
      %c0_72 = arith.constant 0 : index
      %c0_73 = arith.constant 0 : index
      %85 = vector.load %arg1[%c0_71, %84, %c0_72, %c0_73] : memref<1x16x16x128xbf16, #tpu.memory_space<vmem>>, vector<1x1x14x128xbf16>
      %86 = vector.shape_cast %85 : vector<1x1x14x128xbf16> to vector<14x128xbf16>
      %c0_74 = arith.constant 0 : index
      %c0_75 = arith.constant 0 : index
      %c0_76 = arith.constant 0 : index
      %87 = vector.load %arg2[%c0_74, %c0_75, %c0_76] : memref<9x128x128xbf16, #tpu.memory_space<vmem>>, vector<1x128x128xbf16>
      %88 = vector.shape_cast %87 : vector<1x128x128xbf16> to vector<128x128xbf16>
      %cst_77 = arith.constant dense<0.000000e+00> : vector<14x128xf32>
      %89 = tpu.matmul %86, %88, %cst_77 {dimension_numbers = #tpu.dot_dimension_numbers<[1], [0], [0], [1], [0, 0, 1, 1], [], []>} : vector<14x128xbf16>, vector<128x128xbf16>, vector<14x128xf32> -> vector<14x128xf32>
      %90 = arith.addf %82, %89 : vector<14x128xf32>
      %c0_i32_78 = arith.constant 0 : i32
      %91 = arith.addi %81, %c0_i32_78 : i32
      %c0_79 = arith.constant 0 : index
      %92 = arith.index_cast %91 : i32 to index
      %c1_80 = arith.constant 1 : index
      %c0_81 = arith.constant 0 : index
      %93 = vector.load %arg1[%c0_79, %92, %c1_80, %c0_81] : memref<1x16x16x128xbf16, #tpu.memory_space<vmem>>, vector<1x1x14x128xbf16>
      %94 = vector.shape_cast %93 : vector<1x1x14x128xbf16> to vector<14x128xbf16>
      %c1_82 = arith.constant 1 : index
      %c0_83 = arith.constant 0 : index
      %c0_84 = arith.constant 0 : index
      %95 = vector.load %arg2[%c1_82, %c0_83, %c0_84] : memref<9x128x128xbf16, #tpu.memory_space<vmem>>, vector<1x128x128xbf16>
      %96 = vector.shape_cast %95 : vector<1x128x128xbf16> to vector<128x128xbf16>
      %cst_85 = arith.constant dense<0.000000e+00> : vector<14x128xf32>
      %97 = tpu.matmul %94, %96, %cst_85 {dimension_numbers = #tpu.dot_dimension_numbers<[1], [0], [0], [1], [0, 0, 1, 1], [], []>} : vector<14x128xbf16>, vector<128x128xbf16>, vector<14x128xf32> -> vector<14x128xf32>
      %98 = arith.addf %90, %97 : vector<14x128xf32>
      %c0_i32_86 = arith.constant 0 : i32
      %99 = arith.addi %81, %c0_i32_86 : i32
      %c0_87 = arith.constant 0 : index
      %100 = arith.index_cast %99 : i32 to index
      %c2_88 = arith.constant 2 : index
      %c0_89 = arith.constant 0 : index
      %101 = vector.load %arg1[%c0_87, %100, %c2_88, %c0_89] : memref<1x16x16x128xbf16, #tpu.memory_space<vmem>>, vector<1x1x14x128xbf16>
      %102 = vector.shape_cast %101 : vector<1x1x14x128xbf16> to vector<14x128xbf16>
      %c2_90 = arith.constant 2 : index
      %c0_91 = arith.constant 0 : index
      %c0_92 = arith.constant 0 : index
      %103 = vector.load %arg2[%c2_90, %c0_91, %c0_92] : memref<9x128x128xbf16, #tpu.memory_space<vmem>>, vector<1x128x128xbf16>
      %104 = vector.shape_cast %103 : vector<1x128x128xbf16> to vector<128x128xbf16>
      %cst_93 = arith.constant dense<0.000000e+00> : vector<14x128xf32>
      %105 = tpu.matmul %102, %104, %cst_93 {dimension_numbers = #tpu.dot_dimension_numbers<[1], [0], [0], [1], [0, 0, 1, 1], [], []>} : vector<14x128xbf16>, vector<128x128xbf16>, vector<14x128xf32> -> vector<14x128xf32>
      %106 = arith.addf %98, %105 : vector<14x128xf32>
      %c1_i32_94 = arith.constant 1 : i32
      %107 = arith.addi %81, %c1_i32_94 : i32
      %c0_95 = arith.constant 0 : index
      %108 = arith.index_cast %107 : i32 to index
      %c0_96 = arith.constant 0 : index
      %c0_97 = arith.constant 0 : index
      %109 = vector.load %arg1[%c0_95, %108, %c0_96, %c0_97] : memref<1x16x16x128xbf16, #tpu.memory_space<vmem>>, vector<1x1x14x128xbf16>
      %110 = vector.shape_cast %109 : vector<1x1x14x128xbf16> to vector<14x128xbf16>
      %c3_98 = arith.constant 3 : index
      %c0_99 = arith.constant 0 : index
      %c0_100 = arith.constant 0 : index
      %111 = vector.load %arg2[%c3_98, %c0_99, %c0_100] : memref<9x128x128xbf16, #tpu.memory_space<vmem>>, vector<1x128x128xbf16>
      %112 = vector.shape_cast %111 : vector<1x128x128xbf16> to vector<128x128xbf16>
      %cst_101 = arith.constant dense<0.000000e+00> : vector<14x128xf32>
      %113 = tpu.matmul %110, %112, %cst_101 {dimension_numbers = #tpu.dot_dimension_numbers<[1], [0], [0], [1], [0, 0, 1, 1], [], []>} : vector<14x128xbf16>, vector<128x128xbf16>, vector<14x128xf32> -> vector<14x128xf32>
      %114 = arith.addf %106, %113 : vector<14x128xf32>
      %c1_i32_102 = arith.constant 1 : i32
      %115 = arith.addi %81, %c1_i32_102 : i32
      %c0_103 = arith.constant 0 : index
      %116 = arith.index_cast %115 : i32 to index
      %c1_104 = arith.constant 1 : index
      %c0_105 = arith.constant 0 : index
      %117 = vector.load %arg1[%c0_103, %116, %c1_104, %c0_105] : memref<1x16x16x128xbf16, #tpu.memory_space<vmem>>, vector<1x1x14x128xbf16>
      %118 = vector.shape_cast %117 : vector<1x1x14x128xbf16> to vector<14x128xbf16>
      %c4_106 = arith.constant 4 : index
      %c0_107 = arith.constant 0 : index
      %c0_108 = arith.constant 0 : index
      %119 = vector.load %arg2[%c4_106, %c0_107, %c0_108] : memref<9x128x128xbf16, #tpu.memory_space<vmem>>, vector<1x128x128xbf16>
      %120 = vector.shape_cast %119 : vector<1x128x128xbf16> to vector<128x128xbf16>
      %cst_109 = arith.constant dense<0.000000e+00> : vector<14x128xf32>
      %121 = tpu.matmul %118, %120, %cst_109 {dimension_numbers = #tpu.dot_dimension_numbers<[1], [0], [0], [1], [0, 0, 1, 1], [], []>} : vector<14x128xbf16>, vector<128x128xbf16>, vector<14x128xf32> -> vector<14x128xf32>
      %122 = arith.addf %114, %121 : vector<14x128xf32>
      %c1_i32_110 = arith.constant 1 : i32
      %123 = arith.addi %81, %c1_i32_110 : i32
      %c0_111 = arith.constant 0 : index
      %124 = arith.index_cast %123 : i32 to index
      %c2_112 = arith.constant 2 : index
      %c0_113 = arith.constant 0 : index
      %125 = vector.load %arg1[%c0_111, %124, %c2_112, %c0_113] : memref<1x16x16x128xbf16, #tpu.memory_space<vmem>>, vector<1x1x14x128xbf16>
      %126 = vector.shape_cast %125 : vector<1x1x14x128xbf16> to vector<14x128xbf16>
      %c5_114 = arith.constant 5 : index
      %c0_115 = arith.constant 0 : index
      %c0_116 = arith.constant 0 : index
      %127 = vector.load %arg2[%c5_114, %c0_115, %c0_116] : memref<9x128x128xbf16, #tpu.memory_space<vmem>>, vector<1x128x128xbf16>
      %128 = vector.shape_cast %127 : vector<1x128x128xbf16> to vector<128x128xbf16>
      %cst_117 = arith.constant dense<0.000000e+00> : vector<14x128xf32>
      %129 = tpu.matmul %126, %128, %cst_117 {dimension_numbers = #tpu.dot_dimension_numbers<[1], [0], [0], [1], [0, 0, 1, 1], [], []>} : vector<14x128xbf16>, vector<128x128xbf16>, vector<14x128xf32> -> vector<14x128xf32>
      %130 = arith.addf %122, %129 : vector<14x128xf32>
      %c2_i32_118 = arith.constant 2 : i32
      %131 = arith.addi %81, %c2_i32_118 : i32
      %c0_119 = arith.constant 0 : index
      %132 = arith.index_cast %131 : i32 to index
      %c0_120 = arith.constant 0 : index
      %c0_121 = arith.constant 0 : index
      %133 = vector.load %arg1[%c0_119, %132, %c0_120, %c0_121] : memref<1x16x16x128xbf16, #tpu.memory_space<vmem>>, vector<1x1x14x128xbf16>
      %134 = vector.shape_cast %133 : vector<1x1x14x128xbf16> to vector<14x128xbf16>
      %c6_122 = arith.constant 6 : index
      %c0_123 = arith.constant 0 : index
      %c0_124 = arith.constant 0 : index
      %135 = vector.load %arg2[%c6_122, %c0_123, %c0_124] : memref<9x128x128xbf16, #tpu.memory_space<vmem>>, vector<1x128x128xbf16>
      %136 = vector.shape_cast %135 : vector<1x128x128xbf16> to vector<128x128xbf16>
      %cst_125 = arith.constant dense<0.000000e+00> : vector<14x128xf32>
      %137 = tpu.matmul %134, %136, %cst_125 {dimension_numbers = #tpu.dot_dimension_numbers<[1], [0], [0], [1], [0, 0, 1, 1], [], []>} : vector<14x128xbf16>, vector<128x128xbf16>, vector<14x128xf32> -> vector<14x128xf32>
      %138 = arith.addf %130, %137 : vector<14x128xf32>
      %c2_i32_126 = arith.constant 2 : i32
      %139 = arith.addi %81, %c2_i32_126 : i32
      %c0_127 = arith.constant 0 : index
      %140 = arith.index_cast %139 : i32 to index
      %c1_128 = arith.constant 1 : index
      %c0_129 = arith.constant 0 : index
      %141 = vector.load %arg1[%c0_127, %140, %c1_128, %c0_129] : memref<1x16x16x128xbf16, #tpu.memory_space<vmem>>, vector<1x1x14x128xbf16>
      %142 = vector.shape_cast %141 : vector<1x1x14x128xbf16> to vector<14x128xbf16>
      %c7_130 = arith.constant 7 : index
      %c0_131 = arith.constant 0 : index
      %c0_132 = arith.constant 0 : index
      %143 = vector.load %arg2[%c7_130, %c0_131, %c0_132] : memref<9x128x128xbf16, #tpu.memory_space<vmem>>, vector<1x128x128xbf16>
      %144 = vector.shape_cast %143 : vector<1x128x128xbf16> to vector<128x128xbf16>
      %cst_133 = arith.constant dense<0.000000e+00> : vector<14x128xf32>
      %145 = tpu.matmul %142, %144, %cst_133 {dimension_numbers = #tpu.dot_dimension_numbers<[1], [0], [0], [1], [0, 0, 1, 1], [], []>} : vector<14x128xbf16>, vector<128x128xbf16>, vector<14x128xf32> -> vector<14x128xf32>
      %146 = arith.addf %138, %145 : vector<14x128xf32>
      %c2_i32_134 = arith.constant 2 : i32
      %147 = arith.addi %81, %c2_i32_134 : i32
      %c0_135 = arith.constant 0 : index
      %148 = arith.index_cast %147 : i32 to index
      %c2_136 = arith.constant 2 : index
      %c0_137 = arith.constant 0 : index
      %149 = vector.load %arg1[%c0_135, %148, %c2_136, %c0_137] : memref<1x16x16x128xbf16, #tpu.memory_space<vmem>>, vector<1x1x14x128xbf16>
      %150 = vector.shape_cast %149 : vector<1x1x14x128xbf16> to vector<14x128xbf16>
      %c8_138 = arith.constant 8 : index
      %c0_139 = arith.constant 0 : index
      %c0_140 = arith.constant 0 : index
      %151 = vector.load %arg2[%c8_138, %c0_139, %c0_140] : memref<9x128x128xbf16, #tpu.memory_space<vmem>>, vector<1x128x128xbf16>
      %152 = vector.shape_cast %151 : vector<1x128x128xbf16> to vector<128x128xbf16>
      %cst_141 = arith.constant dense<0.000000e+00> : vector<14x128xf32>
      %153 = tpu.matmul %150, %152, %cst_141 {dimension_numbers = #tpu.dot_dimension_numbers<[1], [0], [0], [1], [0, 0, 1, 1], [], []>} : vector<14x128xbf16>, vector<128x128xbf16>, vector<14x128xf32> -> vector<14x128xf32>
      %154 = arith.addf %146, %153 : vector<14x128xf32>
      %155 = vector.broadcast %0 : vector<1x128xf32> to vector<14x128xf32>
      %156 = arith.addf %154, %155 : vector<14x128xf32>
      %cst_142 = arith.constant 0.000000e+00 : f32
      %157 = vector.broadcast %cst_142 : f32 to vector<14x128xf32>
      %158 = arith.maximumf %156, %157 : vector<14x128xf32>
      %159 = arith.maximumf %79, %158 : vector<14x128xf32>
      %c0_143 = arith.constant 0 : index
      %c0_144 = arith.constant 0 : index
      %160 = vector.load %arg5[%c0_143, %c0_144] : memref<14x128xf32, #tpu.memory_space<vmem>>, vector<14x128xf32>
      tpu.vector_store %arg5[%c0_143, %c0_144], %159 {strides = array<i32>} : memref<14x128xf32, #tpu.memory_space<vmem>>, vector<14x128xf32>,
      %c0_145 = arith.constant 0 : index
      %c0_146 = arith.constant 0 : index
      %161 = tpu.strided_load %arg5[%c0_145, %c0_146] {strides = array<i32: 2, 1>} : memref<14x128xf32, #tpu.memory_space<vmem>>, vector<7x128xf32>
      %c1_147 = arith.constant 1 : index
      %c0_148 = arith.constant 0 : index
      %162 = tpu.strided_load %arg5[%c1_147, %c0_148] {strides = array<i32: 2, 1>} : memref<14x128xf32, #tpu.memory_space<vmem>>, vector<7x128xf32>
      %163 = arith.maximumf %161, %162 : vector<7x128xf32>
      %164 = arith.truncf %163 : vector<7x128xf32> to vector<7x128xbf16>
      %c0_149 = arith.constant 0 : index
      %165 = arith.index_cast %arg6 : i32 to index
      %c0_150 = arith.constant 0 : index
      %c0_151 = arith.constant 0 : index
      %166 = vector.load %arg4[%c0_149, %165, %c0_150, %c0_151] : memref<1x7x7x128xbf16, #tpu.memory_space<vmem>>, vector<1x1x7x128xbf16>
      %167 = vector.shape_cast %166 : vector<1x1x7x128xbf16> to vector<7x128xbf16>
      %168 = vector.shape_cast %164 : vector<7x128xbf16> to vector<1x1x7x128xbf16>
      tpu.vector_store %arg4[%c0_149, %165, %c0_150, %c0_151], %168 {strides = array<i32>} : memref<1x7x7x128xbf16, #tpu.memory_space<vmem>>, vector<1x1x7x128xbf16>,
    }
    %c7_i32_1 = arith.constant 7 : i32
    return
  }
  func.func @transform_0(%arg0: i32) -> (i32, i32, i32, i32) {
    %c0_i32 = arith.constant 0 : i32
    %c0_i32_0 = arith.constant 0 : i32
    %c0_i32_1 = arith.constant 0 : i32
    %c0_i32_2 = arith.constant 0 : i32
    return %arg0, %c0_i32, %c0_i32_0, %c0_i32_1 : i32, i32, i32, i32
  }
  func.func @transform_1(%arg0: i32) -> (i32, i32, i32) {
    %c0_i32 = arith.constant 0 : i32
    %c0_i32_0 = arith.constant 0 : i32
    %c0_i32_1 = arith.constant 0 : i32
    %c0_i32_2 = arith.constant 0 : i32
    return %c0_i32, %c0_i32_0, %c0_i32_1 : i32, i32, i32
  }
  func.func @transform_2(%arg0: i32) -> (i32, i32) {
    %c0_i32 = arith.constant 0 : i32
    %c0_i32_0 = arith.constant 0 : i32
    %c0_i32_1 = arith.constant 0 : i32
    return %c0_i32, %c0_i32_0 : i32, i32
  }
  func.func @transform_3(%arg0: i32) -> (i32, i32, i32, i32) {
    %c0_i32 = arith.constant 0 : i32
    %c0_i32_0 = arith.constant 0 : i32
    %c0_i32_1 = arith.constant 0 : i32
    %c0_i32_2 = arith.constant 0 : i32
    return %arg0, %c0_i32, %c0_i32_0, %c0_i32_1 : i32, i32, i32, i32
  }
}

module attributes {stable_mosaic.version = 11 : i64} {
  func.func @_fc_fused_kernel(%arg0: memref<2x6272xbf16, #tpu.memory_space<vmem>>, %arg1: memref<2x32xbf16, #tpu.memory_space<vmem>>, %arg2: memref<6272x128xbf16, #tpu.memory_space<vmem>>, %arg3: memref<32x128xbf16, #tpu.memory_space<vmem>>, %arg4: memref<1x128xf32, #tpu.memory_space<vmem>>, %arg5: memref<128x128xbf16, #tpu.memory_space<vmem>>, %arg6: memref<1x128xf32, #tpu.memory_space<vmem>>, %arg7: memref<2x128xf32, #tpu.memory_space<vmem>>) attributes {dimension_semantics = [], scalar_prefetch = 0 : i64, scratch_operands = 0 : i64, tpu.core_type = #tpu.core_type<tc>} {
    %c0 = arith.constant 0 : index
    %c0_0 = arith.constant 0 : index
    %0 = vector.load %arg0[%c0, %c0_0] : memref<2x6272xbf16, #tpu.memory_space<vmem>>, vector<2x6272xbf16>
    %c0_1 = arith.constant 0 : index
    %c0_2 = arith.constant 0 : index
    %1 = vector.load %arg2[%c0_1, %c0_2] : memref<6272x128xbf16, #tpu.memory_space<vmem>>, vector<6272x128xbf16>
    %cst = arith.constant dense<0.000000e+00> : vector<2x128xf32>
    %2 = tpu.matmul %0, %1, %cst {dimension_numbers = #tpu.dot_dimension_numbers<[1], [0], [0], [1], [0, 0, 1, 1], [], []>} : vector<2x6272xbf16>, vector<6272x128xbf16>, vector<2x128xf32> -> vector<2x128xf32>
    %c0_3 = arith.constant 0 : index
    %c0_4 = arith.constant 0 : index
    %3 = vector.load %arg1[%c0_3, %c0_4] : memref<2x32xbf16, #tpu.memory_space<vmem>>, vector<2x32xbf16>
    %c0_5 = arith.constant 0 : index
    %c0_6 = arith.constant 0 : index
    %4 = vector.load %arg3[%c0_5, %c0_6] : memref<32x128xbf16, #tpu.memory_space<vmem>>, vector<32x128xbf16>
    %cst_7 = arith.constant dense<0.000000e+00> : vector<2x128xf32>
    %5 = tpu.matmul %3, %4, %cst_7 {dimension_numbers = #tpu.dot_dimension_numbers<[1], [0], [0], [1], [0, 0, 1, 1], [], []>} : vector<2x32xbf16>, vector<32x128xbf16>, vector<2x128xf32> -> vector<2x128xf32>
    %6 = arith.addf %2, %5 : vector<2x128xf32>
    %c0_8 = arith.constant 0 : index
    %c0_9 = arith.constant 0 : index
    %7 = vector.load %arg4[%c0_8, %c0_9] : memref<1x128xf32, #tpu.memory_space<vmem>>, vector<1x128xf32>
    %8 = vector.broadcast %7 : vector<1x128xf32> to vector<2x128xf32>
    %9 = arith.addf %6, %8 : vector<2x128xf32>
    %cst_10 = arith.constant 0.000000e+00 : f32
    %10 = vector.broadcast %cst_10 : f32 to vector<2x128xf32>
    %11 = arith.maximumf %9, %10 : vector<2x128xf32>
    %12 = arith.truncf %11 : vector<2x128xf32> to vector<2x128xbf16>
    %c0_11 = arith.constant 0 : index
    %c0_12 = arith.constant 0 : index
    %13 = vector.load %arg5[%c0_11, %c0_12] : memref<128x128xbf16, #tpu.memory_space<vmem>>, vector<128x128xbf16>
    %cst_13 = arith.constant dense<0.000000e+00> : vector<2x128xf32>
    %14 = tpu.matmul %12, %13, %cst_13 {dimension_numbers = #tpu.dot_dimension_numbers<[1], [0], [0], [1], [0, 0, 1, 1], [], []>} : vector<2x128xbf16>, vector<128x128xbf16>, vector<2x128xf32> -> vector<2x128xf32>
    %c0_14 = arith.constant 0 : index
    %c0_15 = arith.constant 0 : index
    %15 = vector.load %arg6[%c0_14, %c0_15] : memref<1x128xf32, #tpu.memory_space<vmem>>, vector<1x128xf32>
    %16 = vector.broadcast %15 : vector<1x128xf32> to vector<2x128xf32>
    %17 = arith.addf %14, %16 : vector<2x128xf32>
    %c0_16 = arith.constant 0 : index
    %c0_17 = arith.constant 0 : index
    %18 = vector.load %arg7[%c0_16, %c0_17] : memref<2x128xf32, #tpu.memory_space<vmem>>, vector<2x128xf32>
    tpu.vector_store %arg7[%c0_16, %c0_17], %17 {strides = array<i32>} : memref<2x128xf32, #tpu.memory_space<vmem>>, vector<2x128xf32>,
    return
  }
}

</mosaic_0001>

<bundles_post_ra>
// kernel: forward.3
= control target key start
LH: loop header
LB: loop body
LE: loop exit
PB: predicated region body
PF: predicated region fallthrough
CT: control target
= control target key end

     0   :  { %8 = vsyncpa [#allocation4], 0  ;;  %s2299_s0 = inlined_call_operand.vmem [shape: bf16[2,30,30,3], index: 0, kind: input, shape index: {}]   ;;  %s2300_s1 = inlined_call_operand.hbm [shape: bf16[9,3,128], index: 1, kind: input, shape index: {}]   ;;  %s2301_s2 = inlined_call_operand.hbm [shape: f32[1,128], index: 2, kind: input, shape index: {}]   ;;  %s2302_s3 = inlined_call_operand.vmem [shape: bf16[2,14,14,128], index: 3, kind: output, shape index: {}]  }
   0x1   :  { %9 = vsyncpa [#allocation6], 0  ;;  %s2014_s12 = smov 0  }
   0x2 LB: > { %s2020_s13 = sadd.s32 4294967295, %s1983_s12   ;;  %p1591_p0 = scmp.ge.s32.totalorder %s1983_s12, 1  ;;  %s1983_s12 = sphi %s2014_s12, %s15_s12  }
   0x3   : > { %p114_p1 = scmp.lt.s32.totalorder %s1983_s12, 3  ;;  %s1989_s14 = smov [#allocation3]  }
   0x4   : > { %s126_s15 = sshll.u32 %s1989_s14, 4  ;;  %p1872_p3 = scmp.eq.s32.totalorder %s2020_s13, 0  ;;  %s127_s15 = int_to_ptr.vmem [resolvable:$true] %s126_s15 }
   0x5   : > { %p2024_p2 = pnand %p1591_p0, %p114_p1  ;;  %s1990_s17 = smov [#allocation5]  }
   0x6   : > { %s140_s18 = sshll.u32 %s1990_s17, 4  ;;  %s1924_s20 = scalar_lea.vmem %s127_s15, 288  ;;  %s141_s18 = int_to_ptr.vmem [resolvable:$true] %s140_s18 }
   0x7   : > { %p1865_p4 = pneg %p2024_p2  ;;  %p1925_p7 = scmp.ne.s32.totalorder %s127_s15, %s1924_s20 }
   0x8   : > { %p1932_p10 = scmp.lt.s32.totalorder %s127_s15, %s127_s15  ;;  %p1933_p11 = scmp.lt.s32.totalorder %s1924_s20, %s1924_s20 }
   0x9   : > { %p2033_p5 = pnand %p1872_p3, %p1865_p4 }
   0xa   : > { %p1934_p12 = por %p1933_p11, %p1932_p10 }
   0xb   : > { %p1915_p6 = pneg %p2033_p5 }
   0xd   : > { %p1927_p8 = pnand %p1925_p7, %p1915_p6 }
   0xf   : > { %p1928_p9 = pneg %p1927_p8 }
  0x11   : > { %p1935_p13 = pnand %p1934_p12, %p1928_p9 }
  0x13   : > { %1938 = shalt.err (!%p1935_p13)
}
  0x14   : > { %s1991_s21 = smov 32   ;;  %s1992_s22 = smov 2  }
  0x15   : > { %1868 = dma.hbm_to_vmem [thread:$0]  (!%p2033_p5), %s2300_s1, 288, %s127_s15, [#allocation4], %s1991_s21, %s1991_s21, %s1992_s22  }
  0x16   : > { %s1950_s25 = scalar_lea.vmem %s141_s18, 16  ;;  %s1957_s26 = scalar_lea.vmem %s141_s18, 32 }
  0x17   : > { %p1951_p0 = scmp.ne.s32.totalorder %s141_s18, %s1950_s25  ;;  %p1958_p7 = scmp.lt.s32.totalorder %s141_s18, %s141_s18 }
  0x18   : > { %p1959_p8 = scmp.lt.s32.totalorder %s1957_s26, %s1950_s25 }
  0x19   : > { %p1953_p1 = pnand %p1951_p0, %p1915_p6 }
  0x1a   : > { %p1960_p9 = por %p1959_p8, %p1958_p7 }
  0x1b   : > { %p1954_p4 = pneg %p1953_p1 }
  0x1d   : > { %p1961_p10 = pnand %p1960_p9, %p1954_p4 }
  0x1f   : > { %1964 = shalt.err (!%p1961_p10)
}
  0x20   : > { %1871 = dma.hbm_to_vmem [thread:$0]  (!%p2033_p5), %s2301_s2, 16, %s141_s18, [#allocation6]  }
  0x21   : > { %161 = sbr.rel (%p2024_p2) target bundleno = 348 (0x15c), region = 32 }
  0x26   : > { %1974 = dma.done.wait (%p1872_p3), [#allocation4], 288  }
  0x27   : > { %1976 = vsyncadd (%p1872_p3), [#allocation4], 4294967008 }
  0x28   : > { %1978 = dma.done.wait (%p1872_p3), [#allocation6], 16  }
  0x29   : > { %1980 = vsyncadd (%p1872_p3), [#allocation6], 4294967280  ;;  %p189_p6 = scmp.lt.s32.totalorder %s2020_s13, 1  ;;  %v2072_v0 = vld [vmem:[#allocation5] ss:$0 sm:$0xff]  ;;  %s2079_s10 = smov 0  }
  0x2b   : > { %s2312_s13 = smov (!%p189_p6, %s2020_s13), 1 }
  0x2c   : > { %s1855_s29 = smul.u32 480, %s2312_s13 }
  0x2d   : > { %s1856_s30 = smul.u32 112, %s2312_s13 }
  0x2e   : > { %s2070_s6 = scalar_lea.vmem %s2299_s0, %s1855_s29 }
  0x2f   : > { %s2077_s9 = scalar_lea.vmem %s2302_s3, %s1856_s30 }
  0x30 LB: >> { %v215_v1 = vld [vmem:[#allocation3] sm:$0x3]  ;;  %vm252_vm0 = vcmask 1040384   ;;  %vm253_vm1 = vcmask 1041408   ;;  %v1993_v2 = vmov 65535   ;;  %s1686_s11 = sshll.u32 %s1987_s10, 5  ;;  %s1987_s10 = sphi %s2079_s10, %s206_s10  }
  0x31   : >> { %v254_v3 = vsel %vm252_vm0, 4294967295, %v1993_v2  ;;  %v218_v4 = vld [vmem:[#allocation3 + $0x2] sm:$0x3]  ;;  %v370_v6 = vld [vmem:[#allocation3 + $0x4] sm:$0x3]  ;;  %s2094_s13 = scalar_lea.vmem %s2070_s6, %s1686_s11  ;;  %vm245_vm2 = vcmask 23552  }
  0x32   : >> { %v2084_v5 = vsel %vm253_vm1, %v254_v3, 0  ;;  %v449_v7 = vld [vmem:[#allocation3 + $0x6] sm:$0x3]  ;;  %v606_v11 = vld [vmem:[#allocation3 + $0xa] sm:$0x3]  ;;  %vm374_vm3 = vcmask 1046528  }
  0x33   : >> { %v2088_v8 = vand.u32 %v2084_v5, %v215_v1  ;;  %v2091_v9 = vand.u32 %v2084_v5, %v218_v4  ;;  %v2097_v10 = vand.u32 %v370_v6, %v2084_v5  ;;  %v211_v12 = vld [vmem:[%s2094_s13] sm:$0xf]  ;;  %v212_v13 = vld [vmem:[%s2094_s13 + $0x4] sm:$0xf]  ;;  %v2103_v15 = vand.u32 %v449_v7, %v2084_v5  ;;  %v213_v18 = vld [vmem:[%s2094_s13 + $0x8] sm:$0xf] }
  0x34   : >> { %v368_v14 = vld [vmem:[%s2094_s13] sm:$0xe]  ;;  %v1603_v16 = vcombine.low %v211_v12, %v212_v13  ;;  %v214_v19 = vld [vmem:[%s2094_s13 + $0xc] sm:$0x3]  ;;  %v1615_v23 = vld [vmem:[%s2094_s13 + $0x10] sm:$0xf]  ;;  %v2123_v31 = vand.u32 %v606_v11, %v2084_v5 }
  0x35   : >> { %1753 = vmatprep.subr.bf16.mxu1 %v2088_v8  ;;  %1747 = vmatprep.subr.bf16.mxu0 %v2091_v9  ;;  %v1610_v17 = vcombine.low %v368_v14, %v212_v13  ;;  %v216_v20 = vld [vmem:[%s2094_s13 + $0xc] sm:$0x7]  ;;  %v1607_v22 = vcombine.low %v213_v18, %v214_v19  ;;  %v1616_v24 = vld [vmem:[%s2094_s13 + $0x14] sm:$0xf]  ;;  %v524_v25 = vld [vmem:[#allocation3 + $0x8] sm:$0x3] }
  0x36   : >> { %1754 = vmatpush3.bf16.msra.mxu1 %v2088_v8  ;;  %1748 = vmatpush3.bf16.msra.mxu0 %v2091_v9  ;;  %v2112_v21 = vcombine.low %v213_v18, %v216_v20  ;;  %v231_v26 = vshrl.u32 %v1603_v16, 16  ;;  %v233_v27 = vshll.u32 %v1603_v16, 16  ;;  %v2118_v28 = vcombine.low %v1615_v23, %v1616_v24  ;;  %v1617_v29 = vld [vmem:[%s2094_s13 + $0x18] sm:$0xf]  ;;  %v1618_v30 = vld [vmem:[%s2094_s13 + $0x1c] sm:$0x3] }
  0x37   : >> { %1755 = vmatprep.mubr.msk.bf16.mxu1 %vm245_vm2, %v1603_v16  ;;  %1759 = vmatprep.subr.bf16.mxu0 %v2097_v10  ;;  %v375_v32 = vrot.slane %v1610_v17, 1  ;;  %v1623_v36 = vld [vmem:[%s2094_s13 + $0x1c] sm:$0x7]  ;;  %v1627_v39 = vld [vmem:[%s2094_s13 + $0x10] sm:$0xe]  ;;  %v2137_v45 = vcombine.low %v1617_v29, %v1618_v30  ;;  %v2140_v46 = vand.u32 %v524_v25, %v2084_v5  ;;  %s1692_s14 = sshll.u32 %s1987_s10, 3 }
  0x38   : >> { %v238_v33 = vshll.u32 %v2112_v21, 16  ;;  %v242_v34 = vshrl.u32 %v2112_v21, 16  ;;  %1765 = vmatprep.subr.bf16.mxu1 %v2103_v15  ;;  %v376_v35 = vrot.slane %v2112_v21, 1  ;;  %v235_v37 = vrot.slane %v233_v27, 1  ;;  %v1633_v43 = vld [vmem:[%s2094_s13 + $0x20] sm:$0xf]  ;;  %s1488_s15 = scalar_lea.vmem %s2077_s9, %s1692_s14 }
  0x39   : >> { %1756 = vmatmul.mubr.msk.bf16.vlgmr.msra.gmra.mxu1 %vm245_vm2, %v1607_v22  ;;  %v1624_v38 = vcombine.low %v1617_v29, %v1623_v36  ;;  %v530_v40 = vshll.u32 %v2118_v28, 16  ;;  %vm229_vm4 = vsmask.f32 7424  ;;  %v1628_v42 = vcombine.low %v1627_v39, %v1616_v24  ;;  %v759_v48 = vld [vmem:[#allocation3 + $0xe] sm:$0x3]  ;;  %s206_s10 = sadd.s32 1, %s1987_s10  }
  0x3a   : >> { %v240_v41 = vrot.slane %v238_v33, 1  ;;  %1766 = vmatpush3.bf16.msra.mxu1 %v2103_v15  ;;  %1767 = vmatprep.mubr.msk.bf16.mxu1 %vm245_vm2, %v2118_v28  ;;  %v236_v44 = vor.u32 %v235_v37, %v231_v26  ;;  %v1634_v49 = vld [vmem:[%s2094_s13 + $0x24] sm:$0xf]  ;;  %v377_v51 = vsel %vm374_vm3, %v375_v32, %v376_v35  ;;  %v528_v53 = vshrl.u32 %v2118_v28, 16  ;;  %v1635_v54 = vld [vmem:[%s2094_s13 + $0x28] sm:$0xf] }
  0x3b   : >> { %1777 = vmatprep.subr.bf16.mxu1 %v2123_v31  ;;  %v2143_v47 = vrot.slane %v1624_v38, 1  ;;  %v610_v52 = vrot.slane %v1628_v42, 1  ;;  %v1641_v55 = vld [vmem:[%s2094_s13 + $0x2c] sm:$0x7]  ;;  %v532_v57 = vrot.slane %v530_v40, 1  ;;  %v535_v58 = vshll.u32 %v1624_v38, 16 }
  0x3c   : >> { %v244_v50 = vor.u32 %v242_v34, %v240_v41  ;;  %v241_v56 = vsel %vm229_vm4, %v236_v44, %v240_v41  ;;  %v2151_v59 = vcombine.low %v1633_v43, %v1634_v49  ;;  %v1642_v60 = vcombine.low %v1635_v54, %v1641_v55  ;;  %v684_v7 = vld [vmem:[#allocation3 + $0xc] sm:$0x3]  ;;  %v841_v19 = vld [vmem:[#allocation3 + $0x10] sm:$0x3]  ;;  %v1645_v20 = vld [vmem:[%s2094_s13 + $0x20] sm:$0xe] }
  0x3d   : >> { %1749 = vmatprep.mubr.msk.bf16.mxu0 %vm245_vm2, %v241_v56  ;;  %v612_v61 = vsel %vm374_vm3, %v610_v52, %v2143_v47  ;;  %v2158_v62 = vand.u32 %v759_v48, %v2084_v5  ;;  %v533_v3 = vor.u32 %v532_v57, %v528_v53  ;;  %v537_v4 = vrot.slane %v535_v58, 1  ;;  %v1636_v25 = vld [vmem:[%s2094_s13 + $0x2c] sm:$0x3]  ;;  %v1672_v30 = vld [vmem:[%s2094_s13 + $0x3c] sm:$0x7]  ;;  %p203_p2 = scmp.ge.s32.totalorder %s206_s10, 14  }
  0x3e   : >> { %1750 = vmatmul.mubr.msk.bf16.vlgmr.msra.gmra.mxu0 %vm245_vm2, %v244_v50  ;;  %v763_v63 = vshrl.u32 %v2151_v59, 16  ;;  %v765_v1 = vshll.u32 %v2151_v59, 16  ;;  %v770_v2 = vshll.u32 %v1642_v60, 16  ;;  %v702_v14 = vand.u32 %v684_v7, %v2084_v5  ;;  %v1676_v32 = vld [vmem:[%s2094_s13 + $0x30] sm:$0xe] }
  0x3f   : >> { %1760 = vmatpush3.bf16.msra.mxu0 %v2097_v10  ;;  %1761 = vmatprep.mubr.msk.bf16.mxu0 %vm245_vm2, %v377_v51  ;;  %v538_v13 = vsel %vm229_vm4, %v533_v3, %v537_v4  ;;  %v539_v16 = vshrl.u32 %v1624_v38, 16  ;;  %v774_v18 = vshrl.u32 %v1642_v60, 16  ;;  %v855_v23 = vand.u32 %v841_v19, %v2084_v5  ;;  %v1667_v36 = vld [vmem:[%s2094_s13 + $0x3c] sm:$0x3] }
  0x40   : >> { %1771 = vmatprep.subr.bf16.mxu0 %v2140_v46  ;;  %v767_v6 = vrot.slane %v765_v1, 1  ;;  %v772_v12 = vrot.slane %v770_v2, 1  ;;  %v1646_v24 = vcombine.low %v1645_v20, %v1634_v49  ;;  %v846_v27 = vrot.slane %v1642_v60, 1 }
  0x41   : >> { %1768 = vmatmul.mubr.msk.bf16.vlgmr.msra.gmra.mxu1 %vm245_vm2, %v2137_v45  ;;  %v541_v21 = vor.u32 %v539_v16, %v537_v4  ;;  %v1638_v29 = vcombine.low %v1635_v54, %v1636_v25 }
  0x42   : >> { %1778 = vmatpush3.bf16.msra.mxu1 %v2123_v31  ;;  %1779 = vmatprep.mubr.msk.bf16.mxu1 %vm245_vm2, %v612_v61  ;;  %v768_v11 = vor.u32 %v767_v6, %v763_v63  ;;  %v776_v22 = vor.u32 %v774_v18, %v772_v12  ;;  %v845_v26 = vrot.slane %v1646_v24, 1 }
  0x43   : >> { %1789 = vmatprep.subr.bf16.mxu1 %v2158_v62 }
  0x44   : >> { %v773_v17 = vsel %vm229_vm4, %v768_v11, %v772_v12  ;;  %v847_v5 = vsel %vm374_vm3, %v845_v26, %v846_v27 }
  0x46   : >> { %1762 = vmatmul.mubr.msk.bf16.vlgmr.msra.gmra.mxu0 %vm245_vm2, %v376_v35 }
  0x47   : >> { %1772 = vmatpush3.bf16.msra.mxu0 %v2140_v46  ;;  %1773 = vmatprep.mubr.msk.bf16.mxu0 %vm245_vm2, %v538_v13 }
  0x48   : >> { %1783 = vmatprep.subr.bf16.mxu0 %v702_v14 }
  0x49   : >> { %1780 = vmatmul.mubr.msk.bf16.vlgmr.msra.gmra.mxu1 %vm245_vm2, %v2143_v47 }
  0x4a   : >> { %1790 = vmatpush3.bf16.msra.mxu1 %v2158_v62  ;;  %1791 = vmatprep.mubr.msk.bf16.mxu1 %vm245_vm2, %v773_v17 }
  0x4b   : >> { %1801 = vmatprep.subr.bf16.mxu1 %v2091_v9 }
  0x4e   : >> { %1774 = vmatmul.mubr.msk.bf16.vlgmr.msra.gmra.mxu0 %vm245_vm2, %v541_v21 }
  0x4f   : >> { %1784 = vmatpush3.bf16.msra.mxu0 %v702_v14  ;;  %1785 = vmatprep.mubr.msk.bf16.mxu0 %vm245_vm2, %v2151_v59 }
  0x50   : >> { %1795 = vmatprep.subr.bf16.mxu0 %v855_v23 }
  0x51   : >> { %1792 = vmatmul.mubr.msk.bf16.vlgmr.msra.gmra.mxu1 %vm245_vm2, %v776_v22 }
  0x52   : >> { %1802 = vmatpush3.bf16.msra.mxu1 %v2091_v9  ;;  %1803 = vmatprep.mubr.msk.bf16.mxu1 %vm245_vm2, %v538_v13  ;;  %v1664_v9 = vld [vmem:[%s2094_s13 + $0x30] sm:$0xf] }
  0x53   : >> { %1813 = vmatprep.subr.bf16.mxu1 %v2097_v10 }
  0x56   : >> { %1786 = vmatmul.mubr.msk.bf16.vlgmr.msra.gmra.mxu0 %vm245_vm2, %v1638_v29 }
  0x57   : >> { %1796 = vmatpush3.bf16.msra.mxu0 %v855_v23  ;;  %1797 = vmatprep.mubr.msk.bf16.mxu0 %vm245_vm2, %v847_v5 }
  0x58   : >> { %1807 = vmatprep.subr.bf16.mxu0 %v2088_v8 }
  0x59   : >> { %1804 = vmatmul.mubr.msk.bf16.vlgmr.msra.gmra.mxu1 %vm245_vm2, %v541_v21 }
  0x5a   : >> { %1814 = vmatpush3.bf16.msra.mxu1 %v2097_v10  ;;  %1815 = vmatprep.mubr.msk.bf16.mxu1 %vm245_vm2, %v612_v61  ;;  %v1665_v10 = vld [vmem:[%s2094_s13 + $0x34] sm:$0xf] }
  0x5b   : >> { %1825 = vmatprep.subr.bf16.mxu1 %v2140_v46  ;;  %v1668_v33 = vcombine.low %v1664_v9, %v1665_v10  ;;  %v1677_v34 = vcombine.low %v1676_v32, %v1665_v10 }
  0x5d   : >> { %v1317_v35 = vshll.u32 %v1668_v33, 16  ;;  %v1392_v37 = vrot.slane %v1677_v34, 1  ;;  %v1315_v40 = vshrl.u32 %v1668_v33, 16 }
  0x5e   : >> { %1798 = vmatmul.mubr.msk.bf16.vlgmr.msra.gmra.mxu0 %vm245_vm2, %v846_v27 }
  0x5f   : >> { %1808 = vmatpush3.bf16.msra.mxu0 %v2088_v8  ;;  %1809 = vmatprep.mubr.msk.bf16.mxu0 %vm245_vm2, %v2118_v28  ;;  %v1666_v8 = vld [vmem:[%s2094_s13 + $0x38] sm:$0xf]  ;;  %v1319_v41 = vrot.slane %v1317_v35, 1 }
  0x60   : >> { %1819 = vmatprep.subr.bf16.mxu0 %v2103_v15  ;;  %v1673_v28 = vcombine.low %v1666_v8, %v1672_v30  ;;  %v1669_v39 = vcombine.low %v1666_v8, %v1667_v36 }
  0x61   : >> { %1816 = vmatmul.mubr.msk.bf16.vlgmr.msra.gmra.mxu1 %vm245_vm2, %v2143_v47  ;;  %v1320_v43 = vor.u32 %v1319_v41, %v1315_v40 }
  0x62   : >> { %1826 = vmatpush3.bf16.msra.mxu1 %v2140_v46  ;;  %1827 = vmatprep.mubr.msk.bf16.mxu1 %vm245_vm2, %v773_v17  ;;  %v1393_v38 = vrot.slane %v1673_v28, 1  ;;  %v1322_v42 = vshll.u32 %v1673_v28, 16  ;;  %v1326_v46 = vshrl.u32 %v1673_v28, 16 }
  0x63   : >> { %1837 = vmatprep.subr.bf16.mxu1 %v702_v14 }
  0x64   : >> { %v1324_v44 = vrot.slane %v1322_v42, 1 }
  0x66   : >> { %1810 = vmatmul.mubr.msk.bf16.vlgmr.msra.gmra.mxu0 %vm245_vm2, %v2137_v45  ;;  %v1325_v45 = vsel %vm229_vm4, %v1320_v43, %v1324_v44 }
  0x67   : >> { %1820 = vmatpush3.bf16.msra.mxu0 %v2103_v15  ;;  %1821 = vmatprep.mubr.msk.bf16.mxu0 %vm245_vm2, %v2151_v59  ;;  %v1394_v15 = vsel %vm374_vm3, %v1392_v37, %v1393_v38 }
  0x68   : >> { %1831 = vmatprep.subr.bf16.mxu0 %v2123_v31 }
  0x69   : >> { %1828 = vmatmul.mubr.msk.bf16.vlgmr.msra.gmra.mxu1 %vm245_vm2, %v776_v22 }
  0x6a   : >> { %1838 = vmatpush3.bf16.msra.mxu1 %v702_v14  ;;  %1839 = vmatprep.mubr.msk.bf16.mxu1 %vm245_vm2, %v1668_v33 }
  0x6b   : >> { %1849 = vmatprep.subr.bf16.mxu1 %v855_v23 }
  0x6e   : >> { %1822 = vmatmul.mubr.msk.bf16.vlgmr.msra.gmra.mxu0 %vm245_vm2, %v1638_v29 }
  0x6f   : >> { %1832 = vmatpush3.bf16.msra.mxu0 %v2123_v31  ;;  %1833 = vmatprep.mubr.msk.bf16.mxu0 %vm245_vm2, %v847_v5  ;;  %v1328_v31 = vor.u32 %v1326_v46, %v1324_v44 }
  0x70   : >> { %1843 = vmatprep.subr.bf16.mxu0 %v2158_v62 }
  0x71   : >> { %1840 = vmatmul.mubr.msk.bf16.vlgmr.msra.gmra.mxu1 %vm245_vm2, %v1669_v39 }
  0x72   : >> { %1850 = vmatpush3.bf16.msra.mxu1 %v855_v23  ;;  %1851 = vmatprep.mubr.msk.bf16.mxu1 %vm245_vm2, %v1394_v15 }
  0x76   : >> { %1834 = vmatmul.mubr.msk.bf16.vlgmr.msra.gmra.mxu0 %vm245_vm2, %v846_v27 }
  0x77   : >> { %1844 = vmatpush3.bf16.msra.mxu0 %v2158_v62  ;;  %1845 = vmatprep.mubr.msk.bf16.mxu0 %vm245_vm2, %v1325_v45 }
  0x79   : >> { %1852 = vmatmul.mubr.msk.bf16.vlgmr.msra.gmra.mxu1 %vm245_vm2, %v1393_v38 }
  0x7e   : >> { %1846 = vmatmul.mubr.msk.bf16.vlgmr.msra.gmra.mxu0 %vm245_vm2, %v1328_v31 }
  0xf9   : >> { %v1757_v47 = vpop.f32.mrf.mxu1 }
  0xfb   : >> { %v353_v48 = vpop.f32.mrf.mxu1 }
  0xfd   : >> { %v1758_v49 = vpop.f32.mrf.mxu1 }
  0xfe   : >> { %v1751_v50 = vpop.f32.mrf.mxu0 }
  0xff   : >> { %v356_v51 = vpop.f32.mrf.mxu1  ;;  %v362_v33 = vadd.f32 %v1757_v47, %v1751_v50 }
 0x100   : >> { %v293_v52 = vpop.f32.mrf.mxu0 }
 0x101   : >> { %v1769_v53 = vpop.f32.mrf.mxu1  ;;  %v354_v34 = vadd.f32 %v353_v48, %v293_v52 }
 0x102   : >> { %v1752_v54 = vpop.f32.mrf.mxu0 }
 0x103   : >> { %v503_v55 = vpop.f32.mrf.mxu1  ;;  %v365_v38 = vadd.f32 %v1758_v49, %v1752_v54 }
 0x104   : >> { %v296_v56 = vpop.f32.mrf.mxu0 }
 0x105   : >> { %v1770_v57 = vpop.f32.mrf.mxu1  ;;  %v357_v15 = vadd.f32 %v356_v51, %v296_v56 }
 0x106   : >> { %v1763_v58 = vpop.f32.mrf.mxu0 }
 0x107   : >> { %v2235_v59 = vpop.f32.mrf.mxu1  ;;  %v438_v35 = vadd.f32 %v1763_v58, %v362_v33 }
 0x108   : >> { %v421_v60 = vpop.f32.mrf.mxu0 }
 0x109   : >> { %v2237_v61 = vpop.f32.mrf.mxu1  ;;  %v436_v39 = vadd.f32 %v421_v60, %v354_v34  ;;  %v520_v44 = vadd.f32 %v1769_v53, %v438_v35 }
 0x10a   : >> { %v1764_v62 = vpop.f32.mrf.mxu0 }
 0x10b   : >> { %v2239_v63 = vpop.f32.mrf.mxu1  ;;  %v439_v43 = vadd.f32 %v1764_v62, %v365_v38  ;;  %v518_v47 = vadd.f32 %v503_v55, %v436_v39 }
 0x10c   : >> { %v424_v1 = vpop.f32.mrf.mxu0 }
 0x10d   : >> { %v2241_v2 = vpop.f32.mrf.mxu1  ;;  %v521_v33 = vadd.f32 %v1770_v57, %v439_v43 }
 0x10e   : >> { %v1775_v3 = vpop.f32.mrf.mxu0 }
 0x10f   : >> { %v2243_v4 = vpop.f32.mrf.mxu1 }
 0x110   : >> { %v585_v6 = vpop.f32.mrf.mxu0 }
 0x111   : >> { %v2245_v7 = vpop.f32.mrf.mxu1  ;;  %v600_v58 = vadd.f32 %v585_v6, %v518_v47 }
 0x112   : >> { %v1776_v11 = vpop.f32.mrf.mxu0 }
 0x113   : >> { %v2247_v12 = vpop.f32.mrf.mxu1  ;;  %v603_v51 = vadd.f32 %v1776_v11, %v521_v33 }
 0x114   : >> { %v588_v13 = vpop.f32.mrf.mxu0 }
 0x115   : >> { %v2249_v14 = vpop.f32.mrf.mxu1  ;;  %v674_v11 = vadd.f32 %v2241_v2, %v603_v51 }
 0x116   : >> { %v1787_v16 = vpop.f32.mrf.mxu0 }
 0x117   : >> { %v2251_v17 = vpop.f32.mrf.mxu1 }
 0x118   : >> { %2305 = vst [vmem:[#allocation9_spill] sm:$0xff] %v2251_v17  ;;  %v2253_v18 = vpop.f32.mrf.mxu0  ;;  %v602_v17 = vadd.f32 %v1775_v3, %v520_v44 }
 0x119   : >> { %v1805_v19 = vpop.f32.mrf.mxu1 }
 0x11a   : >> { %v2255_v20 = vpop.f32.mrf.mxu0  ;;  %v673_v56 = vadd.f32 %v2237_v61, %v602_v17 }
 0x11b   : >> { %v958_v21 = vpop.f32.mrf.mxu1  ;;  %v756_v35 = vadd.f32 %v2255_v20, %v674_v11 }
 0x11c   : >> { %v2257_v22 = vpop.f32.mrf.mxu0 }
 0x11d   : >> { %v1806_v23 = vpop.f32.mrf.mxu1 }
 0x11e   : >> { %v2259_v24 = vpop.f32.mrf.mxu0 }
 0x11f   : >> { %v961_v25 = vpop.f32.mrf.mxu1 }
 0x120   : >> { %v2261_v26 = vpop.f32.mrf.mxu0 }
 0x121   : >> { %v1817_v27 = vpop.f32.mrf.mxu1 }
 0x122   : >> { %v2263_v29 = vpop.f32.mrf.mxu0 }
 0x123   : >> { %2306 = vst [vmem:[#allocation10_spill] sm:$0xff] %v2263_v29  ;;  %v1056_v5 = vpop.f32.mrf.mxu1 }
 0x124   : >> { %v2265_v9 = vpop.f32.mrf.mxu0 }
 0x125   : >> { %2307 = vst [vmem:[#allocation11_spill] sm:$0xff] %v2265_v9  ;;  %v1818_v10 = vpop.f32.mrf.mxu1  ;;  %v437_v9 = vadd.f32 %v424_v1, %v357_v15 }
 0x126   : >> { %v1811_v30 = vpop.f32.mrf.mxu0 }
 0x127   : >> { %v1059_v32 = vpop.f32.mrf.mxu1  ;;  %v1016_v42 = vadd.f32 %v1811_v30, %v1805_v19  ;;  %v519_v53 = vadd.f32 %v2235_v59, %v437_v9  ;;  %v755_v30 = vadd.f32 %v1787_v16, %v673_v56 }
 0x128   : >> { %v1007_v8 = vpop.f32.mrf.mxu0 }
 0x129   : >> { %v1829_v28 = vpop.f32.mrf.mxu1  ;;  %v1008_v31 = vadd.f32 %v1007_v8, %v958_v21  ;;  %v1073_v52 = vadd.f32 %v1817_v27, %v1016_v42  ;;  %v601_v21 = vadd.f32 %v588_v13, %v519_v53  ;;  %v837_v16 = vadd.f32 %v2245_v7, %v755_v30 }
 0x12a   : >> { %v1812_v36 = vpop.f32.mrf.mxu0 }
 0x12b   : >> { %v1162_v37 = vpop.f32.mrf.mxu1  ;;  %v1019_v48 = vadd.f32 %v1812_v36, %v1806_v23  ;;  %v1071_v19 = vadd.f32 %v1056_v5, %v1008_v31  ;;  %v671_v23 = vadd.f32 %v2239_v63, %v600_v58  ;;  %v672_v13 = vadd.f32 %v2243_v4, %v601_v21 }
 0x12c   : >> { %v1010_v40 = vpop.f32.mrf.mxu0  ;;  %v838_v4 = vadd.f32 %v2249_v14, %v756_v35 }
 0x12d   : >> { %v1830_v41 = vpop.f32.mrf.mxu1  ;;  %v1011_v60 = vadd.f32 %v1010_v40, %v961_v25  ;;  %v1074_v55 = vadd.f32 %v1818_v10, %v1019_v48  ;;  %v753_v5 = vadd.f32 %v2253_v18, %v671_v23  ;;  %v908_v18 = vadd.f32 %v2259_v24, %v837_v16  ;;  %v2309_v24 = vld [vmem:[#allocation9_spill] sm:$0xff] }
 0x12e   : >> { %v1823_v45 = vpop.f32.mrf.mxu0 }
 0x12f   : >> { %v1165_v46 = vpop.f32.mrf.mxu1  ;;  %v1126_v34 = vadd.f32 %v1823_v45, %v1073_v52  ;;  %v1072_v8 = vadd.f32 %v1059_v32, %v1011_v60  ;;  %v754_v32 = vadd.f32 %v2257_v22, %v672_v13  ;;  %v835_v2 = vadd.f32 %v2247_v12, %v753_v5  ;;  %v2308_v22 = vld [vmem:[#allocation10_spill] sm:$0xff] }
 0x130   : >> { %v1109_v50 = vpop.f32.mrf.mxu0  ;;  %v909_v45 = vadd.f32 %v2308_v22, %v838_v4 }
 0x131   : >> { %v1841_v29 = vpop.f32.mrf.mxu1  ;;  %v1124_v3 = vadd.f32 %v1109_v50, %v1071_v19  ;;  %v1179_v25 = vadd.f32 %v1829_v28, %v1126_v34  ;;  %v906_v20 = vadd.f32 %v2261_v26, %v835_v2  ;;  %v836_v31 = vadd.f32 %v2309_v24, %v754_v32  ;;  %v2310_v26 = vld [vmem:[#allocation11_spill] sm:$0xff] }
 0x132   : >> { %v1824_v49 = vpop.f32.mrf.mxu0  ;;  %v919_v34 = vadd.f32 %v2072_v0, %v909_v45 }
 0x133   : >> { %v1292_v54 = vpop.f32.mrf.mxu1  ;;  %v1127_v27 = vadd.f32 %v1824_v49, %v1074_v55  ;;  %v1177_v17 = vadd.f32 %v1162_v37, %v1124_v3  ;;  %v907_v48 = vadd.f32 %v2310_v26, %v836_v31 }
 0x134   : >> { %v1112_v62 = vpop.f32.mrf.mxu0 }
 0x135   : >> { %v1842_v1 = vpop.f32.mrf.mxu1  ;;  %v1125_v9 = vadd.f32 %v1112_v62, %v1072_v8  ;;  %v1180_v38 = vadd.f32 %v1830_v41, %v1127_v27  ;;  %v918_v41 = vadd.f32 %v2072_v0, %v908_v18  ;;  %v917_v3 = vadd.f32 %v2072_v0, %v907_v48 }
 0x136   : >> { %v1835_v6 = vpop.f32.mrf.mxu0 }
 0x137   : >> { %v1295_v57 = vpop.f32.mrf.mxu1  ;;  %v1232_v61 = vadd.f32 %v1835_v6, %v1179_v25  ;;  %v1178_v40 = vadd.f32 %v1165_v46, %v1125_v9  ;;  %v922_v60 = vmax.f32 %v918_v41, 0.0  ;;  %v921_v5 = vmax.f32 %v917_v3, 0.0 }
 0x138   : >> { %v1215_v59 = vpop.f32.mrf.mxu0 }
 0x139   : >> { %v1853_v10 = vpop.f32.mrf.mxu1  ;;  %v1230_v36 = vadd.f32 %v1215_v59, %v1177_v17  ;;  %v1309_v37 = vadd.f32 %v1841_v29, %v1232_v61  ;;  %v916_v29 = vadd.f32 %v2072_v0, %v906_v20 }
 0x13a   : >> { %v1836_v63 = vpop.f32.mrf.mxu0 }
 0x13b   : >> { %v1233_v39 = vadd.f32 %v1836_v63, %v1180_v38  ;;  %v1435_v42 = vpop.f32.mrf.mxu1  ;;  %v1307_v44 = vadd.f32 %v1292_v54, %v1230_v36 }
 0x13c   : >> { %v1218_v28 = vpop.f32.mrf.mxu0 }
 0x13d   : >> { %v1231_v15 = vadd.f32 %v1218_v28, %v1178_v40  ;;  %v1310_v46 = vadd.f32 %v1842_v1, %v1233_v39  ;;  %v1854_v14 = vpop.f32.mrf.mxu1  ;;  %v920_v1 = vmax.f32 %v916_v29, 0.0 }
 0x13e   : >> { %v1847_v7 = vpop.f32.mrf.mxu0 }
 0x13f   : >> { %v1386_v43 = vadd.f32 %v1847_v7, %v1309_v37  ;;  %v1308_v54 = vadd.f32 %v1295_v57, %v1231_v15  ;;  %v1438_v55 = vpop.f32.mrf.mxu1  ;;  %v923_v57 = vmax.f32 %v919_v34, 0.0 }
 0x140   : >> { %v1369_v12 = vpop.f32.mrf.mxu0 }
 0x141   : >> { %v1452_v47 = vadd.f32 %v1853_v10, %v1386_v43  ;;  %v1384_v50 = vadd.f32 %v1369_v12, %v1307_v44 }
 0x142   : >> { %v1848_v52 = vpop.f32.mrf.mxu0 }
 0x143   : >> { %v1456_v58 = vadd.f32 %v2072_v0, %v1452_v47  ;;  %v1450_v33 = vadd.f32 %v1435_v42, %v1384_v50  ;;  %v1387_v49 = vadd.f32 %v1848_v52, %v1310_v46 }
 0x144   : >> { %v1372_v19 = vpop.f32.mrf.mxu0 }
 0x145   : >> { %v1460_v51 = vmax.f32 %v1456_v58, 0.0  ;;  %v1454_v53 = vadd.f32 %v2072_v0, %v1450_v33  ;;  %v1453_v56 = vadd.f32 %v1854_v14, %v1387_v49  ;;  %v1385_v62 = vadd.f32 %v1372_v19, %v1308_v54 }
 0x147   : >> { %v1464_v21 = vmax.f32 %v922_v60, %v1460_v51  ;;  %v1458_v30 = vmax.f32 %v1454_v53, 0.0  ;;  %v1457_v23 = vadd.f32 %v2072_v0, %v1453_v56  ;;  %v1451_v6 = vadd.f32 %v1438_v55, %v1385_v62 }
 0x149   : >> { %1468 = vst [vmem:[#allocation2 + $0x10] sm:$0xff] %v1464_v21  ;;  %v1462_v27 = vmax.f32 %v920_v1, %v1458_v30  ;;  %v1461_v8 = vmax.f32 %v1457_v23, 0.0  ;;  %v1455_v25 = vadd.f32 %v2072_v0, %v1451_v6 }
 0x14b   : >> { %1466 = vst [vmem:[#allocation2] sm:$0xff] %v1462_v27  ;;  %v1465_v11 = vmax.f32 %v923_v57, %v1461_v8  ;;  %v1459_v59 = vmax.f32 %v1455_v25, 0.0 }
 0x14d   : >> { %1469 = vst [vmem:[#allocation2 + $0x18] sm:$0xf] %v1465_v11  ;;  %v1463_v9 = vmax.f32 %v921_v5, %v1459_v59 }
 0x14f   : >> { %1467 = vst [vmem:[#allocation2 + $0x8] sm:$0xff] %v1463_v9 }
 0x154   : >> { %v1472_v61 = vld [vmem:[#allocation2 + $0x10] ss:$2 sm:$0x3f]  ;;  %v1476_v17 = vld [vmem:[#allocation2 + $0x11] ss:$2 sm:$0x3f] }
 0x155   : >> { %v1478_v35 = vmax.f32 %v1472_v61, %v1476_v17 }
 0x156   : >> { %v1470_v13 = vld [vmem:[#allocation2] ss:$2 sm:$0xff]  ;;  %v1474_v16 = vld [vmem:[#allocation2 + $0x1] ss:$2 sm:$0xff] }
 0x157   : >> { %v1691_v63 = vpack.c.bf16 %v1478_v35, %v1478_v35  ;;  %v1477_v10 = vmax.f32 %v1470_v13, %v1474_v16  ;;  %205 = sbr.rel (!%p203_p2) target bundleno = 48 (0x30), region = 94 }
 0x159   : >> { %1490 = vst [vmem:[%s1488_s15 + $0x4] sm:$0x7] %v1691_v63  ;;  %v1690_v36 = vpack.c.bf16 %v1477_v10, %v1477_v10 }
 0x15b   : >> { %1489 = vst [vmem:[%s1488_s15] sm:$0xf] %v1690_v36 }
 0x15c PF: > { %s15_s12 = sadd.s32 1, %s1983_s12  }
 0x15d   : > { %p12_p3 = scmp.ge.s32.totalorder %s15_s12, 4  }
 0x15f   :  { %14 = sbr.rel (!%p12_p3) target bundleno = 2 (0x2), region = 105 }
 0x164   :  { %1512 = vsyncpa [#allocation4], 1 }
 0x165   :  { %1514 = vsyncpa [#allocation4 + $0x1], 1 }
 0x166   :  { %1515 = vsyncpa [#allocation6], 1 }

// kernel: forward.4
= control target key start
LH: loop header
LB: loop body
LE: loop exit
PB: predicated region body
PF: predicated region fallthrough
CT: control target
= control target key end

     0   :  { %s2670_s12 = smov 0   ;;  %s3446_s0 = inlined_call_operand.vmem [shape: bf16[2,16,16,128], index: 0, kind: input, shape index: {}]   ;;  %s3447_s1 = inlined_call_operand.vmem [shape: bf16[9,128,128], index: 1, kind: input, shape index: {}]   ;;  %s3448_s2 = inlined_call_operand.vmem [shape: f32[1,128], index: 2, kind: input, shape index: {}]   ;;  %s3449_s3 = inlined_call_operand.vmem [shape: bf16[2,7,7,128], index: 3, kind: output, shape index: {}]  }
   0x1 LB: > { %s1756_s13 = sadd.s32 4294967295, %s2642_s12   ;;  %p1760_p0 = scmp.ge.s32.totalorder %s2642_s12, 1  ;;  %s2642_s12 = sphi %s2670_s12, %s13_s12  }
   0x2   : > { %p137_p1 = scmp.lt.s32.totalorder %s2642_s12, 3 }
   0x4   : > { %p138_p2 = pnand %p1760_p0, %p137_p1 }
   0x5   : > { %p161_p3 = scmp.lt.s32.totalorder (!%p138_p2), %s1756_s13, 1  ;;  %s2693_s24 = smov (!%p138_p2), 0  }
   0x6   : > { %141 = sbr.rel (%p138_p2) target bundleno = 525 (0x20d), region = 32 }
   0xb   : > { %v2681_v0 = vld [vmem:[%s3448_s2] ss:$0 sm:$0xff]  ;;  %s3493_s13 = smov (!%p161_p3, %s1756_s13), 1 }
   0xc   : > { %3464 = vst [vmem:[#allocation3_spill] sm:$0xff] %v2681_v0  ;;  %s2001_s16 = sshll.u32 %s3493_s13, 7  ;;  %s2529_s17 = smul.u32 28, %s3493_s13 }
   0xd   : > { %s2686_s20 = scalar_lea.vmem %s3446_s0, %s2001_s16 }
   0xe   : > { %s2691_s23 = scalar_lea.vmem %s3449_s3, %s2529_s17 }
   0xf LB: >> { %v2701_v1 = vld [vmem:[%s3447_s1 + $0x78] sm:$0xff]   ;;  %v2648_v2 = vmov 0.0   ;;  %v2714_v4 = vld [vmem:[%s3447_s1 + $0x70] sm:$0xff]   ;;  %vm2649_vm0 = vmmov 0   ;;  %v2732_v6 = vld [vmem:[%s3447_s1 + $0x68] sm:$0xff]   ;;  %s2003_s13 = sshll.u32 %s2646_s24, 4  ;;  %s2646_s24 = sphi %s2693_s24, %s178_s24  }
  0x10   : >> { %2169 = vmatprep.subr.bf16.mxu0 %v2648_v2  ;;  %2189 = vmatprep.subr.bf16.mxu1 %v2648_v2  ;;  %v2708_v3 = vld [vmem:[%s3447_s1 + $0x38] sm:$0xff]   ;;  %v2723_v5 = vld [vmem:[%s3447_s1 + $0x30] sm:$0xff]   ;;  %v2739_v7 = vld [vmem:[%s3447_s1 + $0x28] sm:$0xff]   ;;  %s2758_s16 = scalar_lea.vmem %s2686_s20, %s2003_s13  ;;  %vm1674_vm1 = vcmask 1043456   ;;  %vm1675_vm2 = vsmask.f32 3328 }
  0x11   : >> { %2170 = vmatpush3.bf16.msra.mxu0 %v2701_v1  ;;  %2185 = vmatprep.mubr.msk.bf16.mxu0 %vm2649_vm0, %v2648_v2  ;;  %v2746_v8 = vld [vmem:[%s3447_s1 + $0x60] sm:$0xff]   ;;  %v2764_v10 = vld [vmem:[%s3447_s1 + $0x58] sm:$0xff]   ;;  %v2783_v15 = vld [vmem:[%s3447_s1 + $0x50] sm:$0xff]  }
  0x12   : >> { %2190 = vmatpush3.bf16.msra.mxu1 %v2708_v3  ;;  %2171 = vmatprep.subr.bf16.mxu0 %v2648_v2  ;;  %v2754_v9 = vld [vmem:[%s3447_s1 + $0x20] sm:$0xff]   ;;  %v2771_v11 = vld [vmem:[%s3447_s1 + $0x18] sm:$0xff]   ;;  %v2790_v16 = vld [vmem:[%s3447_s1 + $0x10] sm:$0xff]  }
  0x13   : >> { %2191 = vmatprep.subr.bf16.mxu1 %v2648_v2  ;;  %2205 = vmatprep.mubr.msk.bf16.mxu1 %vm2649_vm0, %v2648_v2  ;;  %v183_v12 = vld [vmem:[%s2758_s16] sm:$0xf]  ;;  %v2776_v13 = vld [vmem:[%s2758_s16 + $0x4] sm:$0xf]  ;;  %v2797_v18 = vld [vmem:[%s3447_s1 + $0x48] sm:$0xff]  }
  0x14   : >> { %v1783_v14 = vcombine.low %v183_v12, %v2776_v13  ;;  %v2804_v19 = vld [vmem:[%s3447_s1 + $0x8] sm:$0xff]   ;;  %v2810_v20 = vld [vmem:[%s3447_s1 + $0x40] sm:$0xff]   ;;  %v2826_v27 = vld [vmem:[%s3447_s1 + $0xb8] sm:$0xff]  }
  0x15   : >> { %2172 = vmatpush3.bf16.msra.mxu0 %v2714_v4  ;;  %v2816_v23 = vld [vmem:[%s3447_s1] sm:$0xff]   ;;  %v2833_v28 = vld [vmem:[%s3447_s1 + $0xf8] sm:$0xff]   ;;  %v2840_v29 = vld [vmem:[%s3447_s1 + $0xb0] sm:$0xff]  }
  0x16   : >> { %2192 = vmatpush3.bf16.msra.mxu1 %v2723_v5  ;;  %2173 = vmatprep.subr.bf16.mxu0 %v2648_v2  ;;  %v227_v17 = vshll.u32 %v1783_v14, 16  ;;  %v225_v21 = vshrl.u32 %v1783_v14, 16  ;;  %v184_v24 = vld [vmem:[%s2758_s16 + $0x4] sm:$0x7]  ;;  %v2847_v30 = vld [vmem:[%s3447_s1 + $0xf0] sm:$0xff]   ;;  %v2858_v31 = vld [vmem:[%s3447_s1 + $0xa8] sm:$0xff]  }
  0x17   : >> { %2193 = vmatprep.subr.bf16.mxu1 %v2648_v2  ;;  %v1792_v26 = vcombine.low %v183_v12, %v184_v24  ;;  %v2865_v32 = vld [vmem:[%s3447_s1 + $0xe8] sm:$0xff]   ;;  %v2872_v33 = vld [vmem:[%s3447_s1 + $0xa0] sm:$0xff]   ;;  %v2886_v35 = vld [vmem:[%s3447_s1 + $0x98] sm:$0xff]  }
  0x18   : >> { %v229_v22 = vrot.slane %v227_v17, 1  ;;  %v2879_v34 = vld [vmem:[%s3447_s1 + $0xe0] sm:$0xff]   ;;  %v2893_v36 = vld [vmem:[%s3447_s1 + $0xd8] sm:$0xff]   ;;  %v2900_v37 = vld [vmem:[%s3447_s1 + $0x90] sm:$0xff]  }
  0x19   : >> { %2174 = vmatpush3.bf16.msra.mxu0 %v2732_v6  ;;  %v2907_v38 = vld [vmem:[%s3447_s1 + $0xd0] sm:$0xff]   ;;  %v2913_v39 = vld [vmem:[%s3447_s1 + $0x88] sm:$0xff]   ;;  %v414_v40 = vld [vmem:[%s2758_s16] sm:$0xe] }
  0x1a   : >> { %2194 = vmatpush3.bf16.msra.mxu1 %v2739_v7  ;;  %2175 = vmatprep.subr.bf16.mxu0 %v2648_v2  ;;  %v230_v25 = vor.u32 %v229_v22, %v225_v21  ;;  %v2922_v41 = vld [vmem:[%s3447_s1 + $0xc8] sm:$0xff]   ;;  %v2928_v42 = vld [vmem:[%s3447_s1 + $0x80] sm:$0xff]   ;;  %v1817_v44 = vcombine.low %v414_v40, %v2776_v13  ;;  %v2948_v49 = vld [vmem:[%s3447_s1 + $0x138] sm:$0xff]  }
  0x1b   : >> { %2195 = vmatprep.subr.bf16.mxu1 %v2648_v2  ;;  %v2933_v43 = vld [vmem:[%s3447_s1 + $0xc0] sm:$0xff]   ;;  %v1828_v45 = vld [vmem:[%s2758_s16 + $0x8] sm:$0xf]  ;;  %v1829_v46 = vld [vmem:[%s2758_s16 + $0xc] sm:$0x7] }
  0x1c   : >> { %v435_v47 = vrot.slane %v1817_v44, 1  ;;  %v2943_v48 = vcombine.low %v1828_v45, %v1829_v46  ;;  %v2955_v50 = vld [vmem:[%s3447_s1 + $0x178] sm:$0xff]   ;;  %v2963_v51 = vld [vmem:[%s3447_s1 + $0x130] sm:$0xff]   ;;  %v2981_v53 = vld [vmem:[%s3447_s1 + $0x128] sm:$0xff]  }
  0x1d   : >> { %2176 = vmatpush3.bf16.msra.mxu0 %v2746_v8  ;;  %v2970_v52 = vld [vmem:[%s3447_s1 + $0x170] sm:$0xff]   ;;  %v2988_v54 = vld [vmem:[%s3447_s1 + $0x168] sm:$0xff]   ;;  %v2995_v55 = vld [vmem:[%s3447_s1 + $0x120] sm:$0xff]  }
  0x1e   : >> { %2196 = vmatpush3.bf16.msra.mxu1 %v2754_v9  ;;  %2177 = vmatprep.subr.bf16.mxu0 %v2648_v2  ;;  %v3002_v56 = vld [vmem:[%s3447_s1 + $0x160] sm:$0xff]   ;;  %v1855_v57 = vld [vmem:[%s2758_s16 + $0xc] sm:$0xf]  ;;  %v3010_v58 = vld [vmem:[%s3447_s1 + $0x118] sm:$0xff]  }
  0x1f   : >> { %2197 = vmatprep.subr.bf16.mxu1 %v2648_v2  ;;  %v3017_v59 = vld [vmem:[%s3447_s1 + $0x158] sm:$0xff]   ;;  %v1872_v60 = vcombine.low %v1828_v45, %v1855_v57  ;;  %v3024_v61 = vld [vmem:[%s3447_s1 + $0x110] sm:$0xff]   ;;  %v3038_v12 = vld [vmem:[%s3447_s1 + $0x108] sm:$0xff]  }
  0x20   : >> { %3465 = vst [vmem:[#allocation4_spill] sm:$0xff] %v3017_v59  ;;  %v3031_v62 = vld [vmem:[%s3447_s1 + $0x150] sm:$0xff]   ;;  %v3045_v13 = vld [vmem:[%s3447_s1 + $0x148] sm:$0xff]   ;;  %v3053_v22 = vld [vmem:[%s3447_s1 + $0x100] sm:$0xff]  }
  0x21   : >> { %2178 = vmatpush3.bf16.msra.mxu0 %v2764_v10  ;;  %3466 = vst [vmem:[#allocation5_spill] sm:$0xff] %v3031_v62  ;;  %v672_v63 = vshll.u32 %v1872_v60, 16  ;;  %3467 = vst [vmem:[#allocation6_spill] sm:$0xff] %v3045_v13  ;;  %v1881_v14 = vld [vmem:[%s2758_s16 + $0x8] sm:$0xe]  ;;  %v670_v17 = vshrl.u32 %v1872_v60, 16 }
  0x22   : >> { %2198 = vmatpush3.bf16.msra.mxu1 %v2771_v11  ;;  %2179 = vmatprep.subr.bf16.mxu0 %v2648_v2  ;;  %v1898_v24 = vcombine.low %v1881_v14, %v1855_v57  ;;  %v3071_v44 = vld [vmem:[%s3447_s1 + $0x1b8] sm:$0xff]   ;;  %v3087_v46 = vld [vmem:[%s3447_s1 + $0x1b0] sm:$0xff]   ;;  %v3105_v57 = vld [vmem:[%s3447_s1 + $0x1a8] sm:$0xff]  }
  0x23   : >> { %2199 = vmatprep.subr.bf16.mxu1 %v2648_v2  ;;  %v674_v21 = vrot.slane %v672_v63, 1  ;;  %v3078_v45 = vld [vmem:[%s3447_s1 + $0x1f8] sm:$0xff]   ;;  %v3112_v60 = vld [vmem:[%s3447_s1 + $0x1e8] sm:$0xff]   ;;  %v3119_v63 = vld [vmem:[%s3447_s1 + $0x1a0] sm:$0xff]  }
  0x24   : >> { %v3066_v40 = vrot.slane %v1898_v24, 1  ;;  %3469 = vst [vmem:[#allocation8_spill] sm:$0xff] %v3078_v45  ;;  %3471 = vst [vmem:[#allocation10_spill] sm:$0xff] %v3112_v60  ;;  %v3126_v14 = vld [vmem:[%s3447_s1 + $0x1e0] sm:$0xff]   ;;  %v1909_v24 = vld [vmem:[%s2758_s16 + $0x10] sm:$0xf] }
  0x25   : >> { %2180 = vmatpush3.bf16.msra.mxu0 %v2783_v15  ;;  %3472 = vst [vmem:[#allocation11_spill] sm:$0xff] %v3126_v14  ;;  %v3144_v0 = vld [vmem:[%s2758_s16 + $0x14] sm:$0xf]  ;;  %vm1676_vm3 = vmand %vm1674_vm1, %vm1675_vm2 }
  0x26   : >> { %2200 = vmatpush3.bf16.msra.mxu1 %v2790_v16  ;;  %2181 = vmatprep.subr.bf16.mxu0 %v2648_v2 }
  0x27   : >> { %2201 = vmatprep.subr.bf16.mxu1 %v2648_v2 }
  0x29   : >> { %2182 = vmatpush3.bf16.msra.mxu0 %v2797_v18 }
  0x2a   : >> { %2202 = vmatpush3.bf16.msra.mxu1 %v2804_v19  ;;  %2183 = vmatprep.subr.bf16.mxu0 %v2648_v2 }
  0x2b   : >> { %2203 = vmatprep.subr.bf16.mxu1 %v2648_v2 }
  0x2d   : >> { %2184 = vmatpush3.bf16.msra.mxu0 %v2810_v20 }
  0x2e   : >> { %2204 = vmatpush3.bf16.msra.mxu1 %v2816_v23  ;;  %2209 = vmatprep.subr.bf16.mxu0 %v2648_v2 }
  0x2f   : >> { %2229 = vmatprep.subr.bf16.mxu1 %v2648_v2 }
  0x30   : >> { %2186 = vmatmul.mubr.bf16.vlgmr.msra.gmra.mxu0 %v230_v25  ;;  %v3060_v25 = vld [vmem:[%s3447_s1 + $0x140] sm:$0xff]  }
  0x31   : >> { %2206 = vmatmul.mubr.bf16.vlgmr.msra.gmra.mxu1 %v1792_v26  ;;  %2210 = vmatpush3.bf16.msra.mxu0 %v2826_v27  ;;  %3468 = vst [vmem:[#allocation7_spill] sm:$0xff] %v3060_v25  ;;  %v3063_v26 = vor.u32 %v674_v21, %v670_v17  ;;  %v3133_v17 = vld [vmem:[%s3447_s1 + $0x198] sm:$0xff]  }
  0x32   : >> { %2230 = vmatpush3.bf16.msra.mxu1 %v2833_v28  ;;  %2211 = vmatprep.subr.bf16.mxu0 %v2648_v2  ;;  %3473 = vst [vmem:[#allocation12_spill] sm:$0xff] %v3133_v17  ;;  %v3140_v21 = vld [vmem:[%s3447_s1 + $0x1d8] sm:$0xff]  }
  0x33   : >> { %2231 = vmatprep.subr.bf16.mxu1 %v2648_v2  ;;  %2225 = vmatprep.mubr.msk.bf16.mxu0 %vm2649_vm0, %v2648_v2  ;;  %3474 = vst [vmem:[#allocation13_spill] sm:$0xff] %v3140_v21 }
  0x34   : >> { %2245 = vmatprep.mubr.msk.bf16.mxu1 %vm2649_vm0, %v2648_v2 }
  0x35   : >> { %2212 = vmatpush3.bf16.msra.mxu0 %v2840_v29 }
  0x36   : >> { %2232 = vmatpush3.bf16.msra.mxu1 %v2847_v30  ;;  %2213 = vmatprep.subr.bf16.mxu0 %v2648_v2 }
  0x37   : >> { %2233 = vmatprep.subr.bf16.mxu1 %v2648_v2 }
  0x39   : >> { %2214 = vmatpush3.bf16.msra.mxu0 %v2858_v31 }
  0x3a   : >> { %2234 = vmatpush3.bf16.msra.mxu1 %v2865_v32  ;;  %2215 = vmatprep.subr.bf16.mxu0 %v2648_v2 }
  0x3b   : >> { %2235 = vmatprep.subr.bf16.mxu1 %v2648_v2 }
  0x3d   : >> { %2216 = vmatpush3.bf16.msra.mxu0 %v2872_v33 }
  0x3e   : >> { %2236 = vmatpush3.bf16.msra.mxu1 %v2879_v34  ;;  %2217 = vmatprep.subr.bf16.mxu0 %v2648_v2 }
  0x3f   : >> { %2237 = vmatprep.subr.bf16.mxu1 %v2648_v2 }
  0x41   : >> { %2218 = vmatpush3.bf16.msra.mxu0 %v2886_v35 }
  0x42   : >> { %2238 = vmatpush3.bf16.msra.mxu1 %v2893_v36  ;;  %2219 = vmatprep.subr.bf16.mxu0 %v2648_v2 }
  0x43   : >> { %2239 = vmatprep.subr.bf16.mxu1 %v2648_v2 }
  0x45   : >> { %2220 = vmatpush3.bf16.msra.mxu0 %v2900_v37 }
  0x46   : >> { %2240 = vmatpush3.bf16.msra.mxu1 %v2907_v38  ;;  %2221 = vmatprep.subr.bf16.mxu0 %v2648_v2 }
  0x47   : >> { %2241 = vmatprep.subr.bf16.mxu1 %v2648_v2 }
  0x49   : >> { %2222 = vmatpush3.bf16.msra.mxu0 %v2913_v39 }
  0x4a   : >> { %2242 = vmatpush3.bf16.msra.mxu1 %v2922_v41  ;;  %2223 = vmatprep.subr.bf16.mxu0 %v2648_v2 }
  0x4b   : >> { %2243 = vmatprep.subr.bf16.mxu1 %v2648_v2 }
  0x4d   : >> { %2224 = vmatpush3.bf16.msra.mxu0 %v2928_v42 }
  0x4e   : >> { %2244 = vmatpush3.bf16.msra.mxu1 %v2933_v43  ;;  %2249 = vmatprep.subr.bf16.mxu0 %v2648_v2 }
  0x4f   : >> { %2269 = vmatprep.subr.bf16.mxu1 %v2648_v2 }
  0x50   : >> { %2226 = vmatmul.mubr.bf16.vlgmr.msra.gmra.mxu0 %v435_v47  ;;  %v3094_v47 = vld [vmem:[%s3447_s1 + $0x1f0] sm:$0xff]  }
  0x51   : >> { %2246 = vmatmul.mubr.bf16.vlgmr.msra.gmra.mxu1 %v2943_v48  ;;  %2250 = vmatpush3.bf16.msra.mxu0 %v2948_v49  ;;  %3470 = vst [vmem:[#allocation9_spill] sm:$0xff] %v3094_v47 }
  0x52   : >> { %2270 = vmatpush3.bf16.msra.mxu1 %v2955_v50  ;;  %2251 = vmatprep.subr.bf16.mxu0 %v2648_v2 }
  0x53   : >> { %2271 = vmatprep.subr.bf16.mxu1 %v2648_v2  ;;  %2265 = vmatprep.mubr.msk.bf16.mxu0 %vm2649_vm0, %v2648_v2 }
  0x54   : >> { %2285 = vmatprep.mubr.msk.bf16.mxu1 %vm2649_vm0, %v2648_v2 }
  0x55   : >> { %2252 = vmatpush3.bf16.msra.mxu0 %v2963_v51 }
  0x56   : >> { %2272 = vmatpush3.bf16.msra.mxu1 %v2970_v52  ;;  %2253 = vmatprep.subr.bf16.mxu0 %v2648_v2 }
  0x57   : >> { %2273 = vmatprep.subr.bf16.mxu1 %v2648_v2 }
  0x59   : >> { %2254 = vmatpush3.bf16.msra.mxu0 %v2981_v53 }
  0x5a   : >> { %2274 = vmatpush3.bf16.msra.mxu1 %v2988_v54  ;;  %2255 = vmatprep.subr.bf16.mxu0 %v2648_v2 }
  0x5b   : >> { %2275 = vmatprep.subr.bf16.mxu1 %v2648_v2 }
  0x5d   : >> { %2256 = vmatpush3.bf16.msra.mxu0 %v2995_v55 }
  0x5e   : >> { %2276 = vmatpush3.bf16.msra.mxu1 %v3002_v56  ;;  %2257 = vmatprep.subr.bf16.mxu0 %v2648_v2 }
  0x5f   : >> { %2277 = vmatprep.subr.bf16.mxu1 %v2648_v2 }
  0x61   : >> { %2258 = vmatpush3.bf16.msra.mxu0 %v3010_v58 }
  0x62   : >> { %2278 = vmatpush3.bf16.msra.mxu1 %v3017_v59  ;;  %2259 = vmatprep.subr.bf16.mxu0 %v2648_v2 }
  0x63   : >> { %2279 = vmatprep.subr.bf16.mxu1 %v2648_v2 }
  0x65   : >> { %2260 = vmatpush3.bf16.msra.mxu0 %v3024_v61 }
  0x66   : >> { %2280 = vmatpush3.bf16.msra.mxu1 %v3031_v62  ;;  %2261 = vmatprep.subr.bf16.mxu0 %v2648_v2 }
  0x67   : >> { %2281 = vmatprep.subr.bf16.mxu1 %v2648_v2 }
  0x69   : >> { %2262 = vmatpush3.bf16.msra.mxu0 %v3038_v12 }
  0x6a   : >> { %2282 = vmatpush3.bf16.msra.mxu1 %v3045_v13  ;;  %2263 = vmatprep.subr.bf16.mxu0 %v2648_v2  ;;  %v3180_v13 = vld [vmem:[%s3447_s1 + $0x180] sm:$0xff]  }
  0x6b   : >> { %2283 = vmatprep.subr.bf16.mxu1 %v2648_v2 }
  0x6d   : >> { %2264 = vmatpush3.bf16.msra.mxu0 %v3053_v22 }
  0x6e   : >> { %2284 = vmatpush3.bf16.msra.mxu1 %v3060_v25  ;;  %2289 = vmatprep.subr.bf16.mxu0 %v2648_v2 }
  0x6f   : >> { %2309 = vmatprep.subr.bf16.mxu1 %v2648_v2 }
  0x70   : >> { %2266 = vmatmul.mubr.bf16.vlgmr.msra.gmra.mxu0 %v3063_v26 }
  0x71   : >> { %2286 = vmatmul.mubr.bf16.vlgmr.msra.gmra.mxu1 %v3066_v40  ;;  %2290 = vmatpush3.bf16.msra.mxu0 %v3071_v44 }
  0x72   : >> { %2310 = vmatpush3.bf16.msra.mxu1 %v3078_v45  ;;  %2291 = vmatprep.subr.bf16.mxu0 %v2648_v2  ;;  %v3166_v45 = vld [vmem:[%s3447_s1 + $0x188] sm:$0xff]  }
  0x73   : >> { %2311 = vmatprep.subr.bf16.mxu1 %v2648_v2  ;;  %2305 = vmatprep.mubr.msk.bf16.mxu0 %vm2649_vm0, %v2648_v2  ;;  %3477 = vst [vmem:[#allocation16_spill] sm:$0xff] %v3166_v45 }
  0x74   : >> { %2325 = vmatprep.mubr.msk.bf16.mxu1 %vm2649_vm0, %v2648_v2 }
  0x75   : >> { %2292 = vmatpush3.bf16.msra.mxu0 %v3087_v46 }
  0x76   : >> { %2312 = vmatpush3.bf16.msra.mxu1 %v3094_v47  ;;  %2293 = vmatprep.subr.bf16.mxu0 %v2648_v2  ;;  %v3159_v47 = vld [vmem:[%s3447_s1 + $0x1d0] sm:$0xff]  }
  0x77   : >> { %2313 = vmatprep.subr.bf16.mxu1 %v2648_v2  ;;  %3476 = vst [vmem:[#allocation15_spill] sm:$0xff] %v3159_v47 }
  0x79   : >> { %2294 = vmatpush3.bf16.msra.mxu0 %v3105_v57 }
  0x7a   : >> { %2314 = vmatpush3.bf16.msra.mxu1 %v3112_v60  ;;  %2295 = vmatprep.subr.bf16.mxu0 %v2648_v2  ;;  %v3151_v60 = vld [vmem:[%s3447_s1 + $0x190] sm:$0xff]  }
  0x7b   : >> { %2315 = vmatprep.subr.bf16.mxu1 %v2648_v2  ;;  %3475 = vst [vmem:[#allocation14_spill] sm:$0xff] %v3151_v60 }
  0x7d   : >> { %2296 = vmatpush3.bf16.msra.mxu0 %v3119_v63 }
  0x7e   : >> { %2316 = vmatpush3.bf16.msra.mxu1 %v3126_v14  ;;  %2297 = vmatprep.subr.bf16.mxu0 %v2648_v2  ;;  %v1953_v14 = vcombine.low %v1909_v24, %v3144_v0 }
  0x7f   : >> { %2317 = vmatprep.subr.bf16.mxu1 %v2648_v2 }
  0x80   : >> { %v1026_v25 = vshll.u32 %v1953_v14, 16  ;;  %v1024_v62 = vshrl.u32 %v1953_v14, 16  ;;  %v1962_v14 = vld [vmem:[%s2758_s16 + $0x10] sm:$0xe] }
  0x81   : >> { %2298 = vmatpush3.bf16.msra.mxu0 %v3133_v17 }
  0x82   : >> { %2318 = vmatpush3.bf16.msra.mxu1 %v3140_v21  ;;  %2299 = vmatprep.subr.bf16.mxu0 %v2648_v2  ;;  %v3173_v21 = vld [vmem:[%s3447_s1 + $0x1c8] sm:$0xff]   ;;  %v1028_v17 = vrot.slane %v1026_v25, 1  ;;  %v3199_v25 = vld [vmem:[%s3447_s1 + $0x238] sm:$0xff]  }
  0x83   : >> { %2319 = vmatprep.subr.bf16.mxu1 %v2648_v2 }
  0x84   : >> { %v3194_v59 = vor.u32 %v1028_v17, %v1024_v62  ;;  %v3210_v62 = vld [vmem:[%s3447_s1 + $0x230] sm:$0xff]   ;;  %v3270_v17 = vld [vmem:[%s3447_s1 + $0x200] sm:$0xff]  }
  0x85   : >> { %2300 = vmatpush3.bf16.msra.mxu0 %v3151_v60  ;;  %v1910_v60 = vld [vmem:[%s2758_s16 + $0x14] sm:$0x7] }
  0x86   : >> { %2320 = vmatpush3.bf16.msra.mxu1 %v3159_v47  ;;  %2301 = vmatprep.subr.bf16.mxu0 %v2648_v2  ;;  %v3188_v47 = vld [vmem:[%s3447_s1 + $0x1c0] sm:$0xff]  }
  0x87   : >> { %2321 = vmatprep.subr.bf16.mxu1 %v2648_v2 }
  0x89   : >> { %2302 = vmatpush3.bf16.msra.mxu0 %v3166_v45  ;;  %v3191_v45 = vcombine.low %v1909_v24, %v1910_v60  ;;  %v3223_v60 = vld [vmem:[%s3447_s1 + $0x228] sm:$0xff]  }
  0x8a   : >> { %2322 = vmatpush3.bf16.msra.mxu1 %v3173_v21  ;;  %2303 = vmatprep.subr.bf16.mxu0 %v2648_v2 }
  0x8b   : >> { %2323 = vmatprep.subr.bf16.mxu1 %v2648_v2 }
  0x8d   : >> { %2304 = vmatpush3.bf16.msra.mxu0 %v3180_v13 }
  0x8e   : >> { %2324 = vmatpush3.bf16.msra.mxu1 %v3188_v47  ;;  %2329 = vmatprep.subr.bf16.mxu0 %v2648_v2 }
  0x8f   : >> { %2349 = vmatprep.subr.bf16.mxu1 %v2648_v2 }
  0x90   : >> { %2306 = vmatmul.mubr.bf16.vlgmr.msra.gmra.mxu0 %v3191_v45 }
  0x91   : >> { %2326 = vmatmul.mubr.bf16.vlgmr.msra.gmra.mxu1 %v3194_v59  ;;  %2330 = vmatpush3.bf16.msra.mxu0 %v3199_v25 }
  0x92   : >> { %2350 = vmatpush3.bf16.msra.mxu1 %v2701_v1  ;;  %2331 = vmatprep.subr.bf16.mxu0 %v2648_v2  ;;  %v3232_v1 = vld [vmem:[%s3447_s1 + $0x220] sm:$0xff]  }
  0x93   : >> { %2351 = vmatprep.subr.bf16.mxu1 %v2648_v2  ;;  %2345 = vmatprep.mubr.msk.bf16.mxu0 %vm2649_vm0, %v2648_v2 }
  0x94   : >> { %2365 = vmatprep.mubr.msk.bf16.mxu1 %vm2649_vm0, %v2648_v2 }
  0x95   : >> { %2332 = vmatpush3.bf16.msra.mxu0 %v3210_v62 }
  0x96   : >> { %2352 = vmatpush3.bf16.msra.mxu1 %v2714_v4  ;;  %2333 = vmatprep.subr.bf16.mxu0 %v2648_v2  ;;  %v3241_v4 = vld [vmem:[%s3447_s1 + $0x218] sm:$0xff]  }
  0x97   : >> { %2353 = vmatprep.subr.bf16.mxu1 %v2648_v2 }
  0x99   : >> { %2334 = vmatpush3.bf16.msra.mxu0 %v3223_v60 }
  0x9a   : >> { %2354 = vmatpush3.bf16.msra.mxu1 %v2732_v6  ;;  %2335 = vmatprep.subr.bf16.mxu0 %v2648_v2  ;;  %v3250_v6 = vld [vmem:[%s3447_s1 + $0x210] sm:$0xff]  }
  0x9b   : >> { %2355 = vmatprep.subr.bf16.mxu1 %v2648_v2 }
  0x9d   : >> { %2336 = vmatpush3.bf16.msra.mxu0 %v3232_v1 }
  0x9e   : >> { %2356 = vmatpush3.bf16.msra.mxu1 %v2746_v8  ;;  %2337 = vmatprep.subr.bf16.mxu0 %v2648_v2  ;;  %v3259_v8 = vld [vmem:[%s3447_s1 + $0x208] sm:$0xff]  }
  0x9f   : >> { %2357 = vmatprep.subr.bf16.mxu1 %v2648_v2 }
  0xa1   : >> { %2338 = vmatpush3.bf16.msra.mxu0 %v3241_v4 }
  0xa2   : >> { %2358 = vmatpush3.bf16.msra.mxu1 %v2764_v10  ;;  %2339 = vmatprep.subr.bf16.mxu0 %v2648_v2  ;;  %v1979_v10 = vcombine.low %v1962_v14, %v3144_v0 }
  0xa3   : >> { %2359 = vmatprep.subr.bf16.mxu1 %v2648_v2 }
  0xa5   : >> { %2340 = vmatpush3.bf16.msra.mxu0 %v3250_v6 }
  0xa6   : >> { %2360 = vmatpush3.bf16.msra.mxu1 %v2783_v15  ;;  %2341 = vmatprep.subr.bf16.mxu0 %v2648_v2  ;;  %v3275_v15 = vrot.slane %v1979_v10, 1 }
  0xa7   : >> { %2361 = vmatprep.subr.bf16.mxu1 %v2648_v2 }
  0xa9   : >> { %2342 = vmatpush3.bf16.msra.mxu0 %v3259_v8 }
  0xaa   : >> { %2362 = vmatpush3.bf16.msra.mxu1 %v2797_v18  ;;  %2343 = vmatprep.subr.bf16.mxu0 %v2648_v2 }
  0xab   : >> { %2363 = vmatprep.subr.bf16.mxu1 %v2648_v2 }
  0xad   : >> { %2344 = vmatpush3.bf16.msra.mxu0 %v3270_v17 }
  0xae   : >> { %2364 = vmatpush3.bf16.msra.mxu1 %v2810_v20  ;;  %2369 = vmatprep.subr.bf16.mxu0 %v2648_v2 }
  0xaf   : >> { %2389 = vmatprep.subr.bf16.mxu1 %v2648_v2 }
  0xb0   : >> { %2346 = vmatmul.mubr.bf16.vlgmr.msra.gmra.mxu0 %v3275_v15 }
  0xb1   : >> { %2366 = vmatmul.mubr.bf16.vlgmr.msra.gmra.mxu1 %v3063_v26  ;;  %2370 = vmatpush3.bf16.msra.mxu0 %v2708_v3 }
  0xb2   : >> { %2390 = vmatpush3.bf16.msra.mxu1 %v2826_v27  ;;  %2371 = vmatprep.subr.bf16.mxu0 %v2648_v2  ;;  %v3479_v27 = vld [vmem:[#allocation12_spill] sm:$0xff] }
  0xb3   : >> { %2391 = vmatprep.subr.bf16.mxu1 %v2648_v2  ;;  %2385 = vmatprep.mubr.msk.bf16.mxu0 %vm2649_vm0, %v2648_v2 }
  0xb4   : >> { %2405 = vmatprep.mubr.msk.bf16.mxu1 %vm2649_vm0, %v2648_v2 }
  0xb5   : >> { %2372 = vmatpush3.bf16.msra.mxu0 %v2723_v5 }
  0xb6   : >> { %2392 = vmatpush3.bf16.msra.mxu1 %v2840_v29  ;;  %2373 = vmatprep.subr.bf16.mxu0 %v2648_v2  ;;  %v3481_v29 = vld [vmem:[#allocation14_spill] sm:$0xff] }
  0xb7   : >> { %2393 = vmatprep.subr.bf16.mxu1 %v2648_v2 }
  0xb9   : >> { %2374 = vmatpush3.bf16.msra.mxu0 %v2739_v7 }
  0xba   : >> { %2394 = vmatpush3.bf16.msra.mxu1 %v2858_v31  ;;  %2375 = vmatprep.subr.bf16.mxu0 %v2648_v2  ;;  %v3483_v31 = vld [vmem:[#allocation16_spill] sm:$0xff] }
  0xbb   : >> { %2395 = vmatprep.subr.bf16.mxu1 %v2648_v2 }
  0xbd   : >> { %2376 = vmatpush3.bf16.msra.mxu0 %v2754_v9 }
  0xbe   : >> { %2396 = vmatpush3.bf16.msra.mxu1 %v2872_v33  ;;  %2377 = vmatprep.subr.bf16.mxu0 %v2648_v2  ;;  %v1992_v33 = vld [vmem:[%s2758_s16 + $0x1c] sm:$0x7] }
  0xbf   : >> { %2397 = vmatprep.subr.bf16.mxu1 %v2648_v2 }
  0xc1   : >> { %2378 = vmatpush3.bf16.msra.mxu0 %v2771_v11 }
  0xc2   : >> { %2398 = vmatpush3.bf16.msra.mxu1 %v2886_v35  ;;  %2379 = vmatprep.subr.bf16.mxu0 %v2648_v2 }
  0xc3   : >> { %2399 = vmatprep.subr.bf16.mxu1 %v2648_v2 }
  0xc5   : >> { %2380 = vmatpush3.bf16.msra.mxu0 %v2790_v16 }
  0xc6   : >> { %2400 = vmatpush3.bf16.msra.mxu1 %v2900_v37  ;;  %2381 = vmatprep.subr.bf16.mxu0 %v2648_v2 }
  0xc7   : >> { %2401 = vmatprep.subr.bf16.mxu1 %v2648_v2 }
  0xc9   : >> { %2382 = vmatpush3.bf16.msra.mxu0 %v2804_v19 }
  0xca   : >> { %2402 = vmatpush3.bf16.msra.mxu1 %v2913_v39  ;;  %2383 = vmatprep.subr.bf16.mxu0 %v2648_v2  ;;  %v3485_v39 = vld [vmem:[#allocation8_spill] sm:$0xff] }
  0xcb   : >> { %2403 = vmatprep.subr.bf16.mxu1 %v2648_v2 }
  0xcd   : >> { %2384 = vmatpush3.bf16.msra.mxu0 %v2816_v23  ;;  %v3478_v23 = vld [vmem:[#allocation4_spill] sm:$0xff] }
  0xce   : >> { %2404 = vmatpush3.bf16.msra.mxu1 %v2928_v42  ;;  %2409 = vmatprep.subr.bf16.mxu0 %v2648_v2 }
  0xcf   : >> { %2429 = vmatprep.subr.bf16.mxu1 %v2648_v2 }
  0xd0   : >> { %2386 = vmatmul.mubr.bf16.vlgmr.msra.gmra.mxu0 %v2943_v48 }
  0xd1   : >> { %2406 = vmatmul.mubr.bf16.vlgmr.msra.gmra.mxu1 %v3066_v40  ;;  %2410 = vmatpush3.bf16.msra.mxu0 %v2833_v28  ;;  %v3480_v28 = vld [vmem:[#allocation5_spill] sm:$0xff] }
  0xd2   : >> { %2430 = vmatpush3.bf16.msra.mxu1 %v2948_v49  ;;  %2411 = vmatprep.subr.bf16.mxu0 %v2648_v2 }
  0xd3   : >> { %2431 = vmatprep.subr.bf16.mxu1 %v2648_v2  ;;  %2425 = vmatprep.mubr.msk.bf16.mxu0 %vm2649_vm0, %v2648_v2 }
  0xd4   : >> { %2445 = vmatprep.mubr.msk.bf16.mxu1 %vm2649_vm0, %v2648_v2 }
  0xd5   : >> { %2412 = vmatpush3.bf16.msra.mxu0 %v2847_v30  ;;  %v3482_v30 = vld [vmem:[#allocation6_spill] sm:$0xff] }
  0xd6   : >> { %2432 = vmatpush3.bf16.msra.mxu1 %v2963_v51  ;;  %2413 = vmatprep.subr.bf16.mxu0 %v2648_v2  ;;  %v3486_v51 = vld [vmem:[#allocation9_spill] sm:$0xff] }
  0xd7   : >> { %2433 = vmatprep.subr.bf16.mxu1 %v2648_v2 }
  0xd9   : >> { %2414 = vmatpush3.bf16.msra.mxu0 %v2865_v32  ;;  %v1991_v32 = vld [vmem:[%s2758_s16 + $0x18] sm:$0xf] }
  0xda   : >> { %2434 = vmatpush3.bf16.msra.mxu1 %v2981_v53  ;;  %2415 = vmatprep.subr.bf16.mxu0 %v2648_v2  ;;  %v1993_v35 = vcombine.low %v1991_v32, %v1992_v33 }
  0xdb   : >> { %2435 = vmatprep.subr.bf16.mxu1 %v2648_v2 }
  0xdd   : >> { %2416 = vmatpush3.bf16.msra.mxu0 %v2879_v34  ;;  %v3484_v34 = vld [vmem:[#allocation7_spill] sm:$0xff] }
  0xde   : >> { %2436 = vmatpush3.bf16.msra.mxu1 %v2995_v55  ;;  %2417 = vmatprep.subr.bf16.mxu0 %v2648_v2  ;;  %v3487_v55 = vld [vmem:[#allocation10_spill] sm:$0xff] }
  0xdf   : >> { %2437 = vmatprep.subr.bf16.mxu1 %v2648_v2 }
  0xe1   : >> { %2418 = vmatpush3.bf16.msra.mxu0 %v2893_v36 }
  0xe2   : >> { %2438 = vmatpush3.bf16.msra.mxu1 %v3010_v58  ;;  %2419 = vmatprep.subr.bf16.mxu0 %v2648_v2  ;;  %v3488_v58 = vld [vmem:[#allocation11_spill] sm:$0xff] }
  0xe3   : >> { %2439 = vmatprep.subr.bf16.mxu1 %v2648_v2 }
  0xe5   : >> { %2420 = vmatpush3.bf16.msra.mxu0 %v2907_v38 }
  0xe6   : >> { %2440 = vmatpush3.bf16.msra.mxu1 %v3024_v61  ;;  %2421 = vmatprep.subr.bf16.mxu0 %v2648_v2  ;;  %v3489_v61 = vld [vmem:[#allocation13_spill] sm:$0xff] }
  0xe7   : >> { %2441 = vmatprep.subr.bf16.mxu1 %v2648_v2 }
  0xe9   : >> { %2422 = vmatpush3.bf16.msra.mxu0 %v2922_v41 }
  0xea   : >> { %2442 = vmatpush3.bf16.msra.mxu1 %v3038_v12  ;;  %2423 = vmatprep.subr.bf16.mxu0 %v2648_v2 }
  0xeb   : >> { %2443 = vmatprep.subr.bf16.mxu1 %v2648_v2 }
  0xed   : >> { %2424 = vmatpush3.bf16.msra.mxu0 %v2933_v43 }
  0xee   : >> { %2444 = vmatpush3.bf16.msra.mxu1 %v3053_v22  ;;  %2449 = vmatprep.subr.bf16.mxu0 %v2648_v2  ;;  %v1996_v22 = vld [vmem:[%s2758_s16 + $0x18] sm:$0xe] }
  0xef   : >> { %2469 = vmatprep.subr.bf16.mxu1 %v2648_v2 }
  0xf0   : >> { %v314_v0 = vpop.f32.mrf.mxu0  ;;  %2426 = vmatmul.mubr.bf16.vlgmr.msra.gmra.mxu0 %v3191_v45 }
  0xf1   : >> { %v407_v3 = vpop.f32.mrf.mxu1  ;;  %2446 = vmatmul.mubr.bf16.vlgmr.msra.gmra.mxu1 %v3194_v59  ;;  %2450 = vmatpush3.bf16.msra.mxu0 %v2955_v50 }
  0xf2   : >> { %v408_v5 = vadd.f32 %v407_v3, %v314_v0  ;;  %2470 = vmatpush3.bf16.msra.mxu1 %v3071_v44  ;;  %v2187_v7 = vpop.f32.mrf.mxu0  ;;  %2451 = vmatprep.subr.bf16.mxu0 %v2648_v2 }
  0xf3   : >> { %v2207_v9 = vpop.f32.mrf.mxu1  ;;  %2471 = vmatprep.subr.bf16.mxu1 %v2648_v2  ;;  %2465 = vmatprep.mubr.msk.bf16.mxu0 %vm2649_vm0, %v2648_v2 }
  0xf4   : >> { %v317_v11 = vpop.f32.mrf.mxu0  ;;  %2485 = vmatprep.mubr.msk.bf16.mxu1 %vm2649_vm0, %v2648_v2 }
  0xf5   : >> { %v410_v16 = vpop.f32.mrf.mxu1  ;;  %2452 = vmatpush3.bf16.msra.mxu0 %v2970_v52 }
  0xf6   : >> { %v411_v18 = vadd.f32 %v410_v16, %v317_v11  ;;  %2472 = vmatpush3.bf16.msra.mxu1 %v3087_v46  ;;  %v2188_v19 = vpop.f32.mrf.mxu0  ;;  %2453 = vmatprep.subr.bf16.mxu0 %v2648_v2 }
  0xf7   : >> { %v2208_v20 = vpop.f32.mrf.mxu1  ;;  %2473 = vmatprep.subr.bf16.mxu1 %v2648_v2 }
  0xf9   : >> { %2454 = vmatpush3.bf16.msra.mxu0 %v2988_v54 }
  0xfa   : >> { %2474 = vmatpush3.bf16.msra.mxu1 %v3105_v57  ;;  %2455 = vmatprep.subr.bf16.mxu0 %v2648_v2 }
  0xfb   : >> { %2475 = vmatprep.subr.bf16.mxu1 %v2648_v2 }
  0xfd   : >> { %2456 = vmatpush3.bf16.msra.mxu0 %v3002_v56  ;;  %v1994_v56 = vld [vmem:[%s2758_s16 + $0x1c] sm:$0xf]  ;;  %s1998_s16 = sshll.u32 %s2646_s24, 2  ;;  %s178_s24 = sadd.s32 1, %s2646_s24  }
  0xfe   : >> { %2476 = vmatpush3.bf16.msra.mxu1 %v3119_v63  ;;  %2457 = vmatprep.subr.bf16.mxu0 %v2648_v2  ;;  %v1995_v59 = vcombine.low %v1991_v32, %v1994_v56  ;;  %v1997_v44 = vcombine.low %v1996_v22, %v1994_v56  ;;  %s1673_s11 = scalar_lea.vmem %s2691_s23, %s1998_s16  ;;  %p175_p4 = scmp.ge.s32.totalorder %s178_s24, 7  }
  0xff   : >> { %2477 = vmatprep.subr.bf16.mxu1 %v2648_v2 }
 0x100   : >> { %v1562_v12 = vshll.u32 %v1995_v59, 16  ;;  %v1560_v26 = vshrl.u32 %v1995_v59, 16  ;;  %v1614_v46 = vrot.slane %v1997_v44, 1 }
 0x101   : >> { %2458 = vmatpush3.bf16.msra.mxu0 %v3478_v23 }
 0x102   : >> { %2478 = vmatpush3.bf16.msra.mxu1 %v3479_v27  ;;  %2459 = vmatprep.subr.bf16.mxu0 %v2648_v2  ;;  %v1564_v40 = vrot.slane %v1562_v12, 1 }
 0x103   : >> { %2479 = vmatprep.subr.bf16.mxu1 %v2648_v2 }
 0x104   : >> { %v1565_v45 = vor.u32 %v1564_v40, %v1560_v26 }
 0x105   : >> { %2460 = vmatpush3.bf16.msra.mxu0 %v3480_v28 }
 0x106   : >> { %2480 = vmatpush3.bf16.msra.mxu1 %v3481_v29  ;;  %2461 = vmatprep.subr.bf16.mxu0 %v2648_v2 }
 0x107   : >> { %2481 = vmatprep.subr.bf16.mxu1 %v2648_v2 }
 0x109   : >> { %2462 = vmatpush3.bf16.msra.mxu0 %v3482_v30 }
 0x10a   : >> { %2482 = vmatpush3.bf16.msra.mxu1 %v3483_v31  ;;  %2463 = vmatprep.subr.bf16.mxu0 %v2648_v2 }
 0x10b   : >> { %2483 = vmatprep.subr.bf16.mxu1 %v2648_v2 }
 0x10d   : >> { %2464 = vmatpush3.bf16.msra.mxu0 %v3484_v34 }
 0x10e   : >> { %2484 = vmatpush3.bf16.msra.mxu1 %v3180_v13  ;;  %2489 = vmatprep.subr.bf16.mxu0 %v2648_v2  ;;  %v3490_v13 = vld [vmem:[#allocation15_spill] sm:$0xff] }
 0x10f   : >> { %2509 = vmatprep.subr.bf16.mxu1 %v2648_v2 }
 0x110   : >> { %v519_v36 = vpop.f32.mrf.mxu0  ;;  %2466 = vmatmul.mubr.bf16.vlgmr.msra.gmra.mxu0 %v3275_v15 }
 0x111   : >> { %v526_v37 = vadd.f32 %v519_v36, %v408_v5  ;;  %v639_v38 = vpop.f32.mrf.mxu1  ;;  %2486 = vmatmul.mubr.bf16.vlgmr.msra.gmra.mxu1 %v1993_v35  ;;  %2490 = vmatpush3.bf16.msra.mxu0 %v3485_v39 }
 0x112   : >> { %2510 = vmatpush3.bf16.msra.mxu1 %v3199_v25  ;;  %v2227_v41 = vpop.f32.mrf.mxu0  ;;  %2491 = vmatprep.subr.bf16.mxu0 %v2648_v2 }
 0x113   : >> { %v646_v42 = vadd.f32 %v639_v38, %v526_v37  ;;  %v2247_v43 = vpop.f32.mrf.mxu1  ;;  %2511 = vmatprep.subr.bf16.mxu1 %v2648_v2  ;;  %2505 = vmatprep.mubr.msk.bf16.mxu0 %vm2649_vm0, %v2648_v2 }
 0x114   : >> { %v522_v48 = vpop.f32.mrf.mxu0  ;;  %2525 = vmatprep.mubr.msk.bf16.mxu1 %vm2649_vm0, %v2648_v2 }
 0x115   : >> { %v527_v49 = vadd.f32 %v522_v48, %v411_v18  ;;  %v642_v50 = vpop.f32.mrf.mxu1  ;;  %2492 = vmatpush3.bf16.msra.mxu0 %v3486_v51 }
 0x116   : >> { %2512 = vmatpush3.bf16.msra.mxu1 %v3210_v62  ;;  %v2228_v52 = vpop.f32.mrf.mxu0  ;;  %2493 = vmatprep.subr.bf16.mxu0 %v2648_v2 }
 0x117   : >> { %v647_v53 = vadd.f32 %v642_v50, %v527_v49  ;;  %v2248_v54 = vpop.f32.mrf.mxu1  ;;  %2513 = vmatprep.subr.bf16.mxu1 %v2648_v2 }
 0x119   : >> { %2494 = vmatpush3.bf16.msra.mxu0 %v3487_v55 }
 0x11a   : >> { %2514 = vmatpush3.bf16.msra.mxu1 %v3223_v60  ;;  %2495 = vmatprep.subr.bf16.mxu0 %v2648_v2 }
 0x11b   : >> { %2515 = vmatprep.subr.bf16.mxu1 %v2648_v2 }
 0x11d   : >> { %2496 = vmatpush3.bf16.msra.mxu0 %v3488_v58 }
 0x11e   : >> { %2516 = vmatpush3.bf16.msra.mxu1 %v3232_v1  ;;  %2497 = vmatprep.subr.bf16.mxu0 %v2648_v2 }
 0x11f   : >> { %2517 = vmatprep.subr.bf16.mxu1 %v2648_v2 }
 0x121   : >> { %2498 = vmatpush3.bf16.msra.mxu0 %v3489_v61 }
 0x122   : >> { %2518 = vmatpush3.bf16.msra.mxu1 %v3241_v4  ;;  %2499 = vmatprep.subr.bf16.mxu0 %v2648_v2 }
 0x123   : >> { %2519 = vmatprep.subr.bf16.mxu1 %v2648_v2 }
 0x125   : >> { %2500 = vmatpush3.bf16.msra.mxu0 %v3490_v13 }
 0x126   : >> { %2520 = vmatpush3.bf16.msra.mxu1 %v3250_v6  ;;  %2501 = vmatprep.subr.bf16.mxu0 %v2648_v2 }
 0x127   : >> { %2521 = vmatprep.subr.bf16.mxu1 %v2648_v2 }
 0x129   : >> { %2502 = vmatpush3.bf16.msra.mxu0 %v3173_v21 }
 0x12a   : >> { %2522 = vmatpush3.bf16.msra.mxu1 %v3259_v8  ;;  %2503 = vmatprep.subr.bf16.mxu0 %v2648_v2 }
 0x12b   : >> { %2523 = vmatprep.subr.bf16.mxu1 %v2648_v2 }
 0x12d   : >> { %2504 = vmatpush3.bf16.msra.mxu0 %v3188_v47 }
 0x12e   : >> { %2524 = vmatpush3.bf16.msra.mxu1 %v3270_v17 }
 0x130   : >> { %v759_v57 = vpop.f32.mrf.mxu0  ;;  %2506 = vmatmul.mubr.bf16.vlgmr.msra.gmra.mxu0 %v1565_v45 }
 0x131   : >> { %v766_v63 = vadd.f32 %v759_v57, %v646_v42  ;;  %v873_v24 = vpop.f32.mrf.mxu1  ;;  %2526 = vmatmul.mubr.bf16.vlgmr.msra.gmra.mxu1 %v1614_v46 }
 0x132   : >> { %v2267_v25 = vpop.f32.mrf.mxu0 }
 0x133   : >> { %v880_v21 = vadd.f32 %v873_v24, %v766_v63  ;;  %v2287_v62 = vpop.f32.mrf.mxu1 }
 0x134   : >> { %v762_v60 = vpop.f32.mrf.mxu0 }
 0x135   : >> { %v767_v1 = vadd.f32 %v762_v60, %v647_v53  ;;  %v876_v4 = vpop.f32.mrf.mxu1 }
 0x136   : >> { %v2268_v6 = vpop.f32.mrf.mxu0 }
 0x137   : >> { %v881_v8 = vadd.f32 %v876_v4, %v767_v1  ;;  %v2288_v2 = vpop.f32.mrf.mxu1  ;;  %v3491_v6 = vld [vmem:[#allocation3_spill] sm:$0xff] }
 0x150   : >> { %v993_v14 = vpop.f32.mrf.mxu0 }
 0x151   : >> { %v1000_v10 = vadd.f32 %v993_v14, %v880_v21  ;;  %v1113_v47 = vpop.f32.mrf.mxu1 }
 0x152   : >> { %v2307_v15 = vpop.f32.mrf.mxu0 }
 0x153   : >> { %v1120_v0 = vadd.f32 %v1113_v47, %v1000_v10  ;;  %v2327_v17 = vpop.f32.mrf.mxu1 }
 0x154   : >> { %v996_v3 = vpop.f32.mrf.mxu0 }
 0x155   : >> { %v1001_v5 = vadd.f32 %v996_v3, %v881_v8  ;;  %v1116_v7 = vpop.f32.mrf.mxu1 }
 0x156   : >> { %v2308_v9 = vpop.f32.mrf.mxu0 }
 0x157   : >> { %v1121_v11 = vadd.f32 %v1116_v7, %v1001_v5  ;;  %v2328_v16 = vpop.f32.mrf.mxu1 }
 0x170   : >> { %v1227_v18 = vpop.f32.mrf.mxu0 }
 0x171   : >> { %v1234_v19 = vadd.f32 %v1227_v18, %v1120_v0  ;;  %v1280_v20 = vpop.f32.mrf.mxu1 }
 0x172   : >> { %v2347_v23 = vpop.f32.mrf.mxu0 }
 0x173   : >> { %v2367_v27 = vpop.f32.mrf.mxu1  ;;  %v1242_v8 = vadd.f32 %v3491_v6, %v1234_v19 }
 0x174   : >> { %v1230_v28 = vpop.f32.mrf.mxu0 }
 0x175   : >> { %v1235_v29 = vadd.f32 %v1230_v28, %v1121_v11  ;;  %v1283_v30 = vpop.f32.mrf.mxu1  ;;  %v1244_v5 = vmax.f32 %v1242_v8, 0.0 }
 0x176   : >> { %v2348_v31 = vpop.f32.mrf.mxu0 }
 0x177   : >> { %v2368_v32 = vpop.f32.mrf.mxu1  ;;  %v1243_v7 = vadd.f32 %v3491_v6, %v1235_v29  ;;  %v1677_v29 = vld [vmem:[%s1673_s11] sm:$0xf] }
 0x190   : >> { %v1321_v33 = vpop.f32.mrf.mxu0 }
 0x191   : >> { %v1322_v34 = vadd.f32 %v1321_v33, %v1280_v20  ;;  %v1362_v35 = vpop.f32.mrf.mxu1  ;;  %v1245_v20 = vmax.f32 %v1243_v7, 0.0 }
 0x192   : >> { %v2387_v36 = vpop.f32.mrf.mxu0 }
 0x193   : >> { %v1369_v37 = vadd.f32 %v1362_v35, %v1322_v34  ;;  %v2407_v38 = vpop.f32.mrf.mxu1 }
 0x194   : >> { %v1324_v39 = vpop.f32.mrf.mxu0 }
 0x195   : >> { %v1325_v41 = vadd.f32 %v1324_v39, %v1283_v30  ;;  %v1365_v42 = vpop.f32.mrf.mxu1 }
 0x196   : >> { %v2388_v43 = vpop.f32.mrf.mxu0 }
 0x197   : >> { %v1370_v48 = vadd.f32 %v1365_v42, %v1325_v41  ;;  %v2408_v49 = vpop.f32.mrf.mxu1 }
 0x1b0   : >> { %v1405_v50 = vpop.f32.mrf.mxu0 }
 0x1b1   : >> { %v1448_v51 = vpop.f32.mrf.mxu1  ;;  %v1412_v45 = vadd.f32 %v1405_v50, %v1369_v37 }
 0x1b2   : >> { %v2427_v52 = vpop.f32.mrf.mxu0 }
 0x1b3   : >> { %v2447_v53 = vpop.f32.mrf.mxu1  ;;  %v1455_v46 = vadd.f32 %v1448_v51, %v1412_v45 }
 0x1b4   : >> { %v1408_v54 = vpop.f32.mrf.mxu0 }
 0x1b5   : >> { %v1451_v55 = vpop.f32.mrf.mxu1  ;;  %v1413_v57 = vadd.f32 %v1408_v54, %v1370_v48 }
 0x1b6   : >> { %v2428_v56 = vpop.f32.mrf.mxu0 }
 0x1b7   : >> { %v2448_v58 = vpop.f32.mrf.mxu1  ;;  %v1456_v24 = vadd.f32 %v1451_v55, %v1413_v57 }
 0x1d0   : >> { %v1491_v59 = vpop.f32.mrf.mxu0 }
 0x1d1   : >> { %v1546_v61 = vpop.f32.mrf.mxu1  ;;  %v1498_v63 = vadd.f32 %v1491_v59, %v1455_v46 }
 0x1d2   : >> { %v2467_v12 = vpop.f32.mrf.mxu0 }
 0x1d3   : >> { %v2487_v13 = vpop.f32.mrf.mxu1  ;;  %v1553_v25 = vadd.f32 %v1546_v61, %v1498_v63 }
 0x1d4   : >> { %v1494_v22 = vpop.f32.mrf.mxu0 }
 0x1d5   : >> { %v1549_v26 = vpop.f32.mrf.mxu1  ;;  %v1499_v21 = vadd.f32 %v1494_v22, %v1456_v24 }
 0x1d6   : >> { %v2468_v40 = vpop.f32.mrf.mxu0 }
 0x1d7   : >> { %v2488_v44 = vpop.f32.mrf.mxu1  ;;  %v1554_v2 = vadd.f32 %v1549_v26, %v1499_v21 }
 0x1f0   : >> { %v1601_v62 = vpop.f32.mrf.mxu0 }
 0x1f1   : >> { %v1608_v60 = vadd.f32 %v1601_v62, %v1553_v25  ;;  %v1650_v1 = vpop.f32.mrf.mxu1 }
 0x1f2   : >> { %v2507_v4 = vpop.f32.mrf.mxu0 }
 0x1f3   : >> { %v1657_v14 = vadd.f32 %v1650_v1, %v1608_v60  ;;  %v2527_v10 = vpop.f32.mrf.mxu1 }
 0x1f4   : >> { %v1604_v47 = vpop.f32.mrf.mxu0 }
 0x1f5   : >> { %v1659_v15 = vadd.f32 %v3491_v6, %v1657_v14  ;;  %v1609_v0 = vadd.f32 %v1604_v47, %v1554_v2  ;;  %v1653_v17 = vpop.f32.mrf.mxu1 }
 0x1f6   : >> { %v2508_v3 = vpop.f32.mrf.mxu0 }
 0x1f7   : >> { %v1661_v9 = vmax.f32 %v1659_v15, 0.0  ;;  %v1658_v11 = vadd.f32 %v1653_v17, %v1609_v0  ;;  %v2528_v16 = vpop.f32.mrf.mxu1 }
 0x1f9   : >> { %v1663_v18 = vmax.f32 %v1244_v5, %v1661_v9  ;;  %v1660_v19 = vadd.f32 %v3491_v6, %v1658_v11 }
 0x1fb   : >> { %1665 = vst [vmem:[#allocation2] sm:$0xff] %v1663_v18  ;;  %v1662_v23 = vmax.f32 %v1660_v19, 0.0 }
 0x1fd   : >> { %v1664_v27 = vmax.f32 %v1245_v20, %v1662_v23 }
 0x1ff   : >> { %1666 = vst [vmem:[#allocation2 + $0x8] sm:$0x3f] %v1664_v27 }
 0x206   : >> { %v1667_v28 = vld [vmem:[#allocation2] ss:$2 sm:$0x7f]  ;;  %v1669_v30 = vld [vmem:[#allocation2 + $0x1] ss:$2 sm:$0x7f] }
 0x207   : >> { %v1670_v31 = vmax.f32 %v1667_v28, %v1669_v30 }
 0x208   : > { %177 = sbr.rel (!%p175_p4) target bundleno = 15 (0xf), region = 83 }
 0x209   : >> { %v1671_v32 = vpack.c.bf16 %v1670_v31, %v1670_v31 }
 0x20b   : >> { %v1678_v33 = vsel %vm1676_vm3, %v1671_v32, %v1677_v29 }
 0x20c   : >> { %1679 = vst [vmem:[%s1673_s11] sm:$0xf] %v1678_v33 }
 0x20d PF: > { %s13_s12 = sadd.s32 1, %s2642_s12  }
 0x20e   : > { %p10_p5 = scmp.ge.s32.totalorder %s13_s12, 4  }
 0x210   :  { %12 = sbr.rel (!%p10_p5) target bundleno = 1 (0x1), region = 94 }

// kernel: forward.5
= control target key start
LH: loop header
LB: loop body
LE: loop exit
PB: predicated region body
PF: predicated region fallthrough
CT: control target
= control target key end

     0   :  { %v6169_v1 = vmov 0.0   ;;  %vm6170_vm0 = vmmov 0   ;;  %vm836_vm1 = vcmask 261120   ;;  %v891_v29 = vlaneseq  ;;  %s7563_s0 = inlined_call_operand.vmem [shape: bf16[2,6272], index: 0, kind: input, shape index: {}]   ;;  %s7564_s1 = inlined_call_operand.vmem [shape: bf16[2,32], index: 1, kind: input, shape index: {}]   ;;  %s7565_s2 = inlined_call_operand.vmem [shape: bf16[6272,128], index: 2, kind: input, shape index: {}]   ;;  %s7566_s3 = inlined_call_operand.vmem [shape: bf16[32,128], index: 3, kind: input, shape index: {}]   ;;  %s7567_s4 = inlined_call_operand.vmem [shape: f32[1,128], index: 4, kind: input, shape index: {}]   ;;  %s7568_s5 = inlined_call_operand.vmem [shape: bf16[128,128], index: 5, kind: input, shape index: {}]   ;;  %s7569_s6 = inlined_call_operand.vmem [shape: f32[1,128], index: 6, kind: input, shape index: {}]   ;;  %s7570_s7 = inlined_call_operand.hbm [shape: f32[2,128], index: 7, kind: output, shape index: {}]  }
   0x1   :  { %v5739_v0 = vld [vmem:[%s7566_s3 + $0x8] sm:$0xff]   ;;  %5687 = vmatprep.subr.bf16.mxu0 %v6169_v1  ;;  %v5740_v2 = vld [vmem:[%s7565_s2 + $0x78] sm:$0xff]   ;;  %5691 = vmatprep.mubr.msk.bf16.mxu0 %vm6170_vm0, %v6169_v1  ;;  %v5742_v4 = vld [vmem:[%s7566_s3] sm:$0xff]   ;;  %v6171_v34 = vmov 1966171168  }
   0x2   :  { %5688 = vmatpush3.bf16.msra.mxu0 %v5739_v0  ;;  %v5741_v3 = vld [vmem:[%s7565_s2 + $0x38] sm:$0xff]   ;;  %5141 = vmatprep.subr.bf16.mxu1 %v5740_v2  ;;  %v5743_v5 = vld [vmem:[%s7565_s2 + $0x70] sm:$0xff]   ;;  %v819_v8 = vld [vmem:[%s7564_s1] sm:$0x1]  ;;  %v889_v35 = vunpack.c.l.s4 %v6171_v34  ;;  %v892_v36 = vshrl.u32 %v891_v29, 7 }
   0x3   :  { %5689 = vmatprep.subr.bf16.mxu0 %v6169_v1  ;;  %5142 = vmatpush3.bf16.msra.mxu1 %v5741_v3  ;;  %v5744_v6 = vld [vmem:[%s7565_s2 + $0x30] sm:$0xff]   ;;  %v5745_v7 = vld [vmem:[%s7565_s2 + $0xf8] sm:$0xff]   ;;  %v5746_v9 = vld [vmem:[%s7565_s2 + $0x68] sm:$0xff]  }
   0x4   :  { %5143 = vmatprep.subr.bf16.mxu1 %v5743_v5  ;;  %v5747_v10 = vld [vmem:[%s7565_s2 + $0xb8] sm:$0xff]   ;;  %v5748_v11 = vld [vmem:[%s7565_s2 + $0x28] sm:$0xff]   ;;  %v5749_v12 = vld [vmem:[%s7565_s2 + $0xf0] sm:$0xff]   ;;  %v890_v40 = vunpack.c.0.s8 %v889_v35 }
   0x5   :  { %v5750_v13 = vld [vmem:[%s7565_s2 + $0x60] sm:$0xff]   ;;  %v5751_v14 = vld [vmem:[%s7565_s2 + $0xb0] sm:$0xff]   ;;  %v5753_v16 = vld [vmem:[%s7565_s2 + $0xe8] sm:$0xff]  }
   0x6   :  { %5690 = vmatpush3.bf16.msra.mxu0 %v5742_v4  ;;  %v5752_v15 = vld [vmem:[%s7565_s2 + $0x20] sm:$0xff]   ;;  %v5754_v17 = vld [vmem:[%s7565_s2 + $0x58] sm:$0xff]   ;;  %v5755_v18 = vld [vmem:[%s7565_s2 + $0xa8] sm:$0xff]   ;;  %v6322_v42 = vsub.s32 %v890_v40, %v892_v36 }
   0x7   :  { %5144 = vmatpush3.bf16.msra.mxu1 %v5744_v6  ;;  %5163 = vmatprep.subr.bf16.mxu0 %v5745_v7  ;;  %v5756_v19 = vld [vmem:[%s7565_s2 + $0x18] sm:$0xff]   ;;  %v5757_v20 = vld [vmem:[%s7565_s2 + $0xe0] sm:$0xff]   ;;  %v5758_v21 = vld [vmem:[%s7565_s2 + $0x50] sm:$0xff]  }
   0x8   :  { %5145 = vmatprep.subr.bf16.mxu1 %v5746_v9  ;;  %v5759_v22 = vld [vmem:[%s7565_s2 + $0xa0] sm:$0xff]   ;;  %v5760_v23 = vld [vmem:[%s7565_s2 + $0x10] sm:$0xff]   ;;  %v5761_v24 = vld [vmem:[%s7565_s2 + $0xd8] sm:$0xff]  }
   0x9   :  { %5692 = vmatmul.mubr.msk.bf16.vlgmr.msra.gmra.mxu0 %vm836_vm1, %v819_v8  ;;  %v5762_v25 = vld [vmem:[%s7565_s2 + $0x48] sm:$0xff]   ;;  %v5763_v26 = vld [vmem:[%s7565_s2 + $0x98] sm:$0xff]   ;;  %v5765_v28 = vld [vmem:[%s7565_s2 + $0xd0] sm:$0xff]  }
   0xa   :  { %5164 = vmatpush3.bf16.msra.mxu0 %v5747_v10  ;;  %v5764_v27 = vld [vmem:[%s7565_s2 + $0x8] sm:$0xff]   ;;  %v5766_v30 = vld [vmem:[%s7565_s2 + $0x40] sm:$0xff]   ;;  %v5767_v31 = vld [vmem:[%s7565_s2 + $0x90] sm:$0xff]  }
   0xb   :  { %5146 = vmatpush3.bf16.msra.mxu1 %v5748_v11  ;;  %5165 = vmatprep.subr.bf16.mxu0 %v5749_v12  ;;  %v5768_v32 = vld [vmem:[%s7565_s2] sm:$0xff]   ;;  %v5770_v37 = vld [vmem:[%s7565_s2 + $0xc8] sm:$0xff]   ;;  %v5772_v41 = vld [vmem:[%s7565_s2 + $0x178] sm:$0xff]  }
   0xc   :  { %5147 = vmatprep.subr.bf16.mxu1 %v5750_v13  ;;  %v28_v33 = vld [vmem:[%s7563_s0] sm:$0xff]  ;;  %v5771_v38 = vld [vmem:[%s7565_s2 + $0x88] sm:$0xff]   ;;  %v5778_v48 = vld [vmem:[%s7565_s2 + $0x1f8] sm:$0xff]  }
   0xd   :  { %v887_v39 = vcombine.high %v28_v33, %v28_v33  ;;  %v5774_v43 = vld [vmem:[%s7565_s2 + $0xc0] sm:$0xff]   ;;  %v894_v45 = vrot.slane %v28_v33, %v6322_v42  ;;  %v5773_v52 = vld [vmem:[%s7565_s2 + $0x138] sm:$0xff]   ;;  %v5776_v54 = vld [vmem:[%s7565_s2 + $0x170] sm:$0xff]  }
   0xe   :  { %5166 = vmatpush3.bf16.msra.mxu0 %v5751_v14  ;;  %v5775_v44 = vld [vmem:[%s7565_s2 + $0x80] sm:$0xff]   ;;  %v5780_v57 = vld [vmem:[%s7565_s2 + $0x1b8] sm:$0xff]   ;;  %v5782_v58 = vld [vmem:[%s7565_s2 + $0x1f0] sm:$0xff]  }
   0xf   :  { %5148 = vmatpush3.bf16.msra.mxu1 %v5752_v15  ;;  %5167 = vmatprep.subr.bf16.mxu0 %v5753_v16  ;;  %v6332_v46 = vrot.slane %v887_v39, %v6322_v42  ;;  %v902_v47 = vcombine.high %v894_v45, %v894_v45  ;;  %v910_v50 = vrot.slane %v894_v45, %v6322_v42  ;;  %v5777_v60 = vld [vmem:[%s7565_s2 + $0x130] sm:$0xff]   ;;  %v5779_v61 = vld [vmem:[%s7565_s2 + $0x168] sm:$0xff]   ;;  %v5783_v2 = vld [vmem:[%s7565_s2 + $0x160] sm:$0xff]  }
  0x10   :  { %5149 = vmatprep.subr.bf16.mxu1 %v5754_v17  ;;  %v5784_v62 = vld [vmem:[%s7565_s2 + $0x1b0] sm:$0xff]   ;;  %v5786_v63 = vld [vmem:[%s7565_s2 + $0x1e8] sm:$0xff]   ;;  %v5790_v4 = vld [vmem:[%s7565_s2 + $0x1e0] sm:$0xff]  }
  0x11   :  { %v903_v49 = vcombine.high %v6332_v46, %v6332_v46  ;;  %v924_v51 = vrot.slane %v902_v47, %v6322_v42  ;;  %v932_v53 = vcombine.high %v910_v50, %v910_v50  ;;  %v5781_v0 = vld [vmem:[%s7565_s2 + $0x128] sm:$0xff]   ;;  %v5785_v5 = vld [vmem:[%s7565_s2 + $0x120] sm:$0xff]   ;;  %v5787_v6 = vld [vmem:[%s7565_s2 + $0x158] sm:$0xff]  }
  0x12   :  { %5168 = vmatpush3.bf16.msra.mxu0 %v5755_v18  ;;  %v5788_v3 = vld [vmem:[%s7565_s2 + $0x1a8] sm:$0xff]   ;;  %v5792_v7 = vld [vmem:[%s7565_s2 + $0x1a0] sm:$0xff]   ;;  %v5794_v8 = vld [vmem:[%s7565_s2 + $0x1d8] sm:$0xff]  }
  0x13   :  { %5150 = vmatpush3.bf16.msra.mxu1 %v5756_v19  ;;  %5169 = vmatprep.subr.bf16.mxu0 %v5757_v20  ;;  %v931_v55 = vrot.slane %v903_v49, %v6322_v42  ;;  %v934_v56 = vcombine.high %v924_v51, %v924_v51  ;;  %v5789_v9 = vld [vmem:[%s7565_s2 + $0x118] sm:$0xff]   ;;  %v5791_v10 = vld [vmem:[%s7565_s2 + $0x150] sm:$0xff]   ;;  %v5795_v14 = vld [vmem:[%s7565_s2 + $0x148] sm:$0xff]  }
  0x14   :  { %5151 = vmatprep.subr.bf16.mxu1 %v5758_v21  ;;  %3628 = vmatprep.mubr.bf16.mxu1 %v924_v51  ;;  %v5796_v11 = vld [vmem:[%s7565_s2 + $0x198] sm:$0xff]   ;;  %v5798_v12 = vld [vmem:[%s7565_s2 + $0x1d0] sm:$0xff]   ;;  %v5802_v16 = vld [vmem:[%s7565_s2 + $0x1c8] sm:$0xff]  }
  0x15   :  { %v935_v59 = vcombine.high %v931_v55, %v931_v55  ;;  %3668 = vmatprep.mubr.bf16.mxu0 %v934_v56  ;;  %v5793_v13 = vld [vmem:[%s7565_s2 + $0x110] sm:$0xff]   ;;  %v5797_v17 = vld [vmem:[%s7565_s2 + $0x108] sm:$0xff]   ;;  %v5799_v18 = vld [vmem:[%s7565_s2 + $0x140] sm:$0xff]  }
  0x16   :  { %5170 = vmatpush3.bf16.msra.mxu0 %v5759_v22  ;;  %v5800_v15 = vld [vmem:[%s7565_s2 + $0x190] sm:$0xff]   ;;  %v5803_v19 = vld [vmem:[%s7565_s2 + $0x188] sm:$0xff]   ;;  %v5806_v20 = vld [vmem:[%s7565_s2 + $0x1c0] sm:$0xff]  }
  0x17   :  { %5152 = vmatpush3.bf16.msra.mxu1 %v5760_v23  ;;  %5171 = vmatprep.subr.bf16.mxu0 %v5761_v24  ;;  %v5801_v21 = vld [vmem:[%s7565_s2 + $0x100] sm:$0xff]   ;;  %v5804_v22 = vld [vmem:[%s7565_s2 + $0x278] sm:$0xff]   ;;  %v917_v24 = vrot.slane %v6332_v46, %v6322_v42  ;;  %v5816_v33 = vld [vmem:[%s7565_s2 + $0x2b0] sm:$0xff]  }
  0x18   :  { %5153 = vmatprep.subr.bf16.mxu1 %v5762_v25  ;;  %v5807_v23 = vld [vmem:[%s7565_s2 + $0x180] sm:$0xff]   ;;  %v5810_v25 = vld [vmem:[%s7565_s2 + $0x2f8] sm:$0xff]   ;;  %v5818_v34 = vld [vmem:[%s7565_s2 + $0x2e8] sm:$0xff]  }
  0x19   :  { %v5812_v29 = vld [vmem:[%s7565_s2 + $0x2b8] sm:$0xff]   ;;  %v5813_v35 = vld [vmem:[%s7565_s2 + $0x228] sm:$0xff]   ;;  %v5815_v36 = vld [vmem:[%s7565_s2 + $0x260] sm:$0xff]  }
  0x1a   :  { %5172 = vmatpush3.bf16.msra.mxu0 %v5763_v26  ;;  %v5805_v26 = vld [vmem:[%s7565_s2 + $0x238] sm:$0xff]   ;;  %v5817_v39 = vld [vmem:[%s7565_s2 + $0x220] sm:$0xff]   ;;  %v5823_v45 = vld [vmem:[%s7565_s2 + $0x250] sm:$0xff]  }
  0x1b   :  { %5154 = vmatpush3.bf16.msra.mxu1 %v5764_v27  ;;  %5173 = vmatprep.subr.bf16.mxu0 %v5765_v28  ;;  %v5808_v27 = vld [vmem:[%s7565_s2 + $0x270] sm:$0xff]   ;;  %v933_v28 = vcombine.high %v917_v24, %v917_v24  ;;  %v5819_v40 = vld [vmem:[%s7565_s2 + $0x258] sm:$0xff]   ;;  %v5827_v49 = vld [vmem:[%s7565_s2 + $0x248] sm:$0xff]  }
  0x1c   :  { %5155 = vmatprep.subr.bf16.mxu1 %v5766_v30  ;;  %v5814_v30 = vld [vmem:[%s7565_s2 + $0x2f0] sm:$0xff]   ;;  %v5828_v46 = vld [vmem:[%s7565_s2 + $0x298] sm:$0xff]  }
  0x1d   :  { %v5830_v47 = vld [vmem:[%s7565_s2 + $0x2d0] sm:$0xff]  }
  0x1e   :  { %5174 = vmatpush3.bf16.msra.mxu0 %v5767_v31  ;;  %v5809_v31 = vld [vmem:[%s7565_s2 + $0x230] sm:$0xff]  }
  0x1f   :  { %5156 = vmatpush3.bf16.msra.mxu1 %v5768_v32  ;;  %5175 = vmatprep.subr.bf16.mxu0 %v5770_v37  ;;  %v5811_v32 = vld [vmem:[%s7565_s2 + $0x268] sm:$0xff]   ;;  %v5832_v51 = vld [vmem:[%s7565_s2 + $0x290] sm:$0xff]  }
  0x20   :  { %5185 = vmatprep.subr.bf16.mxu1 %v5772_v41  ;;  %v5820_v37 = vld [vmem:[%s7565_s2 + $0x2a8] sm:$0xff]   ;;  %v5824_v41 = vld [vmem:[%s7565_s2 + $0x2a0] sm:$0xff]  }
  0x22   :  { %5176 = vmatpush3.bf16.msra.mxu0 %v5771_v38  ;;  %3629 = vmatmul.mubr.bf16.vlgmr.msra.gmra.mxu1 %v910_v50  ;;  %v5822_v38 = vld [vmem:[%s7565_s2 + $0x2e0] sm:$0xff]   ;;  %v29_v50 = vld [vmem:[%s7563_s0 + $0x8] sm:$0xff] }
  0x23   :  { %5177 = vmatprep.subr.bf16.mxu0 %v5774_v43  ;;  %5186 = vmatpush3.bf16.msra.mxu1 %v5773_v52  ;;  %v5826_v43 = vld [vmem:[%s7565_s2 + $0x2d8] sm:$0xff]   ;;  %v943_v52 = vrot.slane %v29_v50, %v6322_v42 }
  0x24   :  { %5187 = vmatprep.subr.bf16.mxu1 %v5776_v54  ;;  %3708 = vmatprep.mubr.bf16.mxu1 %v931_v55  ;;  %v5834_v54 = vld [vmem:[%s7565_s2 + $0x2c8] sm:$0xff]  }
  0x25   :  { %v5829_v55 = vld [vmem:[%s7565_s2 + $0x208] sm:$0xff]   ;;  %v951_v56 = vcombine.high %v943_v52, %v943_v52 }
  0x26   :  { %5178 = vmatpush3.bf16.msra.mxu0 %v5775_v44  ;;  %v5821_v44 = vld [vmem:[%s7565_s2 + $0x218] sm:$0xff]  }
  0x27   :  { %5207 = vmatprep.subr.bf16.mxu0 %v5778_v48  ;;  %5188 = vmatpush3.bf16.msra.mxu1 %v5777_v60  ;;  %v5825_v48 = vld [vmem:[%s7565_s2 + $0x210] sm:$0xff]   ;;  %v5835_v60 = vld [vmem:[%s7565_s2 + $0x288] sm:$0xff]  }
  0x28   :  { %5189 = vmatprep.subr.bf16.mxu1 %v5779_v61  ;;  %v5838_v61 = vld [vmem:[%s7565_s2 + $0x2c0] sm:$0xff]  }
  0x29   :  { %3669 = vmatmul.mubr.bf16.vlgmr.msra.gmra.mxu0 %v932_v53  ;;  %v936_v53 = vcombine.high %v29_v50, %v29_v50  ;;  %v5881_v50 = vld [vmem:[%s7565_s2 + $0x4b0] sm:$0xff]  }
  0x2a   :  { %5208 = vmatpush3.bf16.msra.mxu0 %v5780_v57  ;;  %3748 = vmatprep.mubr.bf16.mxu0 %v935_v59  ;;  %v973_v59 = vrot.slane %v951_v56, %v6322_v42  ;;  %v5882_v56 = vld [vmem:[%s7565_s2 + $0x420] sm:$0xff]  }
  0x2b   :  { %5209 = vmatprep.subr.bf16.mxu0 %v5782_v58  ;;  %5190 = vmatpush3.bf16.msra.mxu1 %v5781_v0  ;;  %v6520_v57 = vrot.slane %v936_v53, %v6322_v42  ;;  %v5831_v58 = vld [vmem:[%s7565_s2 + $0x240] sm:$0xff]  }
  0x2c   :  { %5191 = vmatprep.subr.bf16.mxu1 %v5783_v2  ;;  %v5836_v2 = vld [vmem:[%s7565_s2 + $0x378] sm:$0xff]   ;;  %v5880_v53 = vld [vmem:[%s7565_s2 + $0x460] sm:$0xff]  }
  0x2d   :  { %v952_v0 = vcombine.high %v6520_v57, %v6520_v57 }
  0x2e   :  { %5210 = vmatpush3.bf16.msra.mxu0 %v5784_v62  ;;  %v5833_v62 = vld [vmem:[%s7565_s2 + $0x200] sm:$0xff]  }
  0x2f   :  { %5211 = vmatprep.subr.bf16.mxu0 %v5786_v63  ;;  %5192 = vmatpush3.bf16.msra.mxu1 %v5785_v5  ;;  %v983_v63 = vcombine.high %v973_v59, %v973_v59  ;;  %v5842_v5 = vld [vmem:[%s7565_s2 + $0x3f8] sm:$0xff]  }
  0x30   :  { %5193 = vmatprep.subr.bf16.mxu1 %v5787_v6  ;;  %v5837_v6 = vld [vmem:[%s7565_s2 + $0x338] sm:$0xff]  }
  0x32   :  { %5212 = vmatpush3.bf16.msra.mxu0 %v5788_v3  ;;  %v5839_v3 = vld [vmem:[%s7565_s2 + $0x280] sm:$0xff]  }
  0x33   :  { %5213 = vmatprep.subr.bf16.mxu0 %v5790_v4  ;;  %5194 = vmatpush3.bf16.msra.mxu1 %v5789_v9  ;;  %v959_v4 = vrot.slane %v943_v52, %v6322_v42  ;;  %v5878_v52 = vld [vmem:[%s7565_s2 + $0x428] sm:$0xff]  }
  0x34   :  { %5195 = vmatprep.subr.bf16.mxu1 %v5791_v10  ;;  %v5844_v10 = vld [vmem:[%s7565_s2 + $0x3b8] sm:$0xff]  }
  0x35   :  { %v981_v9 = vcombine.high %v959_v4, %v959_v4 }
  0x36   :  { %5214 = vmatpush3.bf16.msra.mxu0 %v5792_v7  ;;  %v980_v7 = vrot.slane %v952_v0, %v6322_v42  ;;  %v5895_v0 = vld [vmem:[%s7565_s2 + $0x4d0] sm:$0xff]  }
  0x37   :  { %5215 = vmatprep.subr.bf16.mxu0 %v5794_v8  ;;  %5196 = vmatpush3.bf16.msra.mxu1 %v5793_v13  ;;  %v5840_v8 = vld [vmem:[%s7565_s2 + $0x370] sm:$0xff]  }
  0x38   :  { %5197 = vmatprep.subr.bf16.mxu1 %v5795_v14  ;;  %v5841_v13 = vld [vmem:[%s7565_s2 + $0x330] sm:$0xff]   ;;  %v5843_v14 = vld [vmem:[%s7565_s2 + $0x368] sm:$0xff]  }
  0x3a   :  { %5216 = vmatpush3.bf16.msra.mxu0 %v5796_v11  ;;  %v984_v11 = vcombine.high %v980_v7, %v980_v7 }
  0x3b   :  { %5217 = vmatprep.subr.bf16.mxu0 %v5798_v12  ;;  %5198 = vmatpush3.bf16.msra.mxu1 %v5797_v17  ;;  %v5846_v12 = vld [vmem:[%s7565_s2 + $0x3f0] sm:$0xff]   ;;  %v5845_v17 = vld [vmem:[%s7565_s2 + $0x328] sm:$0xff]  }
  0x3c   :  { %5199 = vmatprep.subr.bf16.mxu1 %v5799_v18  ;;  %v5847_v18 = vld [vmem:[%s7565_s2 + $0x360] sm:$0xff]  }
  0x3e   :  { %5218 = vmatpush3.bf16.msra.mxu0 %v5800_v15  ;;  %v5848_v15 = vld [vmem:[%s7565_s2 + $0x3b0] sm:$0xff]  }
  0x3f   :  { %5219 = vmatprep.subr.bf16.mxu0 %v5802_v16  ;;  %5200 = vmatpush3.bf16.msra.mxu1 %v5801_v21  ;;  %v5850_v16 = vld [vmem:[%s7565_s2 + $0x3e8] sm:$0xff]   ;;  %v5849_v21 = vld [vmem:[%s7565_s2 + $0x320] sm:$0xff]  }
  0x40   :  { %5229 = vmatprep.subr.bf16.mxu1 %v5804_v22  ;;  %v5851_v22 = vld [vmem:[%s7565_s2 + $0x358] sm:$0xff]  }
  0x42   :  { %5220 = vmatpush3.bf16.msra.mxu0 %v5803_v19  ;;  %3709 = vmatmul.mubr.bf16.vlgmr.msra.gmra.mxu1 %v917_v24  ;;  %v5852_v19 = vld [vmem:[%s7565_s2 + $0x3a8] sm:$0xff]   ;;  %v5858_v24 = vld [vmem:[%s7565_s2 + $0x3d8] sm:$0xff]  }
  0x43   :  { %5221 = vmatprep.subr.bf16.mxu0 %v5806_v20  ;;  %5230 = vmatpush3.bf16.msra.mxu1 %v5805_v26  ;;  %v5854_v20 = vld [vmem:[%s7565_s2 + $0x3e0] sm:$0xff]   ;;  %v5855_v26 = vld [vmem:[%s7565_s2 + $0x350] sm:$0xff]  }
  0x44   :  { %5231 = vmatprep.subr.bf16.mxu1 %v5808_v27  ;;  %3788 = vmatprep.mubr.bf16.mxu1 %v973_v59  ;;  %v5860_v27 = vld [vmem:[%s7565_s2 + $0x398] sm:$0xff]  }
  0x45   :  { %v5891_v59 = vld [vmem:[%s7565_s2 + $0x4d8] sm:$0xff]  }
  0x46   :  { %5222 = vmatpush3.bf16.msra.mxu0 %v5807_v23  ;;  %v5856_v23 = vld [vmem:[%s7565_s2 + $0x3a0] sm:$0xff]  }
  0x47   :  { %5251 = vmatprep.subr.bf16.mxu0 %v5810_v25  ;;  %5232 = vmatpush3.bf16.msra.mxu1 %v5809_v31  ;;  %v5853_v25 = vld [vmem:[%s7565_s2 + $0x318] sm:$0xff]   ;;  %v5864_v31 = vld [vmem:[%s7565_s2 + $0x390] sm:$0xff]  }
  0x48   :  { %5233 = vmatprep.subr.bf16.mxu1 %v5811_v32  ;;  %v5867_v32 = vld [vmem:[%s7565_s2 + $0x3c8] sm:$0xff]  }
  0x49   :  { %3749 = vmatmul.mubr.bf16.vlgmr.msra.gmra.mxu0 %v933_v28  ;;  %v5862_v28 = vld [vmem:[%s7565_s2 + $0x3d0] sm:$0xff]  }
  0x4a   :  { %5252 = vmatpush3.bf16.msra.mxu0 %v5812_v29  ;;  %3828 = vmatprep.mubr.bf16.mxu0 %v983_v63  ;;  %v5857_v29 = vld [vmem:[%s7565_s2 + $0x310] sm:$0xff]   ;;  %v5893_v63 = vld [vmem:[%s7565_s2 + $0x498] sm:$0xff]  }
  0x4b   :  { %5253 = vmatprep.subr.bf16.mxu0 %v5814_v30  ;;  %5234 = vmatpush3.bf16.msra.mxu1 %v5813_v35  ;;  %v5859_v30 = vld [vmem:[%s7565_s2 + $0x348] sm:$0xff]  }
  0x4c   :  { %5235 = vmatprep.subr.bf16.mxu1 %v5815_v36  ;;  %v5868_v35 = vld [vmem:[%s7565_s2 + $0x388] sm:$0xff]   ;;  %v5871_v36 = vld [vmem:[%s7565_s2 + $0x3c0] sm:$0xff]  }
  0x4e   :  { %5254 = vmatpush3.bf16.msra.mxu0 %v5816_v33  ;;  %v5861_v33 = vld [vmem:[%s7565_s2 + $0x308] sm:$0xff]  }
  0x4f   :  { %5255 = vmatprep.subr.bf16.mxu0 %v5818_v34  ;;  %5236 = vmatpush3.bf16.msra.mxu1 %v5817_v39  ;;  %v5863_v34 = vld [vmem:[%s7565_s2 + $0x340] sm:$0xff]  }
  0x50   :  { %5237 = vmatprep.subr.bf16.mxu1 %v5819_v40  ;;  %v5872_v39 = vld [vmem:[%s7565_s2 + $0x380] sm:$0xff]   ;;  %v966_v40 = vrot.slane %v6520_v57, %v6322_v42  ;;  %v5884_v57 = vld [vmem:[%s7565_s2 + $0x458] sm:$0xff]  }
  0x52   :  { %5256 = vmatpush3.bf16.msra.mxu0 %v5820_v37  ;;  %v5865_v37 = vld [vmem:[%s7565_s2 + $0x300] sm:$0xff]  }
  0x53   :  { %5257 = vmatprep.subr.bf16.mxu0 %v5822_v38  ;;  %5238 = vmatpush3.bf16.msra.mxu1 %v5821_v44  ;;  %v5869_v38 = vld [vmem:[%s7565_s2 + $0x478] sm:$0xff]   ;;  %v5873_v44 = vld [vmem:[%s7565_s2 + $0x470] sm:$0xff]  }
  0x54   :  { %5239 = vmatprep.subr.bf16.mxu1 %v5823_v45  ;;  %v982_v45 = vcombine.high %v966_v40, %v966_v40 }
  0x56   :  { %5258 = vmatpush3.bf16.msra.mxu0 %v5824_v41  ;;  %v5875_v41 = vld [vmem:[%s7565_s2 + $0x4f8] sm:$0xff]  }
  0x57   :  { %5259 = vmatprep.subr.bf16.mxu0 %v5826_v43  ;;  %5240 = vmatpush3.bf16.msra.mxu1 %v5825_v48  ;;  %v5870_v43 = vld [vmem:[%s7565_s2 + $0x438] sm:$0xff]   ;;  %v5874_v48 = vld [vmem:[%s7565_s2 + $0x430] sm:$0xff]  }
  0x58   :  { %5241 = vmatprep.subr.bf16.mxu1 %v5827_v49  ;;  %v5876_v49 = vld [vmem:[%s7565_s2 + $0x468] sm:$0xff]  }
  0x5a   :  { %5260 = vmatpush3.bf16.msra.mxu0 %v5828_v46  ;;  %v5877_v46 = vld [vmem:[%s7565_s2 + $0x4b8] sm:$0xff]  }
  0x5b   :  { %5261 = vmatprep.subr.bf16.mxu0 %v5830_v47  ;;  %5242 = vmatpush3.bf16.msra.mxu1 %v5829_v55  ;;  %v5879_v47 = vld [vmem:[%s7565_s2 + $0x4f0] sm:$0xff]   ;;  %v5887_v55 = vld [vmem:[%s7565_s2 + $0x4e0] sm:$0xff]  }
  0x5c   :  { %5243 = vmatprep.subr.bf16.mxu1 %v5831_v58  ;;  %v5889_v58 = vld [vmem:[%s7565_s2 + $0x4a0] sm:$0xff]  }
  0x5e   :  { %5262 = vmatpush3.bf16.msra.mxu0 %v5832_v51  ;;  %v5883_v51 = vld [vmem:[%s7565_s2 + $0x4e8] sm:$0xff]  }
  0x5f   :  { %5263 = vmatprep.subr.bf16.mxu0 %v5834_v54  ;;  %5244 = vmatpush3.bf16.msra.mxu1 %v5833_v62  ;;  %v5885_v54 = vld [vmem:[%s7565_s2 + $0x4a8] sm:$0xff]   ;;  %v5890_v62 = vld [vmem:[%s7565_s2 + $0x410] sm:$0xff]  }
  0x60   :  { %5273 = vmatprep.subr.bf16.mxu1 %v5836_v2  ;;  %v5892_v2 = vld [vmem:[%s7565_s2 + $0x448] sm:$0xff]  }
  0x62   :  { %5264 = vmatpush3.bf16.msra.mxu0 %v5835_v60  ;;  %3789 = vmatmul.mubr.bf16.vlgmr.msra.gmra.mxu1 %v959_v4  ;;  %v5886_v60 = vld [vmem:[%s7565_s2 + $0x418] sm:$0xff]   ;;  %v30_v4 = vld [vmem:[%s7563_s0 + $0x10] sm:$0xff] }
  0x63   :  { %5265 = vmatprep.subr.bf16.mxu0 %v5838_v61  ;;  %5274 = vmatpush3.bf16.msra.mxu1 %v5837_v6  ;;  %v5888_v61 = vld [vmem:[%s7565_s2 + $0x450] sm:$0xff]   ;;  %v5899_v6 = vld [vmem:[%s7565_s2 + $0x4c8] sm:$0xff]  }
  0x64   :  { %3868 = vmatprep.mubr.bf16.mxu1 %v980_v7  ;;  %5275 = vmatprep.subr.bf16.mxu1 %v5840_v8  ;;  %v985_v7 = vcombine.high %v30_v4, %v30_v4  ;;  %v5894_v8 = vld [vmem:[%s7565_s2 + $0x408] sm:$0xff]  }
  0x66   :  { %5266 = vmatpush3.bf16.msra.mxu0 %v5839_v3  ;;  %v5897_v3 = vld [vmem:[%s7565_s2 + $0x490] sm:$0xff]  }
  0x67   :  { %5295 = vmatprep.subr.bf16.mxu0 %v5842_v5  ;;  %5276 = vmatpush3.bf16.msra.mxu1 %v5841_v13  ;;  %v992_v5 = vrot.slane %v30_v4, %v6322_v42 }
  0x68   :  { %5277 = vmatprep.subr.bf16.mxu1 %v5843_v14  ;;  %v5903_v14 = vld [vmem:[%s7565_s2 + $0x4c0] sm:$0xff]  }
  0x69   :  { %3829 = vmatmul.mubr.bf16.vlgmr.msra.gmra.mxu0 %v981_v9  ;;  %v5896_v9 = vld [vmem:[%s7565_s2 + $0x440] sm:$0xff]  }
  0x6a   :  { %5296 = vmatpush3.bf16.msra.mxu0 %v5844_v10  ;;  %3908 = vmatprep.mubr.bf16.mxu0 %v984_v11  ;;  %v1000_v10 = vcombine.high %v992_v5, %v992_v5  ;;  %v6729_v11 = vrot.slane %v985_v7, %v6322_v42 }
  0x6b   :  { %5297 = vmatprep.subr.bf16.mxu0 %v5846_v12  ;;  %5278 = vmatpush3.bf16.msra.mxu1 %v5845_v17  ;;  %v5900_v12 = vld [vmem:[%s7565_s2 + $0x488] sm:$0xff]   ;;  %v5901_v17 = vld [vmem:[%s7565_s2 + $0x578] sm:$0xff]  }
  0x6c   :  { %5279 = vmatprep.subr.bf16.mxu1 %v5847_v18  ;;  %v1022_v13 = vrot.slane %v1000_v10, %v6322_v42  ;;  %v5945_v10 = vld [vmem:[%s7565_s2 + $0x660] sm:$0xff]  }
  0x6e   :  { %5298 = vmatpush3.bf16.msra.mxu0 %v5848_v15  ;;  %v5898_v15 = vld [vmem:[%s7565_s2 + $0x400] sm:$0xff]   ;;  %v1032_v18 = vcombine.high %v1022_v13, %v1022_v13 }
  0x6f   :  { %5299 = vmatprep.subr.bf16.mxu0 %v5850_v16  ;;  %5280 = vmatpush3.bf16.msra.mxu1 %v5849_v21  ;;  %v1001_v16 = vcombine.high %v6729_v11, %v6729_v11  ;;  %v5907_v21 = vld [vmem:[%s7565_s2 + $0x5f8] sm:$0xff]  }
  0x70   :  { %5281 = vmatprep.subr.bf16.mxu1 %v5851_v22  ;;  %v5902_v22 = vld [vmem:[%s7565_s2 + $0x538] sm:$0xff]  }
  0x72   :  { %5300 = vmatpush3.bf16.msra.mxu0 %v5852_v19  ;;  %v5904_v19 = vld [vmem:[%s7565_s2 + $0x480] sm:$0xff]  }
  0x73   :  { %5301 = vmatprep.subr.bf16.mxu0 %v5854_v20  ;;  %5282 = vmatpush3.bf16.msra.mxu1 %v5853_v25  ;;  %v1008_v20 = vrot.slane %v992_v5, %v6322_v42  ;;  %v5941_v5 = vld [vmem:[%s7565_s2 + $0x668] sm:$0xff]  }
  0x74   :  { %5283 = vmatprep.subr.bf16.mxu1 %v5855_v26  ;;  %v5909_v26 = vld [vmem:[%s7565_s2 + $0x5b8] sm:$0xff]  }
  0x75   :  { %v1030_v25 = vcombine.high %v1008_v20, %v1008_v20 }
  0x76   :  { %5302 = vmatpush3.bf16.msra.mxu0 %v5856_v23  ;;  %v1029_v23 = vrot.slane %v1001_v16, %v6322_v42  ;;  %v5956_v16 = vld [vmem:[%s7565_s2 + $0x6d8] sm:$0xff]  }
  0x77   :  { %5303 = vmatprep.subr.bf16.mxu0 %v5858_v24  ;;  %5284 = vmatpush3.bf16.msra.mxu1 %v5857_v29  ;;  %v5905_v24 = vld [vmem:[%s7565_s2 + $0x570] sm:$0xff]  }
  0x78   :  { %5285 = vmatprep.subr.bf16.mxu1 %v5859_v30  ;;  %v5906_v29 = vld [vmem:[%s7565_s2 + $0x530] sm:$0xff]   ;;  %v5908_v30 = vld [vmem:[%s7565_s2 + $0x568] sm:$0xff]  }
  0x7a   :  { %5304 = vmatpush3.bf16.msra.mxu0 %v5860_v27  ;;  %v1033_v27 = vcombine.high %v1029_v23, %v1029_v23 }
  0x7b   :  { %5305 = vmatprep.subr.bf16.mxu0 %v5862_v28  ;;  %5286 = vmatpush3.bf16.msra.mxu1 %v5861_v33  ;;  %v5911_v28 = vld [vmem:[%s7565_s2 + $0x5f0] sm:$0xff]   ;;  %v5910_v33 = vld [vmem:[%s7565_s2 + $0x528] sm:$0xff]  }
  0x7c   :  { %5287 = vmatprep.subr.bf16.mxu1 %v5863_v34  ;;  %v5912_v34 = vld [vmem:[%s7565_s2 + $0x560] sm:$0xff]  }
  0x7e   :  { %5306 = vmatpush3.bf16.msra.mxu0 %v5864_v31  ;;  %v5913_v31 = vld [vmem:[%s7565_s2 + $0x5b0] sm:$0xff]  }
  0x7f   :  { %5307 = vmatprep.subr.bf16.mxu0 %v5867_v32  ;;  %5288 = vmatpush3.bf16.msra.mxu1 %v5865_v37  ;;  %v5915_v32 = vld [vmem:[%s7565_s2 + $0x5e8] sm:$0xff]   ;;  %v5914_v37 = vld [vmem:[%s7565_s2 + $0x520] sm:$0xff]  }
  0x80   :  { %5317 = vmatprep.subr.bf16.mxu1 %v5869_v38  ;;  %v5916_v38 = vld [vmem:[%s7565_s2 + $0x558] sm:$0xff]  }
  0x82   :  { %5308 = vmatpush3.bf16.msra.mxu0 %v5868_v35  ;;  %3869 = vmatmul.mubr.bf16.vlgmr.msra.gmra.mxu1 %v966_v40  ;;  %v5917_v35 = vld [vmem:[%s7565_s2 + $0x5a8] sm:$0xff]   ;;  %v5923_v40 = vld [vmem:[%s7565_s2 + $0x5d8] sm:$0xff]  }
  0x83   :  { %5309 = vmatprep.subr.bf16.mxu0 %v5871_v36  ;;  %5318 = vmatpush3.bf16.msra.mxu1 %v5870_v43  ;;  %v5919_v36 = vld [vmem:[%s7565_s2 + $0x5e0] sm:$0xff]   ;;  %v5920_v43 = vld [vmem:[%s7565_s2 + $0x550] sm:$0xff]  }
  0x84   :  { %5319 = vmatprep.subr.bf16.mxu1 %v5873_v44  ;;  %3948 = vmatprep.mubr.bf16.mxu1 %v1022_v13  ;;  %v5925_v44 = vld [vmem:[%s7565_s2 + $0x598] sm:$0xff]   ;;  %v5947_v13 = vld [vmem:[%s7565_s2 + $0x620] sm:$0xff]  }
  0x86   :  { %5310 = vmatpush3.bf16.msra.mxu0 %v5872_v39  ;;  %v5921_v39 = vld [vmem:[%s7565_s2 + $0x5a0] sm:$0xff]  }
  0x87   :  { %5339 = vmatprep.subr.bf16.mxu0 %v5875_v41  ;;  %5320 = vmatpush3.bf16.msra.mxu1 %v5874_v48  ;;  %v5918_v41 = vld [vmem:[%s7565_s2 + $0x518] sm:$0xff]   ;;  %v5929_v48 = vld [vmem:[%s7565_s2 + $0x590] sm:$0xff]  }
  0x88   :  { %5321 = vmatprep.subr.bf16.mxu1 %v5876_v49  ;;  %v5932_v49 = vld [vmem:[%s7565_s2 + $0x5c8] sm:$0xff]  }
  0x89   :  { %3909 = vmatmul.mubr.bf16.vlgmr.msra.gmra.mxu0 %v982_v45  ;;  %v5927_v45 = vld [vmem:[%s7565_s2 + $0x5d0] sm:$0xff]  }
  0x8a   :  { %5340 = vmatpush3.bf16.msra.mxu0 %v5877_v46  ;;  %3988 = vmatprep.mubr.bf16.mxu0 %v1032_v18  ;;  %v5922_v46 = vld [vmem:[%s7565_s2 + $0x510] sm:$0xff]  }
  0x8b   :  { %5341 = vmatprep.subr.bf16.mxu0 %v5879_v47  ;;  %5322 = vmatpush3.bf16.msra.mxu1 %v5878_v52  ;;  %v5924_v47 = vld [vmem:[%s7565_s2 + $0x548] sm:$0xff]   ;;  %v5953_v18 = vld [vmem:[%s7565_s2 + $0x650] sm:$0xff]  }
  0x8c   :  { %5323 = vmatprep.subr.bf16.mxu1 %v5880_v53  ;;  %v5933_v52 = vld [vmem:[%s7565_s2 + $0x588] sm:$0xff]   ;;  %v5936_v53 = vld [vmem:[%s7565_s2 + $0x5c0] sm:$0xff]  }
  0x8e   :  { %5342 = vmatpush3.bf16.msra.mxu0 %v5881_v50  ;;  %v5926_v50 = vld [vmem:[%s7565_s2 + $0x508] sm:$0xff]  }
  0x8f   :  { %5343 = vmatprep.subr.bf16.mxu0 %v5883_v51  ;;  %5324 = vmatpush3.bf16.msra.mxu1 %v5882_v56  ;;  %v5928_v51 = vld [vmem:[%s7565_s2 + $0x540] sm:$0xff]  }
  0x90   :  { %5325 = vmatprep.subr.bf16.mxu1 %v5884_v57  ;;  %v5937_v56 = vld [vmem:[%s7565_s2 + $0x580] sm:$0xff]   ;;  %v1015_v57 = vrot.slane %v6729_v11, %v6322_v42  ;;  %v5950_v11 = vld [vmem:[%s7565_s2 + $0x6a8] sm:$0xff]  }
  0x92   :  { %5344 = vmatpush3.bf16.msra.mxu0 %v5885_v54  ;;  %v5930_v54 = vld [vmem:[%s7565_s2 + $0x500] sm:$0xff]  }
  0x93   :  { %5345 = vmatprep.subr.bf16.mxu0 %v5887_v55  ;;  %5326 = vmatpush3.bf16.msra.mxu1 %v5886_v60  ;;  %v5934_v55 = vld [vmem:[%s7565_s2 + $0x678] sm:$0xff]  }
  0x94   :  { %5327 = vmatprep.subr.bf16.mxu1 %v5888_v61  ;;  %v5938_v61 = vld [vmem:[%s7565_s2 + $0x670] sm:$0xff]  }
  0x96   :  { %5346 = vmatpush3.bf16.msra.mxu0 %v5889_v58  ;;  %v5940_v58 = vld [vmem:[%s7565_s2 + $0x6f8] sm:$0xff]  }
  0x97   :  { %5347 = vmatprep.subr.bf16.mxu0 %v5891_v59  ;;  %5328 = vmatpush3.bf16.msra.mxu1 %v5890_v62  ;;  %v5935_v59 = vld [vmem:[%s7565_s2 + $0x638] sm:$0xff]   ;;  %v1031_v62 = vcombine.high %v1015_v57, %v1015_v57 }
  0x98   :  { %5329 = vmatprep.subr.bf16.mxu1 %v5892_v2  ;;  %v5944_v2 = vld [vmem:[%s7565_s2 + $0x6f0] sm:$0xff]  }
  0x9a   :  { %5348 = vmatpush3.bf16.msra.mxu0 %v5893_v63  ;;  %v5942_v63 = vld [vmem:[%s7565_s2 + $0x6b8] sm:$0xff]  }
  0x9b   :  { %5349 = vmatprep.subr.bf16.mxu0 %v5895_v0  ;;  %5330 = vmatpush3.bf16.msra.mxu1 %v5894_v8  ;;  %v5948_v8 = vld [vmem:[%s7565_s2 + $0x6e8] sm:$0xff]  }
  0x9c   :  { %5331 = vmatprep.subr.bf16.mxu1 %v5896_v9  ;;  %v5943_v9 = vld [vmem:[%s7565_s2 + $0x628] sm:$0xff]  }
  0x9e   :  { %5350 = vmatpush3.bf16.msra.mxu0 %v5897_v3  ;;  %v5939_v3 = vld [vmem:[%s7565_s2 + $0x630] sm:$0xff]  }
  0x9f   :  { %5351 = vmatprep.subr.bf16.mxu0 %v5899_v6  ;;  %5332 = vmatpush3.bf16.msra.mxu1 %v5898_v15  ;;  %v5946_v6 = vld [vmem:[%s7565_s2 + $0x6b0] sm:$0xff]   ;;  %v5954_v15 = vld [vmem:[%s7565_s2 + $0x6a0] sm:$0xff]  }
  0xa0   :  { %5361 = vmatprep.subr.bf16.mxu1 %v5901_v17  ;;  %v5951_v17 = vld [vmem:[%s7565_s2 + $0x618] sm:$0xff]  }
  0xa2   :  { %5352 = vmatpush3.bf16.msra.mxu0 %v5900_v12  ;;  %3949 = vmatmul.mubr.bf16.vlgmr.msra.gmra.mxu1 %v1008_v20  ;;  %v5952_v12 = vld [vmem:[%s7565_s2 + $0x6e0] sm:$0xff]   ;;  %v5960_v20 = vld [vmem:[%s7565_s2 + $0x6d0] sm:$0xff]  }
  0xa3   :  { %5353 = vmatprep.subr.bf16.mxu0 %v5903_v14  ;;  %5362 = vmatpush3.bf16.msra.mxu1 %v5902_v22  ;;  %v5949_v14 = vld [vmem:[%s7565_s2 + $0x658] sm:$0xff]   ;;  %v5957_v22 = vld [vmem:[%s7565_s2 + $0x648] sm:$0xff]  }
  0xa4   :  { %4028 = vmatprep.mubr.bf16.mxu1 %v1029_v23  ;;  %5363 = vmatprep.subr.bf16.mxu1 %v5905_v24  ;;  %v5962_v23 = vld [vmem:[%s7565_s2 + $0x690] sm:$0xff]   ;;  %v31_v24 = vld [vmem:[%s7563_s0 + $0x18] sm:$0xff] }
  0xa6   :  { %5354 = vmatpush3.bf16.msra.mxu0 %v5904_v19  ;;  %v5958_v19 = vld [vmem:[%s7565_s2 + $0x698] sm:$0xff]  }
  0xa7   :  { %5383 = vmatprep.subr.bf16.mxu0 %v5907_v21  ;;  %5364 = vmatpush3.bf16.msra.mxu1 %v5906_v29  ;;  %v5955_v21 = vld [vmem:[%s7565_s2 + $0x610] sm:$0xff]   ;;  %v5961_v29 = vld [vmem:[%s7565_s2 + $0x640] sm:$0xff]  }
  0xa8   :  { %5365 = vmatprep.subr.bf16.mxu1 %v5908_v30 }
  0xa9   :  { %3989 = vmatmul.mubr.bf16.vlgmr.msra.gmra.mxu0 %v1030_v25  ;;  %v1041_v25 = vrot.slane %v31_v24, %v6322_v42 }
  0xaa   :  { %5384 = vmatpush3.bf16.msra.mxu0 %v5909_v26  ;;  %4068 = vmatprep.mubr.bf16.mxu0 %v1033_v27  ;;  %v5964_v26 = vld [vmem:[%s7565_s2 + $0x6c8] sm:$0xff]   ;;  %v1034_v27 = vcombine.high %v31_v24, %v31_v24  ;;  %v5999_v24 = vld [vmem:[%s7565_s2 + $0x878] sm:$0xff]  }
  0xab   :  { %5385 = vmatprep.subr.bf16.mxu0 %v5911_v28  ;;  %5366 = vmatpush3.bf16.msra.mxu1 %v5910_v33  ;;  %v5959_v28 = vld [vmem:[%s7565_s2 + $0x608] sm:$0xff]   ;;  %v1049_v30 = vcombine.high %v1041_v25, %v1041_v25 }
  0xac   :  { %5367 = vmatprep.subr.bf16.mxu1 %v5912_v34  ;;  %v5968_v34 = vld [vmem:[%s7565_s2 + $0x6c0] sm:$0xff]  }
  0xad   :  { %v1071_v33 = vrot.slane %v1049_v30, %v6322_v42 }
  0xae   :  { %5386 = vmatpush3.bf16.msra.mxu0 %v5913_v31  ;;  %v6937_v31 = vrot.slane %v1034_v27, %v6322_v42  ;;  %v6005_v27 = vld [vmem:[%s7565_s2 + $0x8f8] sm:$0xff]  }
  0xaf   :  { %5387 = vmatprep.subr.bf16.mxu0 %v5915_v32  ;;  %5368 = vmatpush3.bf16.msra.mxu1 %v5914_v37  ;;  %v5965_v32 = vld [vmem:[%s7565_s2 + $0x688] sm:$0xff]   ;;  %v5966_v37 = vld [vmem:[%s7565_s2 + $0x778] sm:$0xff]  }
  0xb0   :  { %5369 = vmatprep.subr.bf16.mxu1 %v5916_v38  ;;  %v1081_v38 = vcombine.high %v1071_v33, %v1071_v33 }
  0xb2   :  { %5388 = vmatpush3.bf16.msra.mxu0 %v5917_v35  ;;  %v5963_v35 = vld [vmem:[%s7565_s2 + $0x600] sm:$0xff]  }
  0xb3   :  { %5389 = vmatprep.subr.bf16.mxu0 %v5919_v36  ;;  %5370 = vmatpush3.bf16.msra.mxu1 %v5918_v41  ;;  %v1050_v36 = vcombine.high %v6937_v31, %v6937_v31  ;;  %v5972_v41 = vld [vmem:[%s7565_s2 + $0x7f8] sm:$0xff]  }
  0xb4   :  { %5371 = vmatprep.subr.bf16.mxu1 %v5920_v43  ;;  %v5967_v43 = vld [vmem:[%s7565_s2 + $0x738] sm:$0xff]  }
  0xb6   :  { %5390 = vmatpush3.bf16.msra.mxu0 %v5921_v39  ;;  %v5969_v39 = vld [vmem:[%s7565_s2 + $0x680] sm:$0xff]  }
  0xb7   :  { %5391 = vmatprep.subr.bf16.mxu0 %v5923_v40  ;;  %5372 = vmatpush3.bf16.msra.mxu1 %v5922_v46  ;;  %v1057_v40 = vrot.slane %v1041_v25, %v6322_v42  ;;  %v6002_v25 = vld [vmem:[%s7565_s2 + $0x780] sm:$0xff]  }
  0xb8   :  { %5373 = vmatprep.subr.bf16.mxu1 %v5924_v47  ;;  %v5974_v47 = vld [vmem:[%s7565_s2 + $0x7b8] sm:$0xff]  }
  0xb9   :  { %v1079_v46 = vcombine.high %v1057_v40, %v1057_v40 }
  0xba   :  { %5392 = vmatpush3.bf16.msra.mxu0 %v5925_v44  ;;  %v1078_v44 = vrot.slane %v1050_v36, %v6322_v42 }
  0xbb   :  { %5393 = vmatprep.subr.bf16.mxu0 %v5927_v45  ;;  %5374 = vmatpush3.bf16.msra.mxu1 %v5926_v50  ;;  %v5970_v45 = vld [vmem:[%s7565_s2 + $0x770] sm:$0xff]  }
  0xbc   :  { %5375 = vmatprep.subr.bf16.mxu1 %v5928_v51  ;;  %v5976_v50 = vld [vmem:[%s7565_s2 + $0x7f0] sm:$0xff]  }
  0xbd   :  { %v5971_v51 = vld [vmem:[%s7565_s2 + $0x730] sm:$0xff]  }
  0xbe   :  { %5394 = vmatpush3.bf16.msra.mxu0 %v5929_v48  ;;  %v1082_v48 = vcombine.high %v1078_v44, %v1078_v44 }
  0xbf   :  { %5395 = vmatprep.subr.bf16.mxu0 %v5932_v49  ;;  %5376 = vmatpush3.bf16.msra.mxu1 %v5930_v54  ;;  %v5973_v54 = vld [vmem:[%s7565_s2 + $0x768] sm:$0xff]  }
  0xc0   :  { %5405 = vmatprep.subr.bf16.mxu1 %v5934_v55 }
  0xc2   :  { %5396 = vmatpush3.bf16.msra.mxu0 %v5933_v52  ;;  %4029 = vmatmul.mubr.bf16.vlgmr.msra.gmra.mxu1 %v1015_v57 }
  0xc3   :  { %5397 = vmatprep.subr.bf16.mxu0 %v5936_v53  ;;  %5406 = vmatpush3.bf16.msra.mxu1 %v5935_v59  ;;  %v5980_v59 = vld [vmem:[%s7565_s2 + $0x7e8] sm:$0xff]  }
  0xc4   :  { %5407 = vmatprep.subr.bf16.mxu1 %v5938_v61  ;;  %4108 = vmatprep.mubr.bf16.mxu1 %v1071_v33  ;;  %v6009_v33 = vld [vmem:[%s7565_s2 + $0x8f0] sm:$0xff]  }
  0xc6   :  { %5398 = vmatpush3.bf16.msra.mxu0 %v5937_v56  ;;  %v5978_v56 = vld [vmem:[%s7565_s2 + $0x7b0] sm:$0xff]  }
  0xc7   :  { %5427 = vmatprep.subr.bf16.mxu0 %v5940_v58  ;;  %5408 = vmatpush3.bf16.msra.mxu1 %v5939_v3 }
  0xc8   :  { %5409 = vmatprep.subr.bf16.mxu1 %v5941_v5  ;;  %v5984_v5 = vld [vmem:[%s7565_s2 + $0x7e0] sm:$0xff]  }
  0xc9   :  { %v6855_v60 = vpop.f32.mrf.mxu0  ;;  %4069 = vmatmul.mubr.bf16.vlgmr.msra.gmra.mxu0 %v1031_v62 }
  0xca   :  { %5428 = vmatpush3.bf16.msra.mxu0 %v5942_v63  ;;  %4148 = vmatprep.mubr.bf16.mxu0 %v1081_v38  ;;  %v5975_v63 = vld [vmem:[%s7565_s2 + $0x728] sm:$0xff]  }
  0xcb   :  { %v5693_v0 = vpop.f32.mrf.mxu0  ;;  %5429 = vmatprep.subr.bf16.mxu0 %v5944_v2  ;;  %5410 = vmatpush3.bf16.msra.mxu1 %v5943_v9  ;;  %v5977_v2 = vld [vmem:[%s7565_s2 + $0x760] sm:$0xff]  }
  0xcc   :  { %5411 = vmatprep.subr.bf16.mxu1 %v5945_v10  ;;  %v5986_v9 = vld [vmem:[%s7565_s2 + $0x7a0] sm:$0xff]   ;;  %v5988_v10 = vld [vmem:[%s7565_s2 + $0x7d8] sm:$0xff]  }
  0xcd   :  { %v877_v4 = vpop.f32.mrf.mxu0 }
  0xce   :  { %5430 = vmatpush3.bf16.msra.mxu0 %v5946_v6 }
  0xcf   :  { %v5694_v7 = vpop.f32.mrf.mxu0  ;;  %5431 = vmatprep.subr.bf16.mxu0 %v5948_v8  ;;  %5412 = vmatpush3.bf16.msra.mxu1 %v5947_v13  ;;  %v5981_v8 = vld [vmem:[%s7565_s2 + $0x758] sm:$0xff]  }
  0xd0   :  { %5413 = vmatprep.subr.bf16.mxu1 %v5949_v14  ;;  %v5979_v7 = vld [vmem:[%s7565_s2 + $0x720] sm:$0xff]   ;;  %v5990_v13 = vld [vmem:[%s7565_s2 + $0x798] sm:$0xff]   ;;  %v5992_v14 = vld [vmem:[%s7565_s2 + $0x7d0] sm:$0xff]  }
  0xd2   :  { %5432 = vmatpush3.bf16.msra.mxu0 %v5950_v11  ;;  %v5983_v11 = vld [vmem:[%s7565_s2 + $0x718] sm:$0xff]  }
  0xd3   :  { %5433 = vmatprep.subr.bf16.mxu0 %v5952_v12  ;;  %5414 = vmatpush3.bf16.msra.mxu1 %v5951_v17  ;;  %v5985_v12 = vld [vmem:[%s7565_s2 + $0x750] sm:$0xff]  }
  0xd4   :  { %5415 = vmatprep.subr.bf16.mxu1 %v5953_v18  ;;  %v5994_v17 = vld [vmem:[%s7565_s2 + $0x790] sm:$0xff]   ;;  %v5997_v18 = vld [vmem:[%s7565_s2 + $0x7c8] sm:$0xff]  }
  0xd6   :  { %5434 = vmatpush3.bf16.msra.mxu0 %v5954_v15  ;;  %v5987_v15 = vld [vmem:[%s7565_s2 + $0x710] sm:$0xff]  }
  0xd7   :  { %5435 = vmatprep.subr.bf16.mxu0 %v5956_v16  ;;  %5416 = vmatpush3.bf16.msra.mxu1 %v5955_v21  ;;  %v5989_v16 = vld [vmem:[%s7565_s2 + $0x748] sm:$0xff]  }
  0xd8   :  { %5417 = vmatprep.subr.bf16.mxu1 %v5957_v22  ;;  %v5998_v21 = vld [vmem:[%s7565_s2 + $0x788] sm:$0xff]   ;;  %v6001_v22 = vld [vmem:[%s7565_s2 + $0x7c0] sm:$0xff]  }
  0xda   :  { %5436 = vmatpush3.bf16.msra.mxu0 %v5958_v19  ;;  %v5991_v19 = vld [vmem:[%s7565_s2 + $0x708] sm:$0xff]  }
  0xdb   :  { %5437 = vmatprep.subr.bf16.mxu0 %v5960_v20  ;;  %5418 = vmatpush3.bf16.msra.mxu1 %v5959_v28  ;;  %v5993_v20 = vld [vmem:[%s7565_s2 + $0x740] sm:$0xff]   ;;  %v6000_v28 = vld [vmem:[%s7565_s2 + $0x838] sm:$0xff]  }
  0xdc   :  { %5419 = vmatprep.subr.bf16.mxu1 %v5961_v29  ;;  %v6003_v29 = vld [vmem:[%s7565_s2 + $0x870] sm:$0xff]  }
  0xde   :  { %5438 = vmatpush3.bf16.msra.mxu0 %v5962_v23  ;;  %v5995_v23 = vld [vmem:[%s7565_s2 + $0x700] sm:$0xff]  }
  0xdf   :  { %5439 = vmatprep.subr.bf16.mxu0 %v5964_v26  ;;  %5420 = vmatpush3.bf16.msra.mxu1 %v5963_v35  ;;  %v1064_v26 = vrot.slane %v6937_v31, %v6322_v42  ;;  %v6007_v31 = vld [vmem:[%s7565_s2 + $0x8b8] sm:$0xff]  }
  0xe0   :  { %5449 = vmatprep.subr.bf16.mxu1 %v5966_v37  ;;  %v6006_v37 = vld [vmem:[%s7565_s2 + $0x868] sm:$0xff]  }
  0xe1   :  { %v1080_v30 = vcombine.high %v1064_v26, %v1064_v26 }
  0xe2   :  { %5440 = vmatpush3.bf16.msra.mxu0 %v5965_v32  ;;  %v5157_v49 = vpop.f32.mrf.mxu1  ;;  %4109 = vmatmul.mubr.bf16.vlgmr.msra.gmra.mxu1 %v1057_v40 }
  0xe3   :  { %5441 = vmatprep.subr.bf16.mxu0 %v5968_v34  ;;  %5450 = vmatpush3.bf16.msra.mxu1 %v5967_v43  ;;  %v6004_v34 = vld [vmem:[%s7565_s2 + $0x830] sm:$0xff]   ;;  %v6013_v43 = vld [vmem:[%s7565_s2 + $0x8e8] sm:$0xff]  }
  0xe4   :  { %4188 = vmatprep.mubr.bf16.mxu1 %v1078_v44  ;;  %v5158_v52 = vpop.f32.mrf.mxu1  ;;  %5451 = vmatprep.subr.bf16.mxu1 %v5970_v45 }
  0xe5   :  { %v5159_v55 = vadd.f32 %v5158_v52, %v5157_v49  ;;  %v6017_v52 = vld [vmem:[%s7565_s2 + $0x8e0] sm:$0xff]  }
  0xe6   :  { %5442 = vmatpush3.bf16.msra.mxu0 %v5969_v39  ;;  %v5160_v57 = vpop.f32.mrf.mxu1  ;;  %v6011_v39 = vld [vmem:[%s7565_s2 + $0x8b0] sm:$0xff]  }
  0xe7   :  { %5471 = vmatprep.subr.bf16.mxu0 %v5972_v41  ;;  %v3631_v61 = vadd.f32 %v5159_v55, %v6855_v60  ;;  %5452 = vmatpush3.bf16.msra.mxu1 %v5971_v51  ;;  %v5982_v60 = vld [vmem:[%s7565_s2 + $0x7a8] sm:$0xff]   ;;  %v6014_v55 = vld [vmem:[%s7565_s2 + $0x858] sm:$0xff]  }
  0xe8   :  { %v5161_v0 = vpop.f32.mrf.mxu1  ;;  %5453 = vmatprep.subr.bf16.mxu1 %v5973_v54  ;;  %v6015_v51 = vld [vmem:[%s7565_s2 + $0x8a8] sm:$0xff]   ;;  %v6012_v54 = vld [vmem:[%s7565_s2 + $0x820] sm:$0xff]   ;;  %v6021_v57 = vld [vmem:[%s7565_s2 + $0x8d8] sm:$0xff]  }
  0xe9   :  { %v5179_v53 = vpop.f32.mrf.mxu0  ;;  %4149 = vmatmul.mubr.bf16.vlgmr.msra.gmra.mxu0 %v1079_v46  ;;  %v6008_v46 = vld [vmem:[%s7565_s2 + $0x828] sm:$0xff]  }
  0xea   :  { %5472 = vmatpush3.bf16.msra.mxu0 %v5974_v47  ;;  %4228 = vmatprep.mubr.bf16.mxu0 %v1082_v48  ;;  %v6010_v48 = vld [vmem:[%s7565_s2 + $0x860] sm:$0xff]   ;;  %v6022_v0 = vld [vmem:[%s7565_s2 + $0x848] sm:$0xff]  }
  0xeb   :  { %v5180_v58 = vpop.f32.mrf.mxu0  ;;  %5473 = vmatprep.subr.bf16.mxu0 %v5976_v50  ;;  %5454 = vmatpush3.bf16.msra.mxu1 %v5975_v63  ;;  %v6020_v63 = vld [vmem:[%s7565_s2 + $0x810] sm:$0xff]  }
  0xec   :  { %v5181_v62 = vadd.f32 %v5180_v58, %v5179_v53  ;;  %5455 = vmatprep.subr.bf16.mxu1 %v5977_v2  ;;  %v6016_v58 = vld [vmem:[%s7565_s2 + $0x818] sm:$0xff]   ;;  %v6027_v2 = vld [vmem:[%s7565_s2 + $0x890] sm:$0xff]  }
  0xed   :  { %v5182_v3 = vpop.f32.mrf.mxu0 }
  0xee   :  { %v6993_v4 = vadd.f32 %v5181_v62, %v3631_v61  ;;  %5474 = vmatpush3.bf16.msra.mxu0 %v5978_v56  ;;  %v6019_v56 = vld [vmem:[%s7565_s2 + $0x8a0] sm:$0xff]   ;;  %v6023_v61 = vld [vmem:[%s7565_s2 + $0x898] sm:$0xff]   ;;  %v6025_v62 = vld [vmem:[%s7565_s2 + $0x8d0] sm:$0xff]  }
  0xef   :  { %5475 = vmatprep.subr.bf16.mxu0 %v5980_v59  ;;  %v5183_v6 = vpop.f32.mrf.mxu0  ;;  %5456 = vmatpush3.bf16.msra.mxu1 %v5979_v7  ;;  %v6018_v59 = vld [vmem:[%s7565_s2 + $0x850] sm:$0xff]   ;;  %v32_v3 = vld [vmem:[%s7563_s0 + $0x20] sm:$0xff] }
  0xf0   :  { %5457 = vmatprep.subr.bf16.mxu1 %v5981_v8  ;;  %v6024_v6 = vld [vmem:[%s7565_s2 + $0x808] sm:$0xff]   ;;  %v6026_v7 = vld [vmem:[%s7565_s2 + $0x840] sm:$0xff]  }
  0xf2   :  { %5476 = vmatpush3.bf16.msra.mxu0 %v5982_v60  ;;  %v6029_v60 = vld [vmem:[%s7565_s2 + $0x8c8] sm:$0xff]  }
  0xf3   :  { %5477 = vmatprep.subr.bf16.mxu0 %v5984_v5  ;;  %5458 = vmatpush3.bf16.msra.mxu1 %v5983_v11  ;;  %v1083_v5 = vcombine.high %v32_v3, %v32_v3 }
  0xf4   :  { %5459 = vmatprep.subr.bf16.mxu1 %v5985_v12  ;;  %v6033_v12 = vld [vmem:[%s7565_s2 + $0x8c0] sm:$0xff]  }
  0xf6   :  { %5478 = vmatpush3.bf16.msra.mxu0 %v5986_v9  ;;  %v7149_v9 = vrot.slane %v1083_v5, %v6322_v42  ;;  %v6070_v5 = vld [vmem:[%s7565_s2 + $0xaf8] sm:$0xff]  }
  0xf7   :  { %5479 = vmatprep.subr.bf16.mxu0 %v5988_v10  ;;  %5460 = vmatpush3.bf16.msra.mxu1 %v5987_v15  ;;  %v6030_v10 = vld [vmem:[%s7565_s2 + $0x888] sm:$0xff]   ;;  %v6031_v15 = vld [vmem:[%s7565_s2 + $0x978] sm:$0xff]  }
  0xf8   :  { %5461 = vmatprep.subr.bf16.mxu1 %v5989_v16 }
  0xfa   :  { %5480 = vmatpush3.bf16.msra.mxu0 %v5990_v13  ;;  %v6028_v13 = vld [vmem:[%s7565_s2 + $0x800] sm:$0xff]  }
  0xfb   :  { %5481 = vmatprep.subr.bf16.mxu0 %v5992_v14  ;;  %5462 = vmatpush3.bf16.msra.mxu1 %v5991_v19  ;;  %v1099_v14 = vcombine.high %v7149_v9, %v7149_v9  ;;  %v6037_v19 = vld [vmem:[%s7565_s2 + $0x9f8] sm:$0xff]  }
  0xfc   :  { %5463 = vmatprep.subr.bf16.mxu1 %v5993_v20  ;;  %v6032_v20 = vld [vmem:[%s7565_s2 + $0x938] sm:$0xff]  }
  0xfe   :  { %5482 = vmatpush3.bf16.msra.mxu0 %v5994_v17  ;;  %v6034_v17 = vld [vmem:[%s7565_s2 + $0x880] sm:$0xff]  }
  0xff   :  { %5483 = vmatprep.subr.bf16.mxu0 %v5997_v18  ;;  %5464 = vmatpush3.bf16.msra.mxu1 %v5995_v23 }
 0x100   :  { %5493 = vmatprep.subr.bf16.mxu1 %v5999_v24  ;;  %v6039_v24 = vld [vmem:[%s7565_s2 + $0x9b8] sm:$0xff]  }
 0x102   :  { %5484 = vmatpush3.bf16.msra.mxu0 %v5998_v21  ;;  %v5201_v32 = vpop.f32.mrf.mxu1  ;;  %4189 = vmatmul.mubr.bf16.vlgmr.msra.gmra.mxu1 %v1064_v26  ;;  %v1127_v21 = vrot.slane %v1099_v14, %v6322_v42 }
 0x103   :  { %5485 = vmatprep.subr.bf16.mxu0 %v6001_v22  ;;  %5494 = vmatpush3.bf16.msra.mxu1 %v6000_v28  ;;  %v6035_v22 = vld [vmem:[%s7565_s2 + $0x970] sm:$0xff]  }
 0x104   :  { %v5202_v35 = vpop.f32.mrf.mxu1  ;;  %5495 = vmatprep.subr.bf16.mxu1 %v6003_v29  ;;  %v6036_v28 = vld [vmem:[%s7565_s2 + $0x930] sm:$0xff]  }
 0x105   :  { %v5203_v38 = vadd.f32 %v5202_v35, %v5201_v32 }
 0x106   :  { %5486 = vmatpush3.bf16.msra.mxu0 %v6002_v25  ;;  %v5204_v40 = vpop.f32.mrf.mxu1  ;;  %v1131_v25 = vcombine.high %v1127_v21, %v1127_v21 }
 0x107   :  { %5515 = vmatprep.subr.bf16.mxu0 %v6005_v27  ;;  %v3711_v44 = vadd.f32 %v5203_v38, %v6993_v4  ;;  %5496 = vmatpush3.bf16.msra.mxu1 %v6004_v34  ;;  %v1090_v4 = vrot.slane %v32_v3, %v6322_v42  ;;  %v6041_v27 = vld [vmem:[%s7565_s2 + $0x9f0] sm:$0xff]   ;;  %v6064_v3 = vld [vmem:[%s7565_s2 + $0xa78] sm:$0xff]  }
 0x108   :  { %v5205_v47 = vpop.f32.mrf.mxu1  ;;  %5497 = vmatprep.subr.bf16.mxu1 %v6006_v37 }
 0x109   :  { %v5223_v36 = vpop.f32.mrf.mxu0  ;;  %4229 = vmatmul.mubr.bf16.vlgmr.msra.gmra.mxu0 %v1080_v30  ;;  %v1098_v8 = vcombine.high %v1090_v4, %v1090_v4  ;;  %v1106_v18 = vrot.slane %v1090_v4, %v6322_v42  ;;  %v6067_v4 = vld [vmem:[%s7565_s2 + $0x980] sm:$0xff]  }
 0x10a   :  { %5516 = vmatpush3.bf16.msra.mxu0 %v6007_v31  ;;  %v6038_v31 = vld [vmem:[%s7565_s2 + $0x968] sm:$0xff]  }
 0x10b   :  { %v5224_v41 = vpop.f32.mrf.mxu0  ;;  %5517 = vmatprep.subr.bf16.mxu0 %v6009_v33  ;;  %5498 = vmatpush3.bf16.msra.mxu1 %v6008_v46  ;;  %v1120_v11 = vrot.slane %v1098_v8, %v6322_v42  ;;  %v1128_v23 = vcombine.high %v1106_v18, %v1106_v18  ;;  %v6043_v33 = vld [vmem:[%s7565_s2 + $0x9b0] sm:$0xff]   ;;  %v6049_v46 = vld [vmem:[%s7565_s2 + $0x9e0] sm:$0xff]  }
 0x10c   :  { %v5225_v45 = vadd.f32 %v5224_v41, %v5223_v36  ;;  %5499 = vmatprep.subr.bf16.mxu1 %v6010_v48  ;;  %v6045_v36 = vld [vmem:[%s7565_s2 + $0x9e8] sm:$0xff]   ;;  %v6042_v41 = vld [vmem:[%s7565_s2 + $0x960] sm:$0xff]  }
 0x10d   :  { %v5226_v49 = vpop.f32.mrf.mxu0  ;;  %4268 = vmatprep.mubr.bf16.mxu1 %v1120_v11  ;;  %v1130_v16 = vcombine.high %v1120_v11, %v1120_v11  ;;  %v6044_v48 = vld [vmem:[%s7565_s2 + $0x920] sm:$0xff]   ;;  %v6074_v11 = vld [vmem:[%s7565_s2 + $0xaf0] sm:$0xff]  }
 0x10e   :  { %v7094_v50 = vadd.f32 %v5225_v45, %v3711_v44  ;;  %5518 = vmatpush3.bf16.msra.mxu0 %v6011_v39  ;;  %v6040_v39 = vld [vmem:[%s7565_s2 + $0x928] sm:$0xff]   ;;  %v6046_v49 = vld [vmem:[%s7565_s2 + $0x958] sm:$0xff]  }
 0x10f   :  { %5519 = vmatprep.subr.bf16.mxu0 %v6013_v43  ;;  %v5227_v53 = vpop.f32.mrf.mxu0  ;;  %5500 = vmatpush3.bf16.msra.mxu1 %v6012_v54  ;;  %v6047_v45 = vld [vmem:[%s7565_s2 + $0x9a8] sm:$0xff]   ;;  %v6055_v54 = vld [vmem:[%s7565_s2 + $0x998] sm:$0xff]  }
 0x110   :  { %5501 = vmatprep.subr.bf16.mxu1 %v6014_v55  ;;  %4308 = vmatprep.mubr.bf16.mxu0 %v1130_v16  ;;  %v6050_v53 = vld [vmem:[%s7565_s2 + $0x950] sm:$0xff]  }
 0x111   :  { %v6057_v55 = vld [vmem:[%s7565_s2 + $0x9d0] sm:$0xff]  }
 0x112   :  { %5520 = vmatpush3.bf16.msra.mxu0 %v6015_v51  ;;  %v6053_v51 = vld [vmem:[%s7565_s2 + $0x9d8] sm:$0xff]  }
 0x113   :  { %5521 = vmatprep.subr.bf16.mxu0 %v6017_v52  ;;  %5502 = vmatpush3.bf16.msra.mxu1 %v6016_v58  ;;  %v6048_v52 = vld [vmem:[%s7565_s2 + $0x918] sm:$0xff]   ;;  %v6059_v58 = vld [vmem:[%s7565_s2 + $0x990] sm:$0xff]  }
 0x114   :  { %5503 = vmatprep.subr.bf16.mxu1 %v6018_v59  ;;  %v6062_v59 = vld [vmem:[%s7565_s2 + $0x9c8] sm:$0xff]  }
 0x116   :  { %5522 = vmatpush3.bf16.msra.mxu0 %v6019_v56  ;;  %v6052_v56 = vld [vmem:[%s7565_s2 + $0x910] sm:$0xff]  }
 0x117   :  { %5523 = vmatprep.subr.bf16.mxu0 %v6021_v57  ;;  %5504 = vmatpush3.bf16.msra.mxu1 %v6020_v63  ;;  %v6054_v57 = vld [vmem:[%s7565_s2 + $0x948] sm:$0xff]  }
 0x118   :  { %5505 = vmatprep.subr.bf16.mxu1 %v6022_v0  ;;  %v6063_v63 = vld [vmem:[%s7565_s2 + $0x988] sm:$0xff]   ;;  %v6066_v0 = vld [vmem:[%s7565_s2 + $0x9c0] sm:$0xff]  }
 0x11a   :  { %5524 = vmatpush3.bf16.msra.mxu0 %v6023_v61  ;;  %v6056_v61 = vld [vmem:[%s7565_s2 + $0x908] sm:$0xff]  }
 0x11b   :  { %5525 = vmatprep.subr.bf16.mxu0 %v6025_v62  ;;  %5506 = vmatpush3.bf16.msra.mxu1 %v6024_v6  ;;  %v6058_v62 = vld [vmem:[%s7565_s2 + $0x940] sm:$0xff]   ;;  %v6065_v6 = vld [vmem:[%s7565_s2 + $0xa38] sm:$0xff]  }
 0x11c   :  { %5507 = vmatprep.subr.bf16.mxu1 %v6026_v7  ;;  %v6068_v7 = vld [vmem:[%s7565_s2 + $0xa70] sm:$0xff]  }
 0x11e   :  { %5526 = vmatpush3.bf16.msra.mxu0 %v6027_v2  ;;  %v6060_v2 = vld [vmem:[%s7565_s2 + $0x900] sm:$0xff]  }
 0x11f   :  { %5527 = vmatprep.subr.bf16.mxu0 %v6029_v60  ;;  %5508 = vmatpush3.bf16.msra.mxu1 %v6028_v13  ;;  %v1113_v60 = vrot.slane %v7149_v9, %v6322_v42  ;;  %v6072_v9 = vld [vmem:[%s7565_s2 + $0xab8] sm:$0xff]  }
 0x120   :  { %5537 = vmatprep.subr.bf16.mxu1 %v6031_v15  ;;  %v6071_v15 = vld [vmem:[%s7565_s2 + $0xa68] sm:$0xff]  }
 0x121   :  { %v1129_v8 = vcombine.high %v1113_v60, %v1113_v60 }
 0x122   :  { %5528 = vmatpush3.bf16.msra.mxu0 %v6030_v10  ;;  %v5245_v26 = vpop.f32.mrf.mxu1  ;;  %4269 = vmatmul.mubr.bf16.vlgmr.msra.gmra.mxu1 %v1106_v18 }
 0x123   :  { %5529 = vmatprep.subr.bf16.mxu0 %v6033_v12  ;;  %5538 = vmatpush3.bf16.msra.mxu1 %v6032_v20  ;;  %v6069_v12 = vld [vmem:[%s7565_s2 + $0xa30] sm:$0xff]   ;;  %v6078_v20 = vld [vmem:[%s7565_s2 + $0xae8] sm:$0xff]  }
 0x124   :  { %4348 = vmatprep.mubr.bf16.mxu1 %v1127_v21  ;;  %v5246_v29 = vpop.f32.mrf.mxu1  ;;  %5539 = vmatprep.subr.bf16.mxu1 %v6035_v22 }
 0x125   :  { %v5247_v32 = vadd.f32 %v5246_v29, %v5245_v26  ;;  %v6082_v29 = vld [vmem:[%s7565_s2 + $0xae0] sm:$0xff]  }
 0x126   :  { %5530 = vmatpush3.bf16.msra.mxu0 %v6034_v17  ;;  %v5248_v34 = vpop.f32.mrf.mxu1  ;;  %v6076_v17 = vld [vmem:[%s7565_s2 + $0xab0] sm:$0xff]  }
 0x127   :  { %5559 = vmatprep.subr.bf16.mxu0 %v6037_v19  ;;  %v3791_v37 = vadd.f32 %v5247_v32, %v7094_v50  ;;  %5540 = vmatpush3.bf16.msra.mxu1 %v6036_v28  ;;  %v6051_v50 = vld [vmem:[%s7565_s2 + $0x9a0] sm:$0xff]   ;;  %v6080_v28 = vld [vmem:[%s7565_s2 + $0xaa8] sm:$0xff]   ;;  %v6079_v32 = vld [vmem:[%s7565_s2 + $0xa58] sm:$0xff]  }
 0x128   :  { %v5249_v40 = vpop.f32.mrf.mxu1  ;;  %5541 = vmatprep.subr.bf16.mxu1 %v6038_v31  ;;  %v6077_v31 = vld [vmem:[%s7565_s2 + $0xa20] sm:$0xff]   ;;  %v6086_v34 = vld [vmem:[%s7565_s2 + $0xad8] sm:$0xff]  }
 0x129   :  { %v5267_v30 = vpop.f32.mrf.mxu0  ;;  %4309 = vmatmul.mubr.bf16.vlgmr.msra.gmra.mxu0 %v1128_v23  ;;  %v6073_v23 = vld [vmem:[%s7565_s2 + $0xa28] sm:$0xff]  }
 0x12a   :  { %5560 = vmatpush3.bf16.msra.mxu0 %v6039_v24  ;;  %4388 = vmatprep.mubr.bf16.mxu0 %v1131_v25  ;;  %v6075_v25 = vld [vmem:[%s7565_s2 + $0xa60] sm:$0xff]   ;;  %v6087_v40 = vld [vmem:[%s7565_s2 + $0xa48] sm:$0xff]  }
 0x12b   :  { %v5268_v35 = vpop.f32.mrf.mxu0  ;;  %5561 = vmatprep.subr.bf16.mxu0 %v6041_v27  ;;  %5542 = vmatpush3.bf16.msra.mxu1 %v6040_v39  ;;  %v6085_v39 = vld [vmem:[%s7565_s2 + $0xa10] sm:$0xff]  }
 0x12c   :  { %v5269_v38 = vadd.f32 %v5268_v35, %v5267_v30  ;;  %5543 = vmatprep.subr.bf16.mxu1 %v6042_v41  ;;  %v6081_v35 = vld [vmem:[%s7565_s2 + $0xa18] sm:$0xff]   ;;  %v6089_v41 = vld [vmem:[%s7565_s2 + $0xa08] sm:$0xff]  }
 0x12d   :  { %v5270_v43 = vpop.f32.mrf.mxu0 }
 0x12e   :  { %v7205_v44 = vadd.f32 %v5269_v38, %v3791_v37  ;;  %5562 = vmatpush3.bf16.msra.mxu0 %v6043_v33  ;;  %v6084_v33 = vld [vmem:[%s7565_s2 + $0xaa0] sm:$0xff]   ;;  %v6088_v37 = vld [vmem:[%s7565_s2 + $0xa98] sm:$0xff]   ;;  %v6090_v38 = vld [vmem:[%s7565_s2 + $0xad0] sm:$0xff]  }
 0x12f   :  { %5563 = vmatprep.subr.bf16.mxu0 %v6045_v36  ;;  %v5271_v47 = vpop.f32.mrf.mxu0  ;;  %5544 = vmatpush3.bf16.msra.mxu1 %v6044_v48  ;;  %v6083_v36 = vld [vmem:[%s7565_s2 + $0xa50] sm:$0xff]   ;;  %v6091_v48 = vld [vmem:[%s7565_s2 + $0xa40] sm:$0xff]  }
 0x130   :  { %5545 = vmatprep.subr.bf16.mxu1 %v6046_v49  ;;  %v6092_v43 = vld [vmem:[%s7565_s2 + $0xa90] sm:$0xff]  }
 0x132   :  { %5564 = vmatpush3.bf16.msra.mxu0 %v6047_v45 }
 0x133   :  { %5565 = vmatprep.subr.bf16.mxu0 %v6049_v46  ;;  %5546 = vmatpush3.bf16.msra.mxu1 %v6048_v52  ;;  %v6094_v46 = vld [vmem:[%s7565_s2 + $0xac8] sm:$0xff]   ;;  %v6093_v52 = vld [vmem:[%s7565_s2 + $0xa00] sm:$0xff]  }
 0x134   :  { %5547 = vmatprep.subr.bf16.mxu1 %v6050_v53 }
 0x136   :  { %5566 = vmatpush3.bf16.msra.mxu0 %v6051_v50  ;;  %v6095_v50 = vld [vmem:[%s7565_s2 + $0xa88] sm:$0xff]  }
 0x137   :  { %5567 = vmatprep.subr.bf16.mxu0 %v6053_v51  ;;  %5548 = vmatpush3.bf16.msra.mxu1 %v6052_v56  ;;  %v6096_v56 = vld [vmem:[%s7565_s2 + $0xb78] sm:$0xff]  }
 0x138   :  { %5549 = vmatprep.subr.bf16.mxu1 %v6054_v57  ;;  %v6099_v57 = vld [vmem:[%s7565_s2 + $0xa80] sm:$0xff]  }
 0x13a   :  { %5568 = vmatpush3.bf16.msra.mxu0 %v6055_v54  ;;  %v6098_v54 = vld [vmem:[%s7565_s2 + $0xac0] sm:$0xff]  }
 0x13b   :  { %5569 = vmatprep.subr.bf16.mxu0 %v6057_v55  ;;  %5550 = vmatpush3.bf16.msra.mxu1 %v6056_v61  ;;  %v6097_v61 = vld [vmem:[%s7565_s2 + $0xb38] sm:$0xff]  }
 0x13c   :  { %5551 = vmatprep.subr.bf16.mxu1 %v6058_v62  ;;  %v6102_v62 = vld [vmem:[%s7565_s2 + $0xbf8] sm:$0xff]  }
 0x13e   :  { %5570 = vmatpush3.bf16.msra.mxu0 %v6059_v58 }
 0x13f   :  { %5571 = vmatprep.subr.bf16.mxu0 %v6062_v59  ;;  %5552 = vmatpush3.bf16.msra.mxu1 %v6060_v2 }
 0x140   :  { %5581 = vmatprep.subr.bf16.mxu1 %v6064_v3  ;;  %v6104_v3 = vld [vmem:[%s7565_s2 + $0xbb8] sm:$0xff]  }
 0x142   :  { %5572 = vmatpush3.bf16.msra.mxu0 %v6063_v63  ;;  %v5289_v10 = vpop.f32.mrf.mxu1  ;;  %4349 = vmatmul.mubr.bf16.vlgmr.msra.gmra.mxu1 %v1113_v60 }
 0x143   :  { %5573 = vmatprep.subr.bf16.mxu0 %v6066_v0  ;;  %5582 = vmatpush3.bf16.msra.mxu1 %v6065_v6  ;;  %v6100_v0 = vld [vmem:[%s7565_s2 + $0xb70] sm:$0xff]  }
 0x144   :  { %v5290_v13 = vpop.f32.mrf.mxu1  ;;  %5583 = vmatprep.subr.bf16.mxu1 %v6068_v7  ;;  %v6106_v6 = vld [vmem:[%s7565_s2 + $0xbf0] sm:$0xff]  }
 0x145   :  { %v5291_v16 = vadd.f32 %v5290_v13, %v5289_v10 }
 0x146   :  { %5574 = vmatpush3.bf16.msra.mxu0 %v6067_v4  ;;  %v5292_v18 = vpop.f32.mrf.mxu1 }
 0x147   :  { %5603 = vmatprep.subr.bf16.mxu0 %v6070_v5  ;;  %v3871_v21 = vadd.f32 %v5291_v16, %v7205_v44  ;;  %5584 = vmatpush3.bf16.msra.mxu1 %v6069_v12  ;;  %v33_v44 = vld [vmem:[%s7563_s0 + $0x28] sm:$0xff]  ;;  %v6101_v5 = vld [vmem:[%s7565_s2 + $0xb30] sm:$0xff]  }
 0x148   :  { %v5293_v24 = vpop.f32.mrf.mxu1  ;;  %5585 = vmatprep.subr.bf16.mxu1 %v6071_v15  ;;  %v1139_v45 = vrot.slane %v33_v44, %v6322_v42  ;;  %v1132_v47 = vcombine.high %v33_v44, %v33_v44 }
 0x149   :  { %v5311_v14 = vpop.f32.mrf.mxu0  ;;  %4389 = vmatmul.mubr.bf16.vlgmr.msra.gmra.mxu0 %v1129_v8 }
 0x14a   :  { %5604 = vmatpush3.bf16.msra.mxu0 %v6072_v9  ;;  %v1147_v49 = vcombine.high %v1139_v45, %v1139_v45  ;;  %v7364_v51 = vrot.slane %v1132_v47, %v6322_v42  ;;  %v1155_v59 = vrot.slane %v1139_v45, %v6322_v42  ;;  %v6103_v9 = vld [vmem:[%s7565_s2 + $0xb68] sm:$0xff]   ;;  %v6129_v45 = vld [vmem:[%s7565_s2 + $0xc38] sm:$0xff]  }
 0x14b   :  { %v5312_v19 = vpop.f32.mrf.mxu0  ;;  %5605 = vmatprep.subr.bf16.mxu0 %v6074_v11  ;;  %5586 = vmatpush3.bf16.msra.mxu1 %v6073_v23  ;;  %v6108_v11 = vld [vmem:[%s7565_s2 + $0xbb0] sm:$0xff]   ;;  %v6109_v23 = vld [vmem:[%s7565_s2 + $0xb20] sm:$0xff]  }
 0x14c   :  { %v5313_v22 = vadd.f32 %v5312_v19, %v5311_v14  ;;  %5587 = vmatprep.subr.bf16.mxu1 %v6075_v25  ;;  %v1169_v53 = vrot.slane %v1147_v49, %v6322_v42  ;;  %v1148_v55 = vcombine.high %v7364_v51, %v7364_v51  ;;  %v1177_v2 = vcombine.high %v1155_v59, %v1155_v59  ;;  %v6105_v14 = vld [vmem:[%s7565_s2 + $0xb28] sm:$0xff]   ;;  %v6107_v19 = vld [vmem:[%s7565_s2 + $0xb60] sm:$0xff]  }
 0x14d   :  { %v5314_v26 = vpop.f32.mrf.mxu0  ;;  %v6114_v25 = vld [vmem:[%s7565_s2 + $0xbe0] sm:$0xff]   ;;  %v1162_v44 = vrot.slane %v7364_v51, %v6322_v42 }
 0x14e   :  { %v7306_v27 = vadd.f32 %v5313_v22, %v3871_v21  ;;  %5606 = vmatpush3.bf16.msra.mxu0 %v6076_v17  ;;  %4428 = vmatprep.mubr.bf16.mxu1 %v1169_v53  ;;  %v1179_v58 = vcombine.high %v1169_v53, %v1169_v53  ;;  %v1176_v63 = vrot.slane %v1148_v55, %v6322_v42  ;;  %v6110_v17 = vld [vmem:[%s7565_s2 + $0xbe8] sm:$0xff]   ;;  %v6111_v26 = vld [vmem:[%s7565_s2 + $0xb58] sm:$0xff]  }
 0x14f   :  { %5607 = vmatprep.subr.bf16.mxu0 %v6078_v20  ;;  %v5315_v30 = vpop.f32.mrf.mxu0  ;;  %5588 = vmatpush3.bf16.msra.mxu1 %v6077_v31  ;;  %v6112_v22 = vld [vmem:[%s7565_s2 + $0xba8] sm:$0xff]   ;;  %v6120_v31 = vld [vmem:[%s7565_s2 + $0xb98] sm:$0xff]  }
 0x150   :  { %5589 = vmatprep.subr.bf16.mxu1 %v6079_v32  ;;  %4468 = vmatprep.mubr.bf16.mxu0 %v1179_v58  ;;  %v1180_v4 = vcombine.high %v1176_v63, %v1176_v63  ;;  %v6115_v30 = vld [vmem:[%s7565_s2 + $0xb50] sm:$0xff]  }
 0x151   :  { %v6117_v32 = vld [vmem:[%s7565_s2 + $0xb10] sm:$0xff]  }
 0x152   :  { %5608 = vmatpush3.bf16.msra.mxu0 %v6080_v28  ;;  %v6113_v28 = vld [vmem:[%s7565_s2 + $0xb18] sm:$0xff]  }
 0x153   :  { %5609 = vmatprep.subr.bf16.mxu0 %v6082_v29  ;;  %5590 = vmatpush3.bf16.msra.mxu1 %v6081_v35  ;;  %v6118_v29 = vld [vmem:[%s7565_s2 + $0xbd8] sm:$0xff]   ;;  %v6124_v35 = vld [vmem:[%s7565_s2 + $0xb90] sm:$0xff]  }
 0x154   :  { %5591 = vmatprep.subr.bf16.mxu1 %v6083_v36  ;;  %v6121_v36 = vld [vmem:[%s7565_s2 + $0xb08] sm:$0xff]  }
 0x156   :  { %5610 = vmatpush3.bf16.msra.mxu0 %v6084_v33  ;;  %v6122_v33 = vld [vmem:[%s7565_s2 + $0xbd0] sm:$0xff]  }
 0x157   :  { %5611 = vmatprep.subr.bf16.mxu0 %v6086_v34  ;;  %5592 = vmatpush3.bf16.msra.mxu1 %v6085_v39  ;;  %v6119_v34 = vld [vmem:[%s7565_s2 + $0xb48] sm:$0xff]  }
 0x158   :  { %5593 = vmatprep.subr.bf16.mxu1 %v6087_v40  ;;  %v6128_v39 = vld [vmem:[%s7565_s2 + $0xb88] sm:$0xff]   ;;  %v6130_v40 = vld [vmem:[%s7565_s2 + $0xbc0] sm:$0xff]  }
 0x15a   :  { %5612 = vmatpush3.bf16.msra.mxu0 %v6088_v37  ;;  %v6127_v37 = vld [vmem:[%s7565_s2 + $0xbc8] sm:$0xff]  }
 0x15b   :  { %5613 = vmatprep.subr.bf16.mxu0 %v6090_v38  ;;  %5594 = vmatpush3.bf16.msra.mxu1 %v6089_v41  ;;  %v6123_v38 = vld [vmem:[%s7565_s2 + $0xb40] sm:$0xff]  }
 0x15c   :  { %5595 = vmatprep.subr.bf16.mxu1 %v6091_v48  ;;  %v6125_v41 = vld [vmem:[%s7565_s2 + $0xb00] sm:$0xff]   ;;  %v6132_v48 = vld [vmem:[%s7565_s2 + $0xc30] sm:$0xff]  }
 0x15e   :  { %5614 = vmatpush3.bf16.msra.mxu0 %v6092_v43  ;;  %v6131_v43 = vld [vmem:[%s7565_s2 + $0xb80] sm:$0xff]  }
 0x15f   :  { %5615 = vmatprep.subr.bf16.mxu0 %v6094_v46  ;;  %5596 = vmatpush3.bf16.msra.mxu1 %v6093_v52  ;;  %v1178_v46 = vcombine.high %v1162_v44, %v1162_v44  ;;  %v6133_v52 = vld [vmem:[%s7565_s2 + $0xc28] sm:$0xff]  }
 0x160   :  { %5625 = vmatprep.subr.bf16.mxu1 %v6096_v56 }
 0x162   :  { %5616 = vmatpush3.bf16.msra.mxu0 %v6095_v50  ;;  %v5333_v60 = vpop.f32.mrf.mxu1  ;;  %4429 = vmatmul.mubr.bf16.vlgmr.msra.gmra.mxu1 %v1155_v59 }
 0x163   :  { %5617 = vmatprep.subr.bf16.mxu0 %v6098_v54  ;;  %5626 = vmatpush3.bf16.msra.mxu1 %v6097_v61 }
 0x164   :  { %4508 = vmatprep.mubr.bf16.mxu1 %v1176_v63  ;;  %v5334_v7 = vpop.f32.mrf.mxu1  ;;  %5627 = vmatprep.subr.bf16.mxu1 %v6100_v0 }
 0x165   :  { %v5335_v10 = vadd.f32 %v5334_v7, %v5333_v60 }
 0x166   :  { %5618 = vmatpush3.bf16.msra.mxu0 %v6099_v57  ;;  %v5336_v12 = vpop.f32.mrf.mxu1 }
 0x167   :  { %5647 = vmatprep.subr.bf16.mxu0 %v6102_v62  ;;  %v3951_v15 = vadd.f32 %v5335_v10, %v7306_v27  ;;  %5628 = vmatpush3.bf16.msra.mxu1 %v6101_v5  ;;  %v6116_v27 = vld [vmem:[%s7565_s2 + $0xba0] sm:$0xff]  }
 0x168   :  { %v5337_v18 = vpop.f32.mrf.mxu1  ;;  %5629 = vmatprep.subr.bf16.mxu1 %v6103_v9 }
 0x169   :  { %v5355_v8 = vpop.f32.mrf.mxu0  ;;  %4469 = vmatmul.mubr.bf16.vlgmr.msra.gmra.mxu0 %v1177_v2 }
 0x16a   :  { %5648 = vmatpush3.bf16.msra.mxu0 %v6104_v3  ;;  %4548 = vmatprep.mubr.bf16.mxu0 %v1180_v4 }
 0x16b   :  { %v5356_v13 = vpop.f32.mrf.mxu0  ;;  %5649 = vmatprep.subr.bf16.mxu0 %v6106_v6  ;;  %5630 = vmatpush3.bf16.msra.mxu1 %v6105_v14 }
 0x16c   :  { %v5357_v16 = vadd.f32 %v5356_v13, %v5355_v8  ;;  %5631 = vmatprep.subr.bf16.mxu1 %v6107_v19 }
 0x16d   :  { %v5358_v20 = vpop.f32.mrf.mxu0 }
 0x16e   :  { %v7417_v21 = vadd.f32 %v5357_v16, %v3951_v15  ;;  %5650 = vmatpush3.bf16.msra.mxu0 %v6108_v11 }
 0x16f   :  { %5651 = vmatprep.subr.bf16.mxu0 %v6110_v17  ;;  %v5359_v24 = vpop.f32.mrf.mxu0  ;;  %5632 = vmatpush3.bf16.msra.mxu1 %v6109_v23 }
 0x170   :  { %5633 = vmatprep.subr.bf16.mxu1 %v6111_v26 }
 0x172   :  { %5652 = vmatpush3.bf16.msra.mxu0 %v6112_v22 }
 0x173   :  { %5653 = vmatprep.subr.bf16.mxu0 %v6114_v25  ;;  %5634 = vmatpush3.bf16.msra.mxu1 %v6113_v28 }
 0x174   :  { %5635 = vmatprep.subr.bf16.mxu1 %v6115_v30 }
 0x176   :  { %5654 = vmatpush3.bf16.msra.mxu0 %v6116_v27 }
 0x177   :  { %5655 = vmatprep.subr.bf16.mxu0 %v6118_v29  ;;  %5636 = vmatpush3.bf16.msra.mxu1 %v6117_v32 }
 0x178   :  { %5637 = vmatprep.subr.bf16.mxu1 %v6119_v34 }
 0x17a   :  { %5656 = vmatpush3.bf16.msra.mxu0 %v6120_v31 }
 0x17b   :  { %5657 = vmatprep.subr.bf16.mxu0 %v6122_v33  ;;  %5638 = vmatpush3.bf16.msra.mxu1 %v6121_v36 }
 0x17c   :  { %5639 = vmatprep.subr.bf16.mxu1 %v6123_v38 }
 0x17e   :  { %5658 = vmatpush3.bf16.msra.mxu0 %v6124_v35 }
 0x17f   :  { %5659 = vmatprep.subr.bf16.mxu0 %v6127_v37  ;;  %5640 = vmatpush3.bf16.msra.mxu1 %v6125_v41 }
 0x180   :  { %5695 = vmatprep.subr.bf16.mxu1 %v6169_v1 }
 0x182   :  { %5660 = vmatpush3.bf16.msra.mxu0 %v6128_v39  ;;  %v5377_v47 = vpop.f32.mrf.mxu1  ;;  %4509 = vmatmul.mubr.bf16.vlgmr.msra.gmra.mxu1 %v1162_v44 }
 0x183   :  { %5661 = vmatprep.subr.bf16.mxu0 %v6130_v40  ;;  %5696 = vmatpush3.bf16.msra.mxu1 %v6129_v45 }
 0x184   :  { %5711 = vmatprep.mubr.msk.bf16.mxu1 %vm6170_vm0, %v6169_v1  ;;  %v5378_v49 = vpop.f32.mrf.mxu1  ;;  %5697 = vmatprep.subr.bf16.mxu1 %v6169_v1 }
 0x185   :  { %v5379_v51 = vadd.f32 %v5378_v49, %v5377_v47 }
 0x186   :  { %5662 = vmatpush3.bf16.msra.mxu0 %v6131_v43  ;;  %v5380_v53 = vpop.f32.mrf.mxu1 }
 0x187   :  { %5715 = vmatprep.subr.bf16.mxu0 %v6169_v1  ;;  %v4031_v55 = vadd.f32 %v5379_v51, %v7417_v21  ;;  %5698 = vmatpush3.bf16.msra.mxu1 %v6132_v48 }
 0x188   :  { %v5381_v57 = vpop.f32.mrf.mxu1  ;;  %5699 = vmatprep.subr.bf16.mxu1 %v6169_v1 }
 0x189   :  { %v5399_v50 = vpop.f32.mrf.mxu0  ;;  %4549 = vmatmul.mubr.bf16.vlgmr.msra.gmra.mxu0 %v1178_v46 }
 0x18a   :  { %5731 = vmatprep.mubr.msk.bf16.mxu0 %vm6170_vm0, %v6169_v1 }
 0x18b   :  { %v5400_v54 = vpop.f32.mrf.mxu0 }
 0x18c   :  { %v5401_v56 = vadd.f32 %v5400_v54, %v5399_v50 }
 0x18d   :  { %v5402_v58 = vpop.f32.mrf.mxu0 }
 0x18e   :  { %12 = vsyncpa [#allocation3], 0  ;;  %v4071_v59 = vadd.f32 %v5401_v56, %v4031_v55  ;;  %5700 = vmatpush3.bf16.msra.mxu1 %v6133_v52  ;;  %v6134_v62 = vld [vmem:[%s7565_s2 + $0xc20] sm:$0xff]   ;;  %v6135_v63 = vld [vmem:[%s7565_s2 + $0xc18] sm:$0xff]   ;;  %s6172_s21 = smov [#allocation2]  }
 0x18f   :  { %v5403_v61 = vpop.f32.mrf.mxu0  ;;  %5701 = vmatprep.subr.bf16.mxu1 %v6169_v1  ;;  %v6136_v0 = vld [vmem:[%s7565_s2 + $0xc10] sm:$0xff]   ;;  %v6137_v2 = vld [vmem:[%s7565_s2 + $0xc08] sm:$0xff]   ;;  %v6138_v3 = vld [vmem:[%s7565_s2 + $0xc00] sm:$0xff]   ;;  %s4724_s22 = sshll.u32 %s6172_s21, 4  ;;  %s4725_s22 = int_to_ptr.vmem [resolvable:$true] %s4724_s22 }
 0x190   :  { %v4735_v4 = vld.sshfl [vmem:[%s7563_s0 + $0x30] sm:$0x1 pattern:$0x75316420]  ;;  %v6139_v26 = vld [vmem:[%s7568_s5 + $0x38] sm:$0xff]   ;;  %v6141_v30 = vld [vmem:[%s7568_s5 + $0x28] sm:$0xff]   ;;  %p6152_p1 = scmp.lt.s32.totalorder %s4725_s22, %s4725_s22 }
 0x191   :  { %v1194_v60 = vrot.slane %v4735_v4, %v6322_v42  ;;  %5716 = vmatpush3.bf16.msra.mxu0 %v6139_v26  ;;  %v6140_v29 = vld [vmem:[%s7568_s5 + $0x30] sm:$0xff]   ;;  %v6142_v31 = vld [vmem:[%s7568_s5 + $0x20] sm:$0xff]   ;;  %v6143_v32 = vld [vmem:[%s7568_s5 + $0x18] sm:$0xff]  }
 0x192   :  { %5702 = vmatpush3.bf16.msra.mxu1 %v6134_v62  ;;  %5717 = vmatprep.subr.bf16.mxu0 %v6169_v1  ;;  %v6144_v33 = vld [vmem:[%s7568_s5 + $0x10] sm:$0xff]   ;;  %v6145_v35 = vld [vmem:[%s7568_s5 + $0x8] sm:$0xff]   ;;  %v6146_v41 = vld [vmem:[%s7568_s5] sm:$0xff]  }
 0x193   :  { %5703 = vmatprep.subr.bf16.mxu1 %v6169_v1 }
 0x195   :  { %5718 = vmatpush3.bf16.msra.mxu0 %v6140_v29  ;;  %v5129_v29 = vld [vmem:[%s7569_s6] ss:$0 sm:$0xff] }
 0x196   :  { %5704 = vmatpush3.bf16.msra.mxu1 %v6135_v63  ;;  %5719 = vmatprep.subr.bf16.mxu0 %v6169_v1 }
 0x197   :  { %5705 = vmatprep.subr.bf16.mxu1 %v6169_v1 }
 0x199   :  { %5720 = vmatpush3.bf16.msra.mxu0 %v6141_v30 }
 0x19a   :  { %5706 = vmatpush3.bf16.msra.mxu1 %v6136_v0  ;;  %5721 = vmatprep.subr.bf16.mxu0 %v6169_v1 }
 0x19b   :  { %5707 = vmatprep.subr.bf16.mxu1 %v6169_v1 }
 0x19d   :  { %5722 = vmatpush3.bf16.msra.mxu0 %v6142_v31 }
 0x19e   :  { %5708 = vmatpush3.bf16.msra.mxu1 %v6137_v2  ;;  %5723 = vmatprep.subr.bf16.mxu0 %v6169_v1 }
 0x19f   :  { %5709 = vmatprep.subr.bf16.mxu1 %v6169_v1 }
 0x1a1   :  { %5724 = vmatpush3.bf16.msra.mxu0 %v6143_v32 }
 0x1a2   :  { %5710 = vmatpush3.bf16.msra.mxu1 %v6138_v3  ;;  %v5421_v5 = vpop.f32.mrf.mxu1  ;;  %5725 = vmatprep.subr.bf16.mxu0 %v6169_v1 }
 0x1a4   :  { %v5422_v6 = vpop.f32.mrf.mxu1 }
 0x1a5   :  { %5712 = vmatmul.mubr.bf16.vlgmr.msra.gmra.mxu1 %v1194_v60  ;;  %v5423_v8 = vadd.f32 %v5422_v6, %v5421_v5  ;;  %5726 = vmatpush3.bf16.msra.mxu0 %v6144_v33 }
 0x1a6   :  { %v5424_v9 = vpop.f32.mrf.mxu1  ;;  %5727 = vmatprep.subr.bf16.mxu0 %v6169_v1 }
 0x1a7   :  { %v4111_v11 = vadd.f32 %v5423_v8, %v4071_v59 }
 0x1a8   :  { %v5425_v13 = vpop.f32.mrf.mxu1 }
 0x1a9   :  { %v5443_v7 = vpop.f32.mrf.mxu0  ;;  %5728 = vmatpush3.bf16.msra.mxu0 %v6145_v35 }
 0x1aa   :  { %5729 = vmatprep.subr.bf16.mxu0 %v6169_v1 }
 0x1ab   :  { %v5444_v10 = vpop.f32.mrf.mxu0 }
 0x1ac   :  { %v5445_v12 = vadd.f32 %v5444_v10, %v5443_v7 }
 0x1ad   :  { %v5446_v14 = vpop.f32.mrf.mxu0  ;;  %5730 = vmatpush3.bf16.msra.mxu0 %v6146_v41 }
 0x1ae   :  { %v4151_v15 = vadd.f32 %v5445_v12, %v4111_v11 }
 0x1af   :  { %v5447_v16 = vpop.f32.mrf.mxu0 }
 0x1c2   :  { %v5465_v17 = vpop.f32.mrf.mxu1 }
 0x1c4   :  { %v5466_v18 = vpop.f32.mrf.mxu1 }
 0x1c5   :  { %v5467_v20 = vadd.f32 %v5466_v18, %v5465_v17 }
 0x1c6   :  { %v5468_v21 = vpop.f32.mrf.mxu1 }
 0x1c7   :  { %v4191_v22 = vadd.f32 %v5467_v20, %v4151_v15 }
 0x1c8   :  { %v5469_v24 = vpop.f32.mrf.mxu1 }
 0x1c9   :  { %v5487_v19 = vpop.f32.mrf.mxu0 }
 0x1cb   :  { %v5488_v42 = vpop.f32.mrf.mxu0 }
 0x1cc   :  { %v5489_v23 = vadd.f32 %v5488_v42, %v5487_v19  ;;  %v5128_v42 = vld [vmem:[%s7567_s4] ss:$0 sm:$0xff]  ;;  %s6147_s4 = scalar_lea.vmem %s4725_s22, 32 }
 0x1cd   :  { %v5490_v25 = vpop.f32.mrf.mxu0  ;;  %p6148_p0 = scmp.ne.s32.totalorder %s4725_s22, %s6147_s4  ;;  %p6153_p2 = scmp.lt.s32.totalorder %s6147_s4, %s6147_s4 }
 0x1ce   :  { %v4231_v27 = vadd.f32 %v5489_v23, %v4191_v22 }
 0x1cf   :  { %v5491_v28 = vpop.f32.mrf.mxu0  ;;  %p6154_p3 = por %p6153_p2, %p6152_p1 }
 0x1d1   :  { %p6155_p4 = pnand %p6154_p3, %p6148_p0 }
 0x1e2   :  { %v5509_v34 = vpop.f32.mrf.mxu1 }
 0x1e4   :  { %v5510_v36 = vpop.f32.mrf.mxu1 }
 0x1e5   :  { %v5511_v38 = vadd.f32 %v5510_v36, %v5509_v34 }
 0x1e6   :  { %v5512_v39 = vpop.f32.mrf.mxu1 }
 0x1e7   :  { %v4271_v43 = vadd.f32 %v5511_v38, %v4231_v27 }
 0x1e8   :  { %v5513_v45 = vpop.f32.mrf.mxu1 }
 0x1e9   :  { %v5531_v37 = vpop.f32.mrf.mxu0 }
 0x1eb   :  { %v5532_v40 = vpop.f32.mrf.mxu0 }
 0x1ec   :  { %v5533_v44 = vadd.f32 %v5532_v40, %v5531_v37 }
 0x1ed   :  { %v5534_v46 = vpop.f32.mrf.mxu0 }
 0x1ee   :  { %v4311_v47 = vadd.f32 %v5533_v44, %v4271_v43 }
 0x1ef   :  { %v5535_v48 = vpop.f32.mrf.mxu0 }
 0x202   :  { %v5553_v49 = vpop.f32.mrf.mxu1 }
 0x204   :  { %v5554_v50 = vpop.f32.mrf.mxu1 }
 0x205   :  { %v5555_v52 = vadd.f32 %v5554_v50, %v5553_v49 }
 0x206   :  { %v5556_v53 = vpop.f32.mrf.mxu1 }
 0x207   :  { %v4351_v1 = vadd.f32 %v5555_v52, %v4311_v47 }
 0x208   :  { %v5557_v56 = vpop.f32.mrf.mxu1 }
 0x209   :  { %v5575_v51 = vpop.f32.mrf.mxu0 }
 0x20b   :  { %v5576_v54 = vpop.f32.mrf.mxu0 }
 0x20c   :  { %v5577_v55 = vadd.f32 %v5576_v54, %v5575_v51 }
 0x20d   :  { %v5578_v57 = vpop.f32.mrf.mxu0 }
 0x20e   :  { %v4391_v58 = vadd.f32 %v5577_v55, %v4351_v1 }
 0x20f   :  { %v5579_v59 = vpop.f32.mrf.mxu0 }
 0x222   :  { %v5597_v61 = vpop.f32.mrf.mxu1 }
 0x224   :  { %v5598_v62 = vpop.f32.mrf.mxu1 }
 0x225   :  { %v5599_v13 = vadd.f32 %v5598_v62, %v5597_v61 }
 0x226   :  { %v5600_v0 = vpop.f32.mrf.mxu1 }
 0x227   :  { %v4431_v15 = vadd.f32 %v5599_v13, %v4391_v58 }
 0x228   :  { %v5601_v3 = vpop.f32.mrf.mxu1 }
 0x229   :  { %v5619_v63 = vpop.f32.mrf.mxu0 }
 0x22b   :  { %v5620_v2 = vpop.f32.mrf.mxu0 }
 0x22c   :  { %v5621_v14 = vadd.f32 %v5620_v2, %v5619_v63 }
 0x22d   :  { %v5622_v4 = vpop.f32.mrf.mxu0 }
 0x22e   :  { %v4471_v17 = vadd.f32 %v5621_v14, %v4431_v15 }
 0x22f   :  { %v5623_v60 = vpop.f32.mrf.mxu0 }
 0x242   :  { %v5641_v5 = vpop.f32.mrf.mxu1 }
 0x244   :  { %v5642_v6 = vpop.f32.mrf.mxu1 }
 0x245   :  { %v5643_v16 = vadd.f32 %v5642_v6, %v5641_v5 }
 0x246   :  { %v5644_v8 = vpop.f32.mrf.mxu1 }
 0x247   :  { %v4511_v19 = vadd.f32 %v5643_v16, %v4471_v17 }
 0x248   :  { %v5645_v10 = vpop.f32.mrf.mxu1 }
 0x249   :  { %v5663_v7 = vpop.f32.mrf.mxu0 }
 0x24b   :  { %v5664_v9 = vpop.f32.mrf.mxu0 }
 0x24c   :  { %v5665_v18 = vadd.f32 %v5664_v9, %v5663_v7 }
 0x24d   :  { %v5666_v11 = vpop.f32.mrf.mxu0 }
 0x24e   :  { %v4551_v20 = vadd.f32 %v5665_v18, %v4511_v19 }
 0x24f   :  { %v5667_v12 = vpop.f32.mrf.mxu0 }
 0x265   :  { %v4590_v21 = vpop.f32.mrf.mxu1 }
 0x266   :  { %v4591_v22 = vadd.f32 %v4590_v21, %v4551_v20 }
 0x267   :  { %v5713_v23 = vpop.f32.mrf.mxu1 }
 0x268   :  { %v4603_v24 = vadd.f32 %v5128_v42, %v4591_v22 }
 0x269   :  { %v4593_v25 = vpop.f32.mrf.mxu1 }
 0x26a   :  { %v4604_v26 = vmax.f32 %v4603_v24, 0.0 }
 0x26b   :  { %v5714_v27 = vpop.f32.mrf.mxu1 }
 0x26c   :  { %v4605_v28 = vpack.c.bf16 %v4604_v26, %v4604_v26 }
 0x26e   :  { %5732 = vmatmul.mubr.bf16.vlgmr.msra.gmra.mxu0 %v4605_v28 }
 0x32e   :  { %v4711_v30 = vpop.f32.mrf.mxu0 }
 0x32f   :  { %v4712_v31 = vadd.f32 %v5129_v29, %v4711_v30 }
 0x330   :  { %v5733_v32 = vpop.f32.mrf.mxu0 }
 0x331   :  { %4717 = vst [vmem:[#allocation2] sm:$0x3] %v4712_v31 }
 0x332   :  { %v4714_v33 = vpop.f32.mrf.mxu0 }
 0x333   :  { %6158 = shalt.err (!%p6155_p4)
}
 0x334   :  { %4727 = dma.vmem_to_hbm [thread:$0]  %s4725_s22, 32, %s7570_s7, [#allocation3]   ;;  %v5734_v34 = vpop.f32.mrf.mxu0 }
 0x335   :  { %6167 = dma.done.wait [#allocation3], 32  }
 0x336   :  { %6168 = vsyncadd [#allocation3], 4294967264 }
 0x337   :  { %4731 = vsyncpa [#allocation3], 1 }

</bundles_post_ra>
